<compile_context>
chip_gen: v7x
topology: tpu7x:2x2x1
jax: 0.10.0
libtpu: 0.0.40
codegen_flags: <defaults>
</compile_context>

<pallas_src>
import math
from functools import partial

import jax
import jax.numpy as jnp
import numpy as np
from jax.experimental import pallas as pl
from jax.experimental.pallas import tpu as pltpu


_MAX_TILE_ROWS = 8192        # absolute cap on (folded) rows per grid step
_MAX_UNROLL = 256            # cap on fold * total_runs slice copies per kernel body


def _vmem_limit_bytes():
    """Scoped-VMEM request, gated per generation (v7x has only 64 MiB physical)."""
    try:
        cap = getattr(pltpu.get_tpu_info(), "vmem_capacity_bytes", None)
    except Exception:
        cap = None
    if cap is not None and cap >= 100 * 1024 * 1024:   # v5e / v6e: 128 MiB physical
        return 64 * 1024 * 1024
    return 32 * 1024 * 1024                            # safe everywhere (incl. v7x)


def _runs(idx):
    """Group a static index list into contiguous (src_start, dst_start, width) runs."""
    runs = []
    k = 0
    while k < len(idx):
        start = k
        while k + 1 < len(idx) and idx[k + 1] == idx[k] + 1:
            k += 1
        runs.append((idx[start], start, k - start + 1))
        k += 1
    return tuple(runs)


def _choose_fold(n_rows, widths, total_runs):
    """Fold factor F (a divisor of n_rows): rows folded into the lane axis so both
    input (F*D) and output (F*D_out) blocks are lane-dense (>=128 lanes) if possible."""
    if n_rows <= 1:
        return 1
    min_w = max(1, min(widths))
    target = -(-128 // min_w)                               # ceil(128 / narrowest width)
    f_cap = max(8, min(64, _MAX_UNROLL // max(1, total_runs)))
    f_cap = min(f_cap, n_rows)
    divisors = [f for f in range(1, f_cap + 1) if n_rows % f == 0]
    big_enough = [f for f in divisors if f >= target]
    return min(big_enough) if big_enough else max(divisors)


def _choose_tile_rows(folded_rows, row_bytes, sublane, tile_budget_bytes):
    """(Folded) rows per grid step: as large as the VMEM budget allows, sublane-aligned,
    ragged last tile accepted; split into >=2 steps so both v7x TCs get work."""
    cap = tile_budget_bytes // max(1, row_bytes)
    cap = max(sublane, (cap // sublane) * sublane)
    cap = min(cap, _MAX_TILE_ROWS)
    if folded_rows <= cap:
        if folded_rows > sublane:
            half = -(-folded_rows // 2)
            return min(folded_rows, -(-half // sublane) * sublane)
        return folded_rows                                  # tiny array: one full block
    return cap


def _fused_gather_kernel(plans, *refs):
    n = len(plans)
    in_refs, out_refs = refs[:n], refs[n:]
    for x_ref, o_ref, (fold, d_in, d_out, runs) in zip(in_refs, out_refs, plans):
        if d_out == d_in and runs == ((0, 0, d_in),):
            o_ref[...] = x_ref[...]                         # identity take: straight copy
            continue
        # Pure data movement: run-wise static lane slices copied straight from the
        # input block into the output block (no concat / one-lane temporaries, no MXU).
        for j in range(fold):
            src_base = j * d_in
            dst_base = j * d_out
            for src, dst, w in runs:
                o_ref[:, dst_base + dst:dst_base + dst + w] = (
                    x_ref[:, src_base + src:src_base + src + w]
                )


def _fused_gather_last_axis(arrays, idx_lists):
    """Compute arrays[i][..., idx_lists[i]] for all i in a single pallas_call.
    All arrays must share the same leading (non-last) shape."""
    lead = arrays[0].shape[:-1]
    for a in arrays:
        assert a.shape[:-1] == lead, "fused arrays must share leading dims"
    n_rows = int(math.prod(lead)) if lead else 1

    d_ins = [int(a.shape[-1]) for a in arrays]
    idx_lists = [tuple(int(k) % d for k in idx) for idx, d in zip(idx_lists, d_ins)]
    d_outs = [len(idx) for idx in idx_lists]
    runs_list = [_runs(idx) for idx in idx_lists]
    total_runs = sum(len(r) for r in runs_list)

    fold = _choose_fold(n_rows, d_ins + d_outs, total_runs)
    folded_rows = n_rows // fold

    itemsizes = [a.dtype.itemsize for a in arrays]
    sublane = max(max(8, 32 // s) for s in itemsizes)       # 8 f32 / 16 bf16 / 32 int8

    vmem_limit = _vmem_limit_bytes()
    tile_budget = (vmem_limit * 3) // 10                    # double-buffered -> ~60% of limit
    row_bytes = sum(fold * (din + dout) * s
                    for din, dout, s in zip(d_ins, d_outs, itemsizes))
    tile_rows = _choose_tile_rows(folded_rows, row_bytes, sublane, tile_budget)

    grid = (pl.cdiv(folded_rows, tile_rows),)

    # Free, row-major reshapes: fold rows into the lane axis.
    flats = [a.reshape(folded_rows, fold * d) for a, d in zip(arrays, d_ins)]
    in_specs = [pl.BlockSpec((tile_rows, fold * d), lambda i: (i, 0)) for d in d_ins]
    out_specs = [pl.BlockSpec((tile_rows, fold * d), lambda i: (i, 0)) for d in d_outs]
    out_shapes = tuple(jax.ShapeDtypeStruct((folded_rows, fold * d), a.dtype)
                       for a, d in zip(arrays, d_outs))
    plans = tuple((fold, din, dout, runs)
                  for din, dout, runs in zip(d_ins, d_outs, runs_list))

    outs = pl.pallas_call(
        partial(_fused_gather_kernel, plans),
        out_shape=out_shapes,
        grid_spec=pltpu.PrefetchScalarGridSpec(
            num_scalar_prefetch=0,
            grid=grid,
            in_specs=in_specs,
            out_specs=out_specs,
        ),
        compiler_params=pltpu.CompilerParams(
            dimension_semantics=("parallel",),
            vmem_limit_bytes=vmem_limit,
        ),
    )(*flats)
    if not isinstance(outs, (tuple, list)):
        outs = (outs,)

    # Free reshape back to the original leading shape.
    return tuple(o.reshape(*lead, d) for o, d in zip(outs, d_outs))


class BasePallas:
    """JAX/Pallas equivalent of the PyTorch `Base` module."""

    def __init__(self, xi, ti):
        self.xi = tuple(int(i) for i in xi)
        self.ti = tuple(int(i) for i in ti)

    def __call__(self, x_all, t_all):
        if x_all.shape[:-1] == t_all.shape[:-1]:
            # Fused: one kernel launch for both gathers.
            x_out, t_out = _fused_gather_last_axis((x_all, t_all), (self.xi, self.ti))
        else:
            (x_out,) = _fused_gather_last_axis((x_all,), (self.xi,))
            (t_out,) = _fused_gather_last_axis((t_all,), (self.ti,))
        return x_out, t_out


if __name__ == "__main__":
    key = jax.random.PRNGKey(0)
    k1, k2, k3, k4, k5, k6 = jax.random.split(key, 6)

    # --- Test 1: module-sized example (fused path, lane-dense folded blocks) ---
    B, C, H, W, D = 2, 3, 4, 8, 16
    x_all = jax.random.normal(k1, (B, C, H, W, D), dtype=jnp.float32)
    t_all = jax.random.normal(k2, (B, C, H, W, D), dtype=jnp.float32)
    xi = [0, 2, 5, 7, 9]          # non-contiguous indices
    ti = [2, 3, 4, 5]             # contiguous run
    mod = BasePallas(xi, ti)
    x_out, t_out = mod(x_all, t_all)
    x_out = jax.block_until_ready(x_out)
    t_out = jax.block_until_ready(t_out)
    np.testing.assert_array_equal(np.asarray(x_out), np.asarray(x_all)[..., xi])
    np.testing.assert_array_equal(np.asarray(t_out), np.asarray(t_all)[..., ti])
    assert x_out.shape == (B, C, H, W, len(xi))
    assert t_out.shape == (B, C, H, W, len(ti))

    # --- Test 2: ragged last tile, multi-step grid, mixed dtype, repeated/out-of-order idx ---
    shape2 = (3, 5, 10, 13, 24)   # n_rows = 1950 (non power-of-two)
    x2 = jax.random.normal(k3, shape2, dtype=jnp.float32)
    t2 = jax.random.normal(k4, shape2, dtype=jnp.float32).astype(jnp.bfloat16)
    xi2 = [0, 3, 4, 5, 11, 20, 23]
    ti2 = [7, 2, 2]
    xo2, to2 = BasePallas(xi2, ti2)(x2, t2)
    xo2 = jax.block_until_ready(xo2)
    to2 = jax.block_until_ready(to2)
    np.testing.assert_array_equal(np.asarray(xo2), np.asarray(x2)[..., xi2])
    np.testing.assert_array_equal(np.asarray(to2), np.asarray(t2)[..., ti2])

    # --- Test 3: non-fused path (different leading shapes) ---
    x3 = jax.random.normal(k5, (1, 1, 2, 8, 8), dtype=jnp.float32)
    t3 = jax.random.normal(k6, (1, 1, 2, 4, 6), dtype=jnp.float32)
    xi3 = [1, 7]
    ti3 = [0, 5, 2]
    xo3, to3 = BasePallas(xi3, ti3)(x3, t3)
    xo3 = jax.block_until_ready(xo3)
    to3 = jax.block_until_ready(to3)
    np.testing.assert_array_equal(np.asarray(xo3), np.asarray(x3)[..., xi3])
    np.testing.assert_array_equal(np.asarray(to3), np.asarray(t3)[..., ti3])

    print("KERNEL_OK")
</pallas_src>

<mosaic_0001>
module attributes {stable_mosaic.version = 11 : i64} {
  func.func @_fused_gather_kernel(%arg0: i32, %arg1: memref<6x512xf32, #tpu.memory_space<vmem>>, %arg2: memref<6x512xf32, #tpu.memory_space<vmem>>, %arg3: memref<6x160xf32, #tpu.memory_space<vmem>>, %arg4: memref<6x128xf32, #tpu.memory_space<vmem>>) attributes {dimension_semantics = [#tpu.dimension_semantics<parallel>], iteration_bounds = array<i64: 1>, scalar_prefetch = 0 : i64, scratch_operands = 0 : i64, tpu.core_type = #tpu.core_type<tc>, window_params = [{transform_indices = @transform_0, window_bounds = array<i64: 6, 512>}, {transform_indices = @transform_1, window_bounds = array<i64: 6, 512>}, {transform_indices = @transform_2, window_bounds = array<i64: 6, 160>}, {transform_indices = @transform_3, window_bounds = array<i64: 6, 128>}]} {
    %c0 = arith.constant 0 : index
    %c0_0 = arith.constant 0 : index
    %0 = vector.load %arg1[%c0, %c0_0] : memref<6x512xf32, #tpu.memory_space<vmem>>, vector<6x1xf32>
    %c0_1 = arith.constant 0 : index
    %c0_2 = arith.constant 0 : index
    %1 = vector.load %arg3[%c0_1, %c0_2] : memref<6x160xf32, #tpu.memory_space<vmem>>, vector<6x1xf32>
    tpu.vector_store %arg3[%c0_1, %c0_2], %0 {strides = array<i32>} : memref<6x160xf32, #tpu.memory_space<vmem>>, vector<6x1xf32>,
    %c0_3 = arith.constant 0 : index
    %c2 = arith.constant 2 : index
    %2 = vector.load %arg1[%c0_3, %c2] : memref<6x512xf32, #tpu.memory_space<vmem>>, vector<6x1xf32>
    %c0_4 = arith.constant 0 : index
    %c1 = arith.constant 1 : index
    %3 = vector.load %arg3[%c0_4, %c1] : memref<6x160xf32, #tpu.memory_space<vmem>>, vector<6x1xf32>
    tpu.vector_store %arg3[%c0_4, %c1], %2 {strides = array<i32>} : memref<6x160xf32, #tpu.memory_space<vmem>>, vector<6x1xf32>,
    %c0_5 = arith.constant 0 : index
    %c5 = arith.constant 5 : index
    %4 = vector.load %arg1[%c0_5, %c5] : memref<6x512xf32, #tpu.memory_space<vmem>>, vector<6x1xf32>
    %c0_6 = arith.constant 0 : index
    %c2_7 = arith.constant 2 : index
    %5 = vector.load %arg3[%c0_6, %c2_7] : memref<6x160xf32, #tpu.memory_space<vmem>>, vector<6x1xf32>
    tpu.vector_store %arg3[%c0_6, %c2_7], %4 {strides = array<i32>} : memref<6x160xf32, #tpu.memory_space<vmem>>, vector<6x1xf32>,
    %c0_8 = arith.constant 0 : index
    %c7 = arith.constant 7 : index
    %6 = vector.load %arg1[%c0_8, %c7] : memref<6x512xf32, #tpu.memory_space<vmem>>, vector<6x1xf32>
    %c0_9 = arith.constant 0 : index
    %c3 = arith.constant 3 : index
    %7 = vector.load %arg3[%c0_9, %c3] : memref<6x160xf32, #tpu.memory_space<vmem>>, vector<6x1xf32>
    tpu.vector_store %arg3[%c0_9, %c3], %6 {strides = array<i32>} : memref<6x160xf32, #tpu.memory_space<vmem>>, vector<6x1xf32>,
    %c0_10 = arith.constant 0 : index
    %c9 = arith.constant 9 : index
    %8 = vector.load %arg1[%c0_10, %c9] : memref<6x512xf32, #tpu.memory_space<vmem>>, vector<6x1xf32>
    %c0_11 = arith.constant 0 : index
    %c4 = arith.constant 4 : index
    %9 = vector.load %arg3[%c0_11, %c4] : memref<6x160xf32, #tpu.memory_space<vmem>>, vector<6x1xf32>
    tpu.vector_store %arg3[%c0_11, %c4], %8 {strides = array<i32>} : memref<6x160xf32, #tpu.memory_space<vmem>>, vector<6x1xf32>,
    %c0_12 = arith.constant 0 : index
    %c16 = arith.constant 16 : index
    %10 = vector.load %arg1[%c0_12, %c16] : memref<6x512xf32, #tpu.memory_space<vmem>>, vector<6x1xf32>
    %c0_13 = arith.constant 0 : index
    %c5_14 = arith.constant 5 : index
    %11 = vector.load %arg3[%c0_13, %c5_14] : memref<6x160xf32, #tpu.memory_space<vmem>>, vector<6x1xf32>
    tpu.vector_store %arg3[%c0_13, %c5_14], %10 {strides = array<i32>} : memref<6x160xf32, #tpu.memory_space<vmem>>, vector<6x1xf32>,
    %c0_15 = arith.constant 0 : index
    %c18 = arith.constant 18 : index
    %12 = vector.load %arg1[%c0_15, %c18] : memref<6x512xf32, #tpu.memory_space<vmem>>, vector<6x1xf32>
    %c0_16 = arith.constant 0 : index
    %c6 = arith.constant 6 : index
    %13 = vector.load %arg3[%c0_16, %c6] : memref<6x160xf32, #tpu.memory_space<vmem>>, vector<6x1xf32>
    tpu.vector_store %arg3[%c0_16, %c6], %12 {strides = array<i32>} : memref<6x160xf32, #tpu.memory_space<vmem>>, vector<6x1xf32>,
    %c0_17 = arith.constant 0 : index
    %c21 = arith.constant 21 : index
    %14 = vector.load %arg1[%c0_17, %c21] : memref<6x512xf32, #tpu.memory_space<vmem>>, vector<6x1xf32>
    %c0_18 = arith.constant 0 : index
    %c7_19 = arith.constant 7 : index
    %15 = vector.load %arg3[%c0_18, %c7_19] : memref<6x160xf32, #tpu.memory_space<vmem>>, vector<6x1xf32>
    tpu.vector_store %arg3[%c0_18, %c7_19], %14 {strides = array<i32>} : memref<6x160xf32, #tpu.memory_space<vmem>>, vector<6x1xf32>,
    %c0_20 = arith.constant 0 : index
    %c23 = arith.constant 23 : index
    %16 = vector.load %arg1[%c0_20, %c23] : memref<6x512xf32, #tpu.memory_space<vmem>>, vector<6x1xf32>
    %c0_21 = arith.constant 0 : index
    %c8 = arith.constant 8 : index
    %17 = vector.load %arg3[%c0_21, %c8] : memref<6x160xf32, #tpu.memory_space<vmem>>, vector<6x1xf32>
    tpu.vector_store %arg3[%c0_21, %c8], %16 {strides = array<i32>} : memref<6x160xf32, #tpu.memory_space<vmem>>, vector<6x1xf32>,
    %c0_22 = arith.constant 0 : index
    %c25 = arith.constant 25 : index
    %18 = vector.load %arg1[%c0_22, %c25] : memref<6x512xf32, #tpu.memory_space<vmem>>, vector<6x1xf32>
    %c0_23 = arith.constant 0 : index
    %c9_24 = arith.constant 9 : index
    %19 = vector.load %arg3[%c0_23, %c9_24] : memref<6x160xf32, #tpu.memory_space<vmem>>, vector<6x1xf32>
    tpu.vector_store %arg3[%c0_23, %c9_24], %18 {strides = array<i32>} : memref<6x160xf32, #tpu.memory_space<vmem>>, vector<6x1xf32>,
    %c0_25 = arith.constant 0 : index
    %c32 = arith.constant 32 : index
    %20 = vector.load %arg1[%c0_25, %c32] : memref<6x512xf32, #tpu.memory_space<vmem>>, vector<6x1xf32>
    %c0_26 = arith.constant 0 : index
    %c10 = arith.constant 10 : index
    %21 = vector.load %arg3[%c0_26, %c10] : memref<6x160xf32, #tpu.memory_space<vmem>>, vector<6x1xf32>
    tpu.vector_store %arg3[%c0_26, %c10], %20 {strides = array<i32>} : memref<6x160xf32, #tpu.memory_space<vmem>>, vector<6x1xf32>,
    %c0_27 = arith.constant 0 : index
    %c34 = arith.constant 34 : index
    %22 = vector.load %arg1[%c0_27, %c34] : memref<6x512xf32, #tpu.memory_space<vmem>>, vector<6x1xf32>
    %c0_28 = arith.constant 0 : index
    %c11 = arith.constant 11 : index
    %23 = vector.load %arg3[%c0_28, %c11] : memref<6x160xf32, #tpu.memory_space<vmem>>, vector<6x1xf32>
    tpu.vector_store %arg3[%c0_28, %c11], %22 {strides = array<i32>} : memref<6x160xf32, #tpu.memory_space<vmem>>, vector<6x1xf32>,
    %c0_29 = arith.constant 0 : index
    %c37 = arith.constant 37 : index
    %24 = vector.load %arg1[%c0_29, %c37] : memref<6x512xf32, #tpu.memory_space<vmem>>, vector<6x1xf32>
    %c0_30 = arith.constant 0 : index
    %c12 = arith.constant 12 : index
    %25 = vector.load %arg3[%c0_30, %c12] : memref<6x160xf32, #tpu.memory_space<vmem>>, vector<6x1xf32>
    tpu.vector_store %arg3[%c0_30, %c12], %24 {strides = array<i32>} : memref<6x160xf32, #tpu.memory_space<vmem>>, vector<6x1xf32>,
    %c0_31 = arith.constant 0 : index
    %c39 = arith.constant 39 : index
    %26 = vector.load %arg1[%c0_31, %c39] : memref<6x512xf32, #tpu.memory_space<vmem>>, vector<6x1xf32>
    %c0_32 = arith.constant 0 : index
    %c13 = arith.constant 13 : index
    %27 = vector.load %arg3[%c0_32, %c13] : memref<6x160xf32, #tpu.memory_space<vmem>>, vector<6x1xf32>
    tpu.vector_store %arg3[%c0_32, %c13], %26 {strides = array<i32>} : memref<6x160xf32, #tpu.memory_space<vmem>>, vector<6x1xf32>,
    %c0_33 = arith.constant 0 : index
    %c41 = arith.constant 41 : index
    %28 = vector.load %arg1[%c0_33, %c41] : memref<6x512xf32, #tpu.memory_space<vmem>>, vector<6x1xf32>
    %c0_34 = arith.constant 0 : index
    %c14 = arith.constant 14 : index
    %29 = vector.load %arg3[%c0_34, %c14] : memref<6x160xf32, #tpu.memory_space<vmem>>, vector<6x1xf32>
    tpu.vector_store %arg3[%c0_34, %c14], %28 {strides = array<i32>} : memref<6x160xf32, #tpu.memory_space<vmem>>, vector<6x1xf32>,
    %c0_35 = arith.constant 0 : index
    %c48 = arith.constant 48 : index
    %30 = vector.load %arg1[%c0_35, %c48] : memref<6x512xf32, #tpu.memory_space<vmem>>, vector<6x1xf32>
    %c0_36 = arith.constant 0 : index
    %c15 = arith.constant 15 : index
    %31 = vector.load %arg3[%c0_36, %c15] : memref<6x160xf32, #tpu.memory_space<vmem>>, vector<6x1xf32>
    tpu.vector_store %arg3[%c0_36, %c15], %30 {strides = array<i32>} : memref<6x160xf32, #tpu.memory_space<vmem>>, vector<6x1xf32>,
    %c0_37 = arith.constant 0 : index
    %c50 = arith.constant 50 : index
    %32 = vector.load %arg1[%c0_37, %c50] : memref<6x512xf32, #tpu.memory_space<vmem>>, vector<6x1xf32>
    %c0_38 = arith.constant 0 : index
    %c16_39 = arith.constant 16 : index
    %33 = vector.load %arg3[%c0_38, %c16_39] : memref<6x160xf32, #tpu.memory_space<vmem>>, vector<6x1xf32>
    tpu.vector_store %arg3[%c0_38, %c16_39], %32 {strides = array<i32>} : memref<6x160xf32, #tpu.memory_space<vmem>>, vector<6x1xf32>,
    %c0_40 = arith.constant 0 : index
    %c53 = arith.constant 53 : index
    %34 = vector.load %arg1[%c0_40, %c53] : memref<6x512xf32, #tpu.memory_space<vmem>>, vector<6x1xf32>
    %c0_41 = arith.constant 0 : index
    %c17 = arith.constant 17 : index
    %35 = vector.load %arg3[%c0_41, %c17] : memref<6x160xf32, #tpu.memory_space<vmem>>, vector<6x1xf32>
    tpu.vector_store %arg3[%c0_41, %c17], %34 {strides = array<i32>} : memref<6x160xf32, #tpu.memory_space<vmem>>, vector<6x1xf32>,
    %c0_42 = arith.constant 0 : index
    %c55 = arith.constant 55 : index
    %36 = vector.load %arg1[%c0_42, %c55] : memref<6x512xf32, #tpu.memory_space<vmem>>, vector<6x1xf32>
    %c0_43 = arith.constant 0 : index
    %c18_44 = arith.constant 18 : index
    %37 = vector.load %arg3[%c0_43, %c18_44] : memref<6x160xf32, #tpu.memory_space<vmem>>, vector<6x1xf32>
    tpu.vector_store %arg3[%c0_43, %c18_44], %36 {strides = array<i32>} : memref<6x160xf32, #tpu.memory_space<vmem>>, vector<6x1xf32>,
    %c0_45 = arith.constant 0 : index
    %c57 = arith.constant 57 : index
    %38 = vector.load %arg1[%c0_45, %c57] : memref<6x512xf32, #tpu.memory_space<vmem>>, vector<6x1xf32>
    %c0_46 = arith.constant 0 : index
    %c19 = arith.constant 19 : index
    %39 = vector.load %arg3[%c0_46, %c19] : memref<6x160xf32, #tpu.memory_space<vmem>>, vector<6x1xf32>
    tpu.vector_store %arg3[%c0_46, %c19], %38 {strides = array<i32>} : memref<6x160xf32, #tpu.memory_space<vmem>>, vector<6x1xf32>,
    %c0_47 = arith.constant 0 : index
    %c64 = arith.constant 64 : index
    %40 = vector.load %arg1[%c0_47, %c64] : memref<6x512xf32, #tpu.memory_space<vmem>>, vector<6x1xf32>
    %c0_48 = arith.constant 0 : index
    %c20 = arith.constant 20 : index
    %41 = vector.load %arg3[%c0_48, %c20] : memref<6x160xf32, #tpu.memory_space<vmem>>, vector<6x1xf32>
    tpu.vector_store %arg3[%c0_48, %c20], %40 {strides = array<i32>} : memref<6x160xf32, #tpu.memory_space<vmem>>, vector<6x1xf32>,
    %c0_49 = arith.constant 0 : index
    %c66 = arith.constant 66 : index
    %42 = vector.load %arg1[%c0_49, %c66] : memref<6x512xf32, #tpu.memory_space<vmem>>, vector<6x1xf32>
    %c0_50 = arith.constant 0 : index
    %c21_51 = arith.constant 21 : index
    %43 = vector.load %arg3[%c0_50, %c21_51] : memref<6x160xf32, #tpu.memory_space<vmem>>, vector<6x1xf32>
    tpu.vector_store %arg3[%c0_50, %c21_51], %42 {strides = array<i32>} : memref<6x160xf32, #tpu.memory_space<vmem>>, vector<6x1xf32>,
    %c0_52 = arith.constant 0 : index
    %c69 = arith.constant 69 : index
    %44 = vector.load %arg1[%c0_52, %c69] : memref<6x512xf32, #tpu.memory_space<vmem>>, vector<6x1xf32>
    %c0_53 = arith.constant 0 : index
    %c22 = arith.constant 22 : index
    %45 = vector.load %arg3[%c0_53, %c22] : memref<6x160xf32, #tpu.memory_space<vmem>>, vector<6x1xf32>
    tpu.vector_store %arg3[%c0_53, %c22], %44 {strides = array<i32>} : memref<6x160xf32, #tpu.memory_space<vmem>>, vector<6x1xf32>,
    %c0_54 = arith.constant 0 : index
    %c71 = arith.constant 71 : index
    %46 = vector.load %arg1[%c0_54, %c71] : memref<6x512xf32, #tpu.memory_space<vmem>>, vector<6x1xf32>
    %c0_55 = arith.constant 0 : index
    %c23_56 = arith.constant 23 : index
    %47 = vector.load %arg3[%c0_55, %c23_56] : memref<6x160xf32, #tpu.memory_space<vmem>>, vector<6x1xf32>
    tpu.vector_store %arg3[%c0_55, %c23_56], %46 {strides = array<i32>} : memref<6x160xf32, #tpu.memory_space<vmem>>, vector<6x1xf32>,
    %c0_57 = arith.constant 0 : index
    %c73 = arith.constant 73 : index
    %48 = vector.load %arg1[%c0_57, %c73] : memref<6x512xf32, #tpu.memory_space<vmem>>, vector<6x1xf32>
    %c0_58 = arith.constant 0 : index
    %c24 = arith.constant 24 : index
    %49 = vector.load %arg3[%c0_58, %c24] : memref<6x160xf32, #tpu.memory_space<vmem>>, vector<6x1xf32>
    tpu.vector_store %arg3[%c0_58, %c24], %48 {strides = array<i32>} : memref<6x160xf32, #tpu.memory_space<vmem>>, vector<6x1xf32>,
    %c0_59 = arith.constant 0 : index
    %c80 = arith.constant 80 : index
    %50 = vector.load %arg1[%c0_59, %c80] : memref<6x512xf32, #tpu.memory_space<vmem>>, vector<6x1xf32>
    %c0_60 = arith.constant 0 : index
    %c25_61 = arith.constant 25 : index
    %51 = vector.load %arg3[%c0_60, %c25_61] : memref<6x160xf32, #tpu.memory_space<vmem>>, vector<6x1xf32>
    tpu.vector_store %arg3[%c0_60, %c25_61], %50 {strides = array<i32>} : memref<6x160xf32, #tpu.memory_space<vmem>>, vector<6x1xf32>,
    %c0_62 = arith.constant 0 : index
    %c82 = arith.constant 82 : index
    %52 = vector.load %arg1[%c0_62, %c82] : memref<6x512xf32, #tpu.memory_space<vmem>>, vector<6x1xf32>
    %c0_63 = arith.constant 0 : index
    %c26 = arith.constant 26 : index
    %53 = vector.load %arg3[%c0_63, %c26] : memref<6x160xf32, #tpu.memory_space<vmem>>, vector<6x1xf32>
    tpu.vector_store %arg3[%c0_63, %c26], %52 {strides = array<i32>} : memref<6x160xf32, #tpu.memory_space<vmem>>, vector<6x1xf32>,
    %c0_64 = arith.constant 0 : index
    %c85 = arith.constant 85 : index
    %54 = vector.load %arg1[%c0_64, %c85] : memref<6x512xf32, #tpu.memory_space<vmem>>, vector<6x1xf32>
    %c0_65 = arith.constant 0 : index
    %c27 = arith.constant 27 : index
    %55 = vector.load %arg3[%c0_65, %c27] : memref<6x160xf32, #tpu.memory_space<vmem>>, vector<6x1xf32>
    tpu.vector_store %arg3[%c0_65, %c27], %54 {strides = array<i32>} : memref<6x160xf32, #tpu.memory_space<vmem>>, vector<6x1xf32>,
    %c0_66 = arith.constant 0 : index
    %c87 = arith.constant 87 : index
    %56 = vector.load %arg1[%c0_66, %c87] : memref<6x512xf32, #tpu.memory_space<vmem>>, vector<6x1xf32>
    %c0_67 = arith.constant 0 : index
    %c28 = arith.constant 28 : index
    %57 = vector.load %arg3[%c0_67, %c28] : memref<6x160xf32, #tpu.memory_space<vmem>>, vector<6x1xf32>
    tpu.vector_store %arg3[%c0_67, %c28], %56 {strides = array<i32>} : memref<6x160xf32, #tpu.memory_space<vmem>>, vector<6x1xf32>,
    %c0_68 = arith.constant 0 : index
    %c89 = arith.constant 89 : index
    %58 = vector.load %arg1[%c0_68, %c89] : memref<6x512xf32, #tpu.memory_space<vmem>>, vector<6x1xf32>
    %c0_69 = arith.constant 0 : index
    %c29 = arith.constant 29 : index
    %59 = vector.load %arg3[%c0_69, %c29] : memref<6x160xf32, #tpu.memory_space<vmem>>, vector<6x1xf32>
    tpu.vector_store %arg3[%c0_69, %c29], %58 {strides = array<i32>} : memref<6x160xf32, #tpu.memory_space<vmem>>, vector<6x1xf32>,
    %c0_70 = arith.constant 0 : index
    %c96 = arith.constant 96 : index
    %60 = vector.load %arg1[%c0_70, %c96] : memref<6x512xf32, #tpu.memory_space<vmem>>, vector<6x1xf32>
    %c0_71 = arith.constant 0 : index
    %c30 = arith.constant 30 : index
    %61 = vector.load %arg3[%c0_71, %c30] : memref<6x160xf32, #tpu.memory_space<vmem>>, vector<6x1xf32>
    tpu.vector_store %arg3[%c0_71, %c30], %60 {strides = array<i32>} : memref<6x160xf32, #tpu.memory_space<vmem>>, vector<6x1xf32>,
    %c0_72 = arith.constant 0 : index
    %c98 = arith.constant 98 : index
    %62 = vector.load %arg1[%c0_72, %c98] : memref<6x512xf32, #tpu.memory_space<vmem>>, vector<6x1xf32>
    %c0_73 = arith.constant 0 : index
    %c31 = arith.constant 31 : index
    %63 = vector.load %arg3[%c0_73, %c31] : memref<6x160xf32, #tpu.memory_space<vmem>>, vector<6x1xf32>
    tpu.vector_store %arg3[%c0_73, %c31], %62 {strides = array<i32>} : memref<6x160xf32, #tpu.memory_space<vmem>>, vector<6x1xf32>,
    %c0_74 = arith.constant 0 : index
    %c101 = arith.constant 101 : index
    %64 = vector.load %arg1[%c0_74, %c101] : memref<6x512xf32, #tpu.memory_space<vmem>>, vector<6x1xf32>
    %c0_75 = arith.constant 0 : index
    %c32_76 = arith.constant 32 : index
    %65 = vector.load %arg3[%c0_75, %c32_76] : memref<6x160xf32, #tpu.memory_space<vmem>>, vector<6x1xf32>
    tpu.vector_store %arg3[%c0_75, %c32_76], %64 {strides = array<i32>} : memref<6x160xf32, #tpu.memory_space<vmem>>, vector<6x1xf32>,
    %c0_77 = arith.constant 0 : index
    %c103 = arith.constant 103 : index
    %66 = vector.load %arg1[%c0_77, %c103] : memref<6x512xf32, #tpu.memory_space<vmem>>, vector<6x1xf32>
    %c0_78 = arith.constant 0 : index
    %c33 = arith.constant 33 : index
    %67 = vector.load %arg3[%c0_78, %c33] : memref<6x160xf32, #tpu.memory_space<vmem>>, vector<6x1xf32>
    tpu.vector_store %arg3[%c0_78, %c33], %66 {strides = array<i32>} : memref<6x160xf32, #tpu.memory_space<vmem>>, vector<6x1xf32>,
    %c0_79 = arith.constant 0 : index
    %c105 = arith.constant 105 : index
    %68 = vector.load %arg1[%c0_79, %c105] : memref<6x512xf32, #tpu.memory_space<vmem>>, vector<6x1xf32>
    %c0_80 = arith.constant 0 : index
    %c34_81 = arith.constant 34 : index
    %69 = vector.load %arg3[%c0_80, %c34_81] : memref<6x160xf32, #tpu.memory_space<vmem>>, vector<6x1xf32>
    tpu.vector_store %arg3[%c0_80, %c34_81], %68 {strides = array<i32>} : memref<6x160xf32, #tpu.memory_space<vmem>>, vector<6x1xf32>,
    %c0_82 = arith.constant 0 : index
    %c112 = arith.constant 112 : index
    %70 = vector.load %arg1[%c0_82, %c112] : memref<6x512xf32, #tpu.memory_space<vmem>>, vector<6x1xf32>
    %c0_83 = arith.constant 0 : index
    %c35 = arith.constant 35 : index
    %71 = vector.load %arg3[%c0_83, %c35] : memref<6x160xf32, #tpu.memory_space<vmem>>, vector<6x1xf32>
    tpu.vector_store %arg3[%c0_83, %c35], %70 {strides = array<i32>} : memref<6x160xf32, #tpu.memory_space<vmem>>, vector<6x1xf32>,
    %c0_84 = arith.constant 0 : index
    %c114 = arith.constant 114 : index
    %72 = vector.load %arg1[%c0_84, %c114] : memref<6x512xf32, #tpu.memory_space<vmem>>, vector<6x1xf32>
    %c0_85 = arith.constant 0 : index
    %c36 = arith.constant 36 : index
    %73 = vector.load %arg3[%c0_85, %c36] : memref<6x160xf32, #tpu.memory_space<vmem>>, vector<6x1xf32>
    tpu.vector_store %arg3[%c0_85, %c36], %72 {strides = array<i32>} : memref<6x160xf32, #tpu.memory_space<vmem>>, vector<6x1xf32>,
    %c0_86 = arith.constant 0 : index
    %c117 = arith.constant 117 : index
    %74 = vector.load %arg1[%c0_86, %c117] : memref<6x512xf32, #tpu.memory_space<vmem>>, vector<6x1xf32>
    %c0_87 = arith.constant 0 : index
    %c37_88 = arith.constant 37 : index
    %75 = vector.load %arg3[%c0_87, %c37_88] : memref<6x160xf32, #tpu.memory_space<vmem>>, vector<6x1xf32>
    tpu.vector_store %arg3[%c0_87, %c37_88], %74 {strides = array<i32>} : memref<6x160xf32, #tpu.memory_space<vmem>>, vector<6x1xf32>,
    %c0_89 = arith.constant 0 : index
    %c119 = arith.constant 119 : index
    %76 = vector.load %arg1[%c0_89, %c119] : memref<6x512xf32, #tpu.memory_space<vmem>>, vector<6x1xf32>
    %c0_90 = arith.constant 0 : index
    %c38 = arith.constant 38 : index
    %77 = vector.load %arg3[%c0_90, %c38] : memref<6x160xf32, #tpu.memory_space<vmem>>, vector<6x1xf32>
    tpu.vector_store %arg3[%c0_90, %c38], %76 {strides = array<i32>} : memref<6x160xf32, #tpu.memory_space<vmem>>, vector<6x1xf32>,
    %c0_91 = arith.constant 0 : index
    %c121 = arith.constant 121 : index
    %78 = vector.load %arg1[%c0_91, %c121] : memref<6x512xf32, #tpu.memory_space<vmem>>, vector<6x1xf32>
    %c0_92 = arith.constant 0 : index
    %c39_93 = arith.constant 39 : index
    %79 = vector.load %arg3[%c0_92, %c39_93] : memref<6x160xf32, #tpu.memory_space<vmem>>, vector<6x1xf32>
    tpu.vector_store %arg3[%c0_92, %c39_93], %78 {strides = array<i32>} : memref<6x160xf32, #tpu.memory_space<vmem>>, vector<6x1xf32>,
    %c0_94 = arith.constant 0 : index
    %c128 = arith.constant 128 : index
    %80 = vector.load %arg1[%c0_94, %c128] : memref<6x512xf32, #tpu.memory_space<vmem>>, vector<6x1xf32>
    %c0_95 = arith.constant 0 : index
    %c40 = arith.constant 40 : index
    %81 = vector.load %arg3[%c0_95, %c40] : memref<6x160xf32, #tpu.memory_space<vmem>>, vector<6x1xf32>
    tpu.vector_store %arg3[%c0_95, %c40], %80 {strides = array<i32>} : memref<6x160xf32, #tpu.memory_space<vmem>>, vector<6x1xf32>,
    %c0_96 = arith.constant 0 : index
    %c130 = arith.constant 130 : index
    %82 = vector.load %arg1[%c0_96, %c130] : memref<6x512xf32, #tpu.memory_space<vmem>>, vector<6x1xf32>
    %c0_97 = arith.constant 0 : index
    %c41_98 = arith.constant 41 : index
    %83 = vector.load %arg3[%c0_97, %c41_98] : memref<6x160xf32, #tpu.memory_space<vmem>>, vector<6x1xf32>
    tpu.vector_store %arg3[%c0_97, %c41_98], %82 {strides = array<i32>} : memref<6x160xf32, #tpu.memory_space<vmem>>, vector<6x1xf32>,
    %c0_99 = arith.constant 0 : index
    %c133 = arith.constant 133 : index
    %84 = vector.load %arg1[%c0_99, %c133] : memref<6x512xf32, #tpu.memory_space<vmem>>, vector<6x1xf32>
    %c0_100 = arith.constant 0 : index
    %c42 = arith.constant 42 : index
    %85 = vector.load %arg3[%c0_100, %c42] : memref<6x160xf32, #tpu.memory_space<vmem>>, vector<6x1xf32>
    tpu.vector_store %arg3[%c0_100, %c42], %84 {strides = array<i32>} : memref<6x160xf32, #tpu.memory_space<vmem>>, vector<6x1xf32>,
    %c0_101 = arith.constant 0 : index
    %c135 = arith.constant 135 : index
    %86 = vector.load %arg1[%c0_101, %c135] : memref<6x512xf32, #tpu.memory_space<vmem>>, vector<6x1xf32>
    %c0_102 = arith.constant 0 : index
    %c43 = arith.constant 43 : index
    %87 = vector.load %arg3[%c0_102, %c43] : memref<6x160xf32, #tpu.memory_space<vmem>>, vector<6x1xf32>
    tpu.vector_store %arg3[%c0_102, %c43], %86 {strides = array<i32>} : memref<6x160xf32, #tpu.memory_space<vmem>>, vector<6x1xf32>,
    %c0_103 = arith.constant 0 : index
    %c137 = arith.constant 137 : index
    %88 = vector.load %arg1[%c0_103, %c137] : memref<6x512xf32, #tpu.memory_space<vmem>>, vector<6x1xf32>
    %c0_104 = arith.constant 0 : index
    %c44 = arith.constant 44 : index
    %89 = vector.load %arg3[%c0_104, %c44] : memref<6x160xf32, #tpu.memory_space<vmem>>, vector<6x1xf32>
    tpu.vector_store %arg3[%c0_104, %c44], %88 {strides = array<i32>} : memref<6x160xf32, #tpu.memory_space<vmem>>, vector<6x1xf32>,
    %c0_105 = arith.constant 0 : index
    %c144 = arith.constant 144 : index
    %90 = vector.load %arg1[%c0_105, %c144] : memref<6x512xf32, #tpu.memory_space<vmem>>, vector<6x1xf32>
    %c0_106 = arith.constant 0 : index
    %c45 = arith.constant 45 : index
    %91 = vector.load %arg3[%c0_106, %c45] : memref<6x160xf32, #tpu.memory_space<vmem>>, vector<6x1xf32>
    tpu.vector_store %arg3[%c0_106, %c45], %90 {strides = array<i32>} : memref<6x160xf32, #tpu.memory_space<vmem>>, vector<6x1xf32>,
    %c0_107 = arith.constant 0 : index
    %c146 = arith.constant 146 : index
    %92 = vector.load %arg1[%c0_107, %c146] : memref<6x512xf32, #tpu.memory_space<vmem>>, vector<6x1xf32>
    %c0_108 = arith.constant 0 : index
    %c46 = arith.constant 46 : index
    %93 = vector.load %arg3[%c0_108, %c46] : memref<6x160xf32, #tpu.memory_space<vmem>>, vector<6x1xf32>
    tpu.vector_store %arg3[%c0_108, %c46], %92 {strides = array<i32>} : memref<6x160xf32, #tpu.memory_space<vmem>>, vector<6x1xf32>,
    %c0_109 = arith.constant 0 : index
    %c149 = arith.constant 149 : index
    %94 = vector.load %arg1[%c0_109, %c149] : memref<6x512xf32, #tpu.memory_space<vmem>>, vector<6x1xf32>
    %c0_110 = arith.constant 0 : index
    %c47 = arith.constant 47 : index
    %95 = vector.load %arg3[%c0_110, %c47] : memref<6x160xf32, #tpu.memory_space<vmem>>, vector<6x1xf32>
    tpu.vector_store %arg3[%c0_110, %c47], %94 {strides = array<i32>} : memref<6x160xf32, #tpu.memory_space<vmem>>, vector<6x1xf32>,
    %c0_111 = arith.constant 0 : index
    %c151 = arith.constant 151 : index
    %96 = vector.load %arg1[%c0_111, %c151] : memref<6x512xf32, #tpu.memory_space<vmem>>, vector<6x1xf32>
    %c0_112 = arith.constant 0 : index
    %c48_113 = arith.constant 48 : index
    %97 = vector.load %arg3[%c0_112, %c48_113] : memref<6x160xf32, #tpu.memory_space<vmem>>, vector<6x1xf32>
    tpu.vector_store %arg3[%c0_112, %c48_113], %96 {strides = array<i32>} : memref<6x160xf32, #tpu.memory_space<vmem>>, vector<6x1xf32>,
    %c0_114 = arith.constant 0 : index
    %c153 = arith.constant 153 : index
    %98 = vector.load %arg1[%c0_114, %c153] : memref<6x512xf32, #tpu.memory_space<vmem>>, vector<6x1xf32>
    %c0_115 = arith.constant 0 : index
    %c49 = arith.constant 49 : index
    %99 = vector.load %arg3[%c0_115, %c49] : memref<6x160xf32, #tpu.memory_space<vmem>>, vector<6x1xf32>
    tpu.vector_store %arg3[%c0_115, %c49], %98 {strides = array<i32>} : memref<6x160xf32, #tpu.memory_space<vmem>>, vector<6x1xf32>,
    %c0_116 = arith.constant 0 : index
    %c160 = arith.constant 160 : index
    %100 = vector.load %arg1[%c0_116, %c160] : memref<6x512xf32, #tpu.memory_space<vmem>>, vector<6x1xf32>
    %c0_117 = arith.constant 0 : index
    %c50_118 = arith.constant 50 : index
    %101 = vector.load %arg3[%c0_117, %c50_118] : memref<6x160xf32, #tpu.memory_space<vmem>>, vector<6x1xf32>
    tpu.vector_store %arg3[%c0_117, %c50_118], %100 {strides = array<i32>} : memref<6x160xf32, #tpu.memory_space<vmem>>, vector<6x1xf32>,
    %c0_119 = arith.constant 0 : index
    %c162 = arith.constant 162 : index
    %102 = vector.load %arg1[%c0_119, %c162] : memref<6x512xf32, #tpu.memory_space<vmem>>, vector<6x1xf32>
    %c0_120 = arith.constant 0 : index
    %c51 = arith.constant 51 : index
    %103 = vector.load %arg3[%c0_120, %c51] : memref<6x160xf32, #tpu.memory_space<vmem>>, vector<6x1xf32>
    tpu.vector_store %arg3[%c0_120, %c51], %102 {strides = array<i32>} : memref<6x160xf32, #tpu.memory_space<vmem>>, vector<6x1xf32>,
    %c0_121 = arith.constant 0 : index
    %c165 = arith.constant 165 : index
    %104 = vector.load %arg1[%c0_121, %c165] : memref<6x512xf32, #tpu.memory_space<vmem>>, vector<6x1xf32>
    %c0_122 = arith.constant 0 : index
    %c52 = arith.constant 52 : index
    %105 = vector.load %arg3[%c0_122, %c52] : memref<6x160xf32, #tpu.memory_space<vmem>>, vector<6x1xf32>
    tpu.vector_store %arg3[%c0_122, %c52], %104 {strides = array<i32>} : memref<6x160xf32, #tpu.memory_space<vmem>>, vector<6x1xf32>,
    %c0_123 = arith.constant 0 : index
    %c167 = arith.constant 167 : index
    %106 = vector.load %arg1[%c0_123, %c167] : memref<6x512xf32, #tpu.memory_space<vmem>>, vector<6x1xf32>
    %c0_124 = arith.constant 0 : index
    %c53_125 = arith.constant 53 : index
    %107 = vector.load %arg3[%c0_124, %c53_125] : memref<6x160xf32, #tpu.memory_space<vmem>>, vector<6x1xf32>
    tpu.vector_store %arg3[%c0_124, %c53_125], %106 {strides = array<i32>} : memref<6x160xf32, #tpu.memory_space<vmem>>, vector<6x1xf32>,
    %c0_126 = arith.constant 0 : index
    %c169 = arith.constant 169 : index
    %108 = vector.load %arg1[%c0_126, %c169] : memref<6x512xf32, #tpu.memory_space<vmem>>, vector<6x1xf32>
    %c0_127 = arith.constant 0 : index
    %c54 = arith.constant 54 : index
    %109 = vector.load %arg3[%c0_127, %c54] : memref<6x160xf32, #tpu.memory_space<vmem>>, vector<6x1xf32>
    tpu.vector_store %arg3[%c0_127, %c54], %108 {strides = array<i32>} : memref<6x160xf32, #tpu.memory_space<vmem>>, vector<6x1xf32>,
    %c0_128 = arith.constant 0 : index
    %c176 = arith.constant 176 : index
    %110 = vector.load %arg1[%c0_128, %c176] : memref<6x512xf32, #tpu.memory_space<vmem>>, vector<6x1xf32>
    %c0_129 = arith.constant 0 : index
    %c55_130 = arith.constant 55 : index
    %111 = vector.load %arg3[%c0_129, %c55_130] : memref<6x160xf32, #tpu.memory_space<vmem>>, vector<6x1xf32>
    tpu.vector_store %arg3[%c0_129, %c55_130], %110 {strides = array<i32>} : memref<6x160xf32, #tpu.memory_space<vmem>>, vector<6x1xf32>,
    %c0_131 = arith.constant 0 : index
    %c178 = arith.constant 178 : index
    %112 = vector.load %arg1[%c0_131, %c178] : memref<6x512xf32, #tpu.memory_space<vmem>>, vector<6x1xf32>
    %c0_132 = arith.constant 0 : index
    %c56 = arith.constant 56 : index
    %113 = vector.load %arg3[%c0_132, %c56] : memref<6x160xf32, #tpu.memory_space<vmem>>, vector<6x1xf32>
    tpu.vector_store %arg3[%c0_132, %c56], %112 {strides = array<i32>} : memref<6x160xf32, #tpu.memory_space<vmem>>, vector<6x1xf32>,
    %c0_133 = arith.constant 0 : index
    %c181 = arith.constant 181 : index
    %114 = vector.load %arg1[%c0_133, %c181] : memref<6x512xf32, #tpu.memory_space<vmem>>, vector<6x1xf32>
    %c0_134 = arith.constant 0 : index
    %c57_135 = arith.constant 57 : index
    %115 = vector.load %arg3[%c0_134, %c57_135] : memref<6x160xf32, #tpu.memory_space<vmem>>, vector<6x1xf32>
    tpu.vector_store %arg3[%c0_134, %c57_135], %114 {strides = array<i32>} : memref<6x160xf32, #tpu.memory_space<vmem>>, vector<6x1xf32>,
    %c0_136 = arith.constant 0 : index
    %c183 = arith.constant 183 : index
    %116 = vector.load %arg1[%c0_136, %c183] : memref<6x512xf32, #tpu.memory_space<vmem>>, vector<6x1xf32>
    %c0_137 = arith.constant 0 : index
    %c58 = arith.constant 58 : index
    %117 = vector.load %arg3[%c0_137, %c58] : memref<6x160xf32, #tpu.memory_space<vmem>>, vector<6x1xf32>
    tpu.vector_store %arg3[%c0_137, %c58], %116 {strides = array<i32>} : memref<6x160xf32, #tpu.memory_space<vmem>>, vector<6x1xf32>,
    %c0_138 = arith.constant 0 : index
    %c185 = arith.constant 185 : index
    %118 = vector.load %arg1[%c0_138, %c185] : memref<6x512xf32, #tpu.memory_space<vmem>>, vector<6x1xf32>
    %c0_139 = arith.constant 0 : index
    %c59 = arith.constant 59 : index
    %119 = vector.load %arg3[%c0_139, %c59] : memref<6x160xf32, #tpu.memory_space<vmem>>, vector<6x1xf32>
    tpu.vector_store %arg3[%c0_139, %c59], %118 {strides = array<i32>} : memref<6x160xf32, #tpu.memory_space<vmem>>, vector<6x1xf32>,
    %c0_140 = arith.constant 0 : index
    %c192 = arith.constant 192 : index
    %120 = vector.load %arg1[%c0_140, %c192] : memref<6x512xf32, #tpu.memory_space<vmem>>, vector<6x1xf32>
    %c0_141 = arith.constant 0 : index
    %c60 = arith.constant 60 : index
    %121 = vector.load %arg3[%c0_141, %c60] : memref<6x160xf32, #tpu.memory_space<vmem>>, vector<6x1xf32>
    tpu.vector_store %arg3[%c0_141, %c60], %120 {strides = array<i32>} : memref<6x160xf32, #tpu.memory_space<vmem>>, vector<6x1xf32>,
    %c0_142 = arith.constant 0 : index
    %c194 = arith.constant 194 : index
    %122 = vector.load %arg1[%c0_142, %c194] : memref<6x512xf32, #tpu.memory_space<vmem>>, vector<6x1xf32>
    %c0_143 = arith.constant 0 : index
    %c61 = arith.constant 61 : index
    %123 = vector.load %arg3[%c0_143, %c61] : memref<6x160xf32, #tpu.memory_space<vmem>>, vector<6x1xf32>
    tpu.vector_store %arg3[%c0_143, %c61], %122 {strides = array<i32>} : memref<6x160xf32, #tpu.memory_space<vmem>>, vector<6x1xf32>,
    %c0_144 = arith.constant 0 : index
    %c197 = arith.constant 197 : index
    %124 = vector.load %arg1[%c0_144, %c197] : memref<6x512xf32, #tpu.memory_space<vmem>>, vector<6x1xf32>
    %c0_145 = arith.constant 0 : index
    %c62 = arith.constant 62 : index
    %125 = vector.load %arg3[%c0_145, %c62] : memref<6x160xf32, #tpu.memory_space<vmem>>, vector<6x1xf32>
    tpu.vector_store %arg3[%c0_145, %c62], %124 {strides = array<i32>} : memref<6x160xf32, #tpu.memory_space<vmem>>, vector<6x1xf32>,
    %c0_146 = arith.constant 0 : index
    %c199 = arith.constant 199 : index
    %126 = vector.load %arg1[%c0_146, %c199] : memref<6x512xf32, #tpu.memory_space<vmem>>, vector<6x1xf32>
    %c0_147 = arith.constant 0 : index
    %c63 = arith.constant 63 : index
    %127 = vector.load %arg3[%c0_147, %c63] : memref<6x160xf32, #tpu.memory_space<vmem>>, vector<6x1xf32>
    tpu.vector_store %arg3[%c0_147, %c63], %126 {strides = array<i32>} : memref<6x160xf32, #tpu.memory_space<vmem>>, vector<6x1xf32>,
    %c0_148 = arith.constant 0 : index
    %c201 = arith.constant 201 : index
    %128 = vector.load %arg1[%c0_148, %c201] : memref<6x512xf32, #tpu.memory_space<vmem>>, vector<6x1xf32>
    %c0_149 = arith.constant 0 : index
    %c64_150 = arith.constant 64 : index
    %129 = vector.load %arg3[%c0_149, %c64_150] : memref<6x160xf32, #tpu.memory_space<vmem>>, vector<6x1xf32>
    tpu.vector_store %arg3[%c0_149, %c64_150], %128 {strides = array<i32>} : memref<6x160xf32, #tpu.memory_space<vmem>>, vector<6x1xf32>,
    %c0_151 = arith.constant 0 : index
    %c208 = arith.constant 208 : index
    %130 = vector.load %arg1[%c0_151, %c208] : memref<6x512xf32, #tpu.memory_space<vmem>>, vector<6x1xf32>
    %c0_152 = arith.constant 0 : index
    %c65 = arith.constant 65 : index
    %131 = vector.load %arg3[%c0_152, %c65] : memref<6x160xf32, #tpu.memory_space<vmem>>, vector<6x1xf32>
    tpu.vector_store %arg3[%c0_152, %c65], %130 {strides = array<i32>} : memref<6x160xf32, #tpu.memory_space<vmem>>, vector<6x1xf32>,
    %c0_153 = arith.constant 0 : index
    %c210 = arith.constant 210 : index
    %132 = vector.load %arg1[%c0_153, %c210] : memref<6x512xf32, #tpu.memory_space<vmem>>, vector<6x1xf32>
    %c0_154 = arith.constant 0 : index
    %c66_155 = arith.constant 66 : index
    %133 = vector.load %arg3[%c0_154, %c66_155] : memref<6x160xf32, #tpu.memory_space<vmem>>, vector<6x1xf32>
    tpu.vector_store %arg3[%c0_154, %c66_155], %132 {strides = array<i32>} : memref<6x160xf32, #tpu.memory_space<vmem>>, vector<6x1xf32>,
    %c0_156 = arith.constant 0 : index
    %c213 = arith.constant 213 : index
    %134 = vector.load %arg1[%c0_156, %c213] : memref<6x512xf32, #tpu.memory_space<vmem>>, vector<6x1xf32>
    %c0_157 = arith.constant 0 : index
    %c67 = arith.constant 67 : index
    %135 = vector.load %arg3[%c0_157, %c67] : memref<6x160xf32, #tpu.memory_space<vmem>>, vector<6x1xf32>
    tpu.vector_store %arg3[%c0_157, %c67], %134 {strides = array<i32>} : memref<6x160xf32, #tpu.memory_space<vmem>>, vector<6x1xf32>,
    %c0_158 = arith.constant 0 : index
    %c215 = arith.constant 215 : index
    %136 = vector.load %arg1[%c0_158, %c215] : memref<6x512xf32, #tpu.memory_space<vmem>>, vector<6x1xf32>
    %c0_159 = arith.constant 0 : index
    %c68 = arith.constant 68 : index
    %137 = vector.load %arg3[%c0_159, %c68] : memref<6x160xf32, #tpu.memory_space<vmem>>, vector<6x1xf32>
    tpu.vector_store %arg3[%c0_159, %c68], %136 {strides = array<i32>} : memref<6x160xf32, #tpu.memory_space<vmem>>, vector<6x1xf32>,
    %c0_160 = arith.constant 0 : index
    %c217 = arith.constant 217 : index
    %138 = vector.load %arg1[%c0_160, %c217] : memref<6x512xf32, #tpu.memory_space<vmem>>, vector<6x1xf32>
    %c0_161 = arith.constant 0 : index
    %c69_162 = arith.constant 69 : index
    %139 = vector.load %arg3[%c0_161, %c69_162] : memref<6x160xf32, #tpu.memory_space<vmem>>, vector<6x1xf32>
    tpu.vector_store %arg3[%c0_161, %c69_162], %138 {strides = array<i32>} : memref<6x160xf32, #tpu.memory_space<vmem>>, vector<6x1xf32>,
    %c0_163 = arith.constant 0 : index
    %c224 = arith.constant 224 : index
    %140 = vector.load %arg1[%c0_163, %c224] : memref<6x512xf32, #tpu.memory_space<vmem>>, vector<6x1xf32>
    %c0_164 = arith.constant 0 : index
    %c70 = arith.constant 70 : index
    %141 = vector.load %arg3[%c0_164, %c70] : memref<6x160xf32, #tpu.memory_space<vmem>>, vector<6x1xf32>
    tpu.vector_store %arg3[%c0_164, %c70], %140 {strides = array<i32>} : memref<6x160xf32, #tpu.memory_space<vmem>>, vector<6x1xf32>,
    %c0_165 = arith.constant 0 : index
    %c226 = arith.constant 226 : index
    %142 = vector.load %arg1[%c0_165, %c226] : memref<6x512xf32, #tpu.memory_space<vmem>>, vector<6x1xf32>
    %c0_166 = arith.constant 0 : index
    %c71_167 = arith.constant 71 : index
    %143 = vector.load %arg3[%c0_166, %c71_167] : memref<6x160xf32, #tpu.memory_space<vmem>>, vector<6x1xf32>
    tpu.vector_store %arg3[%c0_166, %c71_167], %142 {strides = array<i32>} : memref<6x160xf32, #tpu.memory_space<vmem>>, vector<6x1xf32>,
    %c0_168 = arith.constant 0 : index
    %c229 = arith.constant 229 : index
    %144 = vector.load %arg1[%c0_168, %c229] : memref<6x512xf32, #tpu.memory_space<vmem>>, vector<6x1xf32>
    %c0_169 = arith.constant 0 : index
    %c72 = arith.constant 72 : index
    %145 = vector.load %arg3[%c0_169, %c72] : memref<6x160xf32, #tpu.memory_space<vmem>>, vector<6x1xf32>
    tpu.vector_store %arg3[%c0_169, %c72], %144 {strides = array<i32>} : memref<6x160xf32, #tpu.memory_space<vmem>>, vector<6x1xf32>,
    %c0_170 = arith.constant 0 : index
    %c231 = arith.constant 231 : index
    %146 = vector.load %arg1[%c0_170, %c231] : memref<6x512xf32, #tpu.memory_space<vmem>>, vector<6x1xf32>
    %c0_171 = arith.constant 0 : index
    %c73_172 = arith.constant 73 : index
    %147 = vector.load %arg3[%c0_171, %c73_172] : memref<6x160xf32, #tpu.memory_space<vmem>>, vector<6x1xf32>
    tpu.vector_store %arg3[%c0_171, %c73_172], %146 {strides = array<i32>} : memref<6x160xf32, #tpu.memory_space<vmem>>, vector<6x1xf32>,
    %c0_173 = arith.constant 0 : index
    %c233 = arith.constant 233 : index
    %148 = vector.load %arg1[%c0_173, %c233] : memref<6x512xf32, #tpu.memory_space<vmem>>, vector<6x1xf32>
    %c0_174 = arith.constant 0 : index
    %c74 = arith.constant 74 : index
    %149 = vector.load %arg3[%c0_174, %c74] : memref<6x160xf32, #tpu.memory_space<vmem>>, vector<6x1xf32>
    tpu.vector_store %arg3[%c0_174, %c74], %148 {strides = array<i32>} : memref<6x160xf32, #tpu.memory_space<vmem>>, vector<6x1xf32>,
    %c0_175 = arith.constant 0 : index
    %c240 = arith.constant 240 : index
    %150 = vector.load %arg1[%c0_175, %c240] : memref<6x512xf32, #tpu.memory_space<vmem>>, vector<6x1xf32>
    %c0_176 = arith.constant 0 : index
    %c75 = arith.constant 75 : index
    %151 = vector.load %arg3[%c0_176, %c75] : memref<6x160xf32, #tpu.memory_space<vmem>>, vector<6x1xf32>
    tpu.vector_store %arg3[%c0_176, %c75], %150 {strides = array<i32>} : memref<6x160xf32, #tpu.memory_space<vmem>>, vector<6x1xf32>,
    %c0_177 = arith.constant 0 : index
    %c242 = arith.constant 242 : index
    %152 = vector.load %arg1[%c0_177, %c242] : memref<6x512xf32, #tpu.memory_space<vmem>>, vector<6x1xf32>
    %c0_178 = arith.constant 0 : index
    %c76 = arith.constant 76 : index
    %153 = vector.load %arg3[%c0_178, %c76] : memref<6x160xf32, #tpu.memory_space<vmem>>, vector<6x1xf32>
    tpu.vector_store %arg3[%c0_178, %c76], %152 {strides = array<i32>} : memref<6x160xf32, #tpu.memory_space<vmem>>, vector<6x1xf32>,
    %c0_179 = arith.constant 0 : index
    %c245 = arith.constant 245 : index
    %154 = vector.load %arg1[%c0_179, %c245] : memref<6x512xf32, #tpu.memory_space<vmem>>, vector<6x1xf32>
    %c0_180 = arith.constant 0 : index
    %c77 = arith.constant 77 : index
    %155 = vector.load %arg3[%c0_180, %c77] : memref<6x160xf32, #tpu.memory_space<vmem>>, vector<6x1xf32>
    tpu.vector_store %arg3[%c0_180, %c77], %154 {strides = array<i32>} : memref<6x160xf32, #tpu.memory_space<vmem>>, vector<6x1xf32>,
    %c0_181 = arith.constant 0 : index
    %c247 = arith.constant 247 : index
    %156 = vector.load %arg1[%c0_181, %c247] : memref<6x512xf32, #tpu.memory_space<vmem>>, vector<6x1xf32>
    %c0_182 = arith.constant 0 : index
    %c78 = arith.constant 78 : index
    %157 = vector.load %arg3[%c0_182, %c78] : memref<6x160xf32, #tpu.memory_space<vmem>>, vector<6x1xf32>
    tpu.vector_store %arg3[%c0_182, %c78], %156 {strides = array<i32>} : memref<6x160xf32, #tpu.memory_space<vmem>>, vector<6x1xf32>,
    %c0_183 = arith.constant 0 : index
    %c249 = arith.constant 249 : index
    %158 = vector.load %arg1[%c0_183, %c249] : memref<6x512xf32, #tpu.memory_space<vmem>>, vector<6x1xf32>
    %c0_184 = arith.constant 0 : index
    %c79 = arith.constant 79 : index
    %159 = vector.load %arg3[%c0_184, %c79] : memref<6x160xf32, #tpu.memory_space<vmem>>, vector<6x1xf32>
    tpu.vector_store %arg3[%c0_184, %c79], %158 {strides = array<i32>} : memref<6x160xf32, #tpu.memory_space<vmem>>, vector<6x1xf32>,
    %c0_185 = arith.constant 0 : index
    %c256 = arith.constant 256 : index
    %160 = vector.load %arg1[%c0_185, %c256] : memref<6x512xf32, #tpu.memory_space<vmem>>, vector<6x1xf32>
    %c0_186 = arith.constant 0 : index
    %c80_187 = arith.constant 80 : index
    %161 = vector.load %arg3[%c0_186, %c80_187] : memref<6x160xf32, #tpu.memory_space<vmem>>, vector<6x1xf32>
    tpu.vector_store %arg3[%c0_186, %c80_187], %160 {strides = array<i32>} : memref<6x160xf32, #tpu.memory_space<vmem>>, vector<6x1xf32>,
    %c0_188 = arith.constant 0 : index
    %c258 = arith.constant 258 : index
    %162 = vector.load %arg1[%c0_188, %c258] : memref<6x512xf32, #tpu.memory_space<vmem>>, vector<6x1xf32>
    %c0_189 = arith.constant 0 : index
    %c81 = arith.constant 81 : index
    %163 = vector.load %arg3[%c0_189, %c81] : memref<6x160xf32, #tpu.memory_space<vmem>>, vector<6x1xf32>
    tpu.vector_store %arg3[%c0_189, %c81], %162 {strides = array<i32>} : memref<6x160xf32, #tpu.memory_space<vmem>>, vector<6x1xf32>,
    %c0_190 = arith.constant 0 : index
    %c261 = arith.constant 261 : index
    %164 = vector.load %arg1[%c0_190, %c261] : memref<6x512xf32, #tpu.memory_space<vmem>>, vector<6x1xf32>
    %c0_191 = arith.constant 0 : index
    %c82_192 = arith.constant 82 : index
    %165 = vector.load %arg3[%c0_191, %c82_192] : memref<6x160xf32, #tpu.memory_space<vmem>>, vector<6x1xf32>
    tpu.vector_store %arg3[%c0_191, %c82_192], %164 {strides = array<i32>} : memref<6x160xf32, #tpu.memory_space<vmem>>, vector<6x1xf32>,
    %c0_193 = arith.constant 0 : index
    %c263 = arith.constant 263 : index
    %166 = vector.load %arg1[%c0_193, %c263] : memref<6x512xf32, #tpu.memory_space<vmem>>, vector<6x1xf32>
    %c0_194 = arith.constant 0 : index
    %c83 = arith.constant 83 : index
    %167 = vector.load %arg3[%c0_194, %c83] : memref<6x160xf32, #tpu.memory_space<vmem>>, vector<6x1xf32>
    tpu.vector_store %arg3[%c0_194, %c83], %166 {strides = array<i32>} : memref<6x160xf32, #tpu.memory_space<vmem>>, vector<6x1xf32>,
    %c0_195 = arith.constant 0 : index
    %c265 = arith.constant 265 : index
    %168 = vector.load %arg1[%c0_195, %c265] : memref<6x512xf32, #tpu.memory_space<vmem>>, vector<6x1xf32>
    %c0_196 = arith.constant 0 : index
    %c84 = arith.constant 84 : index
    %169 = vector.load %arg3[%c0_196, %c84] : memref<6x160xf32, #tpu.memory_space<vmem>>, vector<6x1xf32>
    tpu.vector_store %arg3[%c0_196, %c84], %168 {strides = array<i32>} : memref<6x160xf32, #tpu.memory_space<vmem>>, vector<6x1xf32>,
    %c0_197 = arith.constant 0 : index
    %c272 = arith.constant 272 : index
    %170 = vector.load %arg1[%c0_197, %c272] : memref<6x512xf32, #tpu.memory_space<vmem>>, vector<6x1xf32>
    %c0_198 = arith.constant 0 : index
    %c85_199 = arith.constant 85 : index
    %171 = vector.load %arg3[%c0_198, %c85_199] : memref<6x160xf32, #tpu.memory_space<vmem>>, vector<6x1xf32>
    tpu.vector_store %arg3[%c0_198, %c85_199], %170 {strides = array<i32>} : memref<6x160xf32, #tpu.memory_space<vmem>>, vector<6x1xf32>,
    %c0_200 = arith.constant 0 : index
    %c274 = arith.constant 274 : index
    %172 = vector.load %arg1[%c0_200, %c274] : memref<6x512xf32, #tpu.memory_space<vmem>>, vector<6x1xf32>
    %c0_201 = arith.constant 0 : index
    %c86 = arith.constant 86 : index
    %173 = vector.load %arg3[%c0_201, %c86] : memref<6x160xf32, #tpu.memory_space<vmem>>, vector<6x1xf32>
    tpu.vector_store %arg3[%c0_201, %c86], %172 {strides = array<i32>} : memref<6x160xf32, #tpu.memory_space<vmem>>, vector<6x1xf32>,
    %c0_202 = arith.constant 0 : index
    %c277 = arith.constant 277 : index
    %174 = vector.load %arg1[%c0_202, %c277] : memref<6x512xf32, #tpu.memory_space<vmem>>, vector<6x1xf32>
    %c0_203 = arith.constant 0 : index
    %c87_204 = arith.constant 87 : index
    %175 = vector.load %arg3[%c0_203, %c87_204] : memref<6x160xf32, #tpu.memory_space<vmem>>, vector<6x1xf32>
    tpu.vector_store %arg3[%c0_203, %c87_204], %174 {strides = array<i32>} : memref<6x160xf32, #tpu.memory_space<vmem>>, vector<6x1xf32>,
    %c0_205 = arith.constant 0 : index
    %c279 = arith.constant 279 : index
    %176 = vector.load %arg1[%c0_205, %c279] : memref<6x512xf32, #tpu.memory_space<vmem>>, vector<6x1xf32>
    %c0_206 = arith.constant 0 : index
    %c88 = arith.constant 88 : index
    %177 = vector.load %arg3[%c0_206, %c88] : memref<6x160xf32, #tpu.memory_space<vmem>>, vector<6x1xf32>
    tpu.vector_store %arg3[%c0_206, %c88], %176 {strides = array<i32>} : memref<6x160xf32, #tpu.memory_space<vmem>>, vector<6x1xf32>,
    %c0_207 = arith.constant 0 : index
    %c281 = arith.constant 281 : index
    %178 = vector.load %arg1[%c0_207, %c281] : memref<6x512xf32, #tpu.memory_space<vmem>>, vector<6x1xf32>
    %c0_208 = arith.constant 0 : index
    %c89_209 = arith.constant 89 : index
    %179 = vector.load %arg3[%c0_208, %c89_209] : memref<6x160xf32, #tpu.memory_space<vmem>>, vector<6x1xf32>
    tpu.vector_store %arg3[%c0_208, %c89_209], %178 {strides = array<i32>} : memref<6x160xf32, #tpu.memory_space<vmem>>, vector<6x1xf32>,
    %c0_210 = arith.constant 0 : index
    %c288 = arith.constant 288 : index
    %180 = vector.load %arg1[%c0_210, %c288] : memref<6x512xf32, #tpu.memory_space<vmem>>, vector<6x1xf32>
    %c0_211 = arith.constant 0 : index
    %c90 = arith.constant 90 : index
    %181 = vector.load %arg3[%c0_211, %c90] : memref<6x160xf32, #tpu.memory_space<vmem>>, vector<6x1xf32>
    tpu.vector_store %arg3[%c0_211, %c90], %180 {strides = array<i32>} : memref<6x160xf32, #tpu.memory_space<vmem>>, vector<6x1xf32>,
    %c0_212 = arith.constant 0 : index
    %c290 = arith.constant 290 : index
    %182 = vector.load %arg1[%c0_212, %c290] : memref<6x512xf32, #tpu.memory_space<vmem>>, vector<6x1xf32>
    %c0_213 = arith.constant 0 : index
    %c91 = arith.constant 91 : index
    %183 = vector.load %arg3[%c0_213, %c91] : memref<6x160xf32, #tpu.memory_space<vmem>>, vector<6x1xf32>
    tpu.vector_store %arg3[%c0_213, %c91], %182 {strides = array<i32>} : memref<6x160xf32, #tpu.memory_space<vmem>>, vector<6x1xf32>,
    %c0_214 = arith.constant 0 : index
    %c293 = arith.constant 293 : index
    %184 = vector.load %arg1[%c0_214, %c293] : memref<6x512xf32, #tpu.memory_space<vmem>>, vector<6x1xf32>
    %c0_215 = arith.constant 0 : index
    %c92 = arith.constant 92 : index
    %185 = vector.load %arg3[%c0_215, %c92] : memref<6x160xf32, #tpu.memory_space<vmem>>, vector<6x1xf32>
    tpu.vector_store %arg3[%c0_215, %c92], %184 {strides = array<i32>} : memref<6x160xf32, #tpu.memory_space<vmem>>, vector<6x1xf32>,
    %c0_216 = arith.constant 0 : index
    %c295 = arith.constant 295 : index
    %186 = vector.load %arg1[%c0_216, %c295] : memref<6x512xf32, #tpu.memory_space<vmem>>, vector<6x1xf32>
    %c0_217 = arith.constant 0 : index
    %c93 = arith.constant 93 : index
    %187 = vector.load %arg3[%c0_217, %c93] : memref<6x160xf32, #tpu.memory_space<vmem>>, vector<6x1xf32>
    tpu.vector_store %arg3[%c0_217, %c93], %186 {strides = array<i32>} : memref<6x160xf32, #tpu.memory_space<vmem>>, vector<6x1xf32>,
    %c0_218 = arith.constant 0 : index
    %c297 = arith.constant 297 : index
    %188 = vector.load %arg1[%c0_218, %c297] : memref<6x512xf32, #tpu.memory_space<vmem>>, vector<6x1xf32>
    %c0_219 = arith.constant 0 : index
    %c94 = arith.constant 94 : index
    %189 = vector.load %arg3[%c0_219, %c94] : memref<6x160xf32, #tpu.memory_space<vmem>>, vector<6x1xf32>
    tpu.vector_store %arg3[%c0_219, %c94], %188 {strides = array<i32>} : memref<6x160xf32, #tpu.memory_space<vmem>>, vector<6x1xf32>,
    %c0_220 = arith.constant 0 : index
    %c304 = arith.constant 304 : index
    %190 = vector.load %arg1[%c0_220, %c304] : memref<6x512xf32, #tpu.memory_space<vmem>>, vector<6x1xf32>
    %c0_221 = arith.constant 0 : index
    %c95 = arith.constant 95 : index
    %191 = vector.load %arg3[%c0_221, %c95] : memref<6x160xf32, #tpu.memory_space<vmem>>, vector<6x1xf32>
    tpu.vector_store %arg3[%c0_221, %c95], %190 {strides = array<i32>} : memref<6x160xf32, #tpu.memory_space<vmem>>, vector<6x1xf32>,
    %c0_222 = arith.constant 0 : index
    %c306 = arith.constant 306 : index
    %192 = vector.load %arg1[%c0_222, %c306] : memref<6x512xf32, #tpu.memory_space<vmem>>, vector<6x1xf32>
    %c0_223 = arith.constant 0 : index
    %c96_224 = arith.constant 96 : index
    %193 = vector.load %arg3[%c0_223, %c96_224] : memref<6x160xf32, #tpu.memory_space<vmem>>, vector<6x1xf32>
    tpu.vector_store %arg3[%c0_223, %c96_224], %192 {strides = array<i32>} : memref<6x160xf32, #tpu.memory_space<vmem>>, vector<6x1xf32>,
    %c0_225 = arith.constant 0 : index
    %c309 = arith.constant 309 : index
    %194 = vector.load %arg1[%c0_225, %c309] : memref<6x512xf32, #tpu.memory_space<vmem>>, vector<6x1xf32>
    %c0_226 = arith.constant 0 : index
    %c97 = arith.constant 97 : index
    %195 = vector.load %arg3[%c0_226, %c97] : memref<6x160xf32, #tpu.memory_space<vmem>>, vector<6x1xf32>
    tpu.vector_store %arg3[%c0_226, %c97], %194 {strides = array<i32>} : memref<6x160xf32, #tpu.memory_space<vmem>>, vector<6x1xf32>,
    %c0_227 = arith.constant 0 : index
    %c311 = arith.constant 311 : index
    %196 = vector.load %arg1[%c0_227, %c311] : memref<6x512xf32, #tpu.memory_space<vmem>>, vector<6x1xf32>
    %c0_228 = arith.constant 0 : index
    %c98_229 = arith.constant 98 : index
    %197 = vector.load %arg3[%c0_228, %c98_229] : memref<6x160xf32, #tpu.memory_space<vmem>>, vector<6x1xf32>
    tpu.vector_store %arg3[%c0_228, %c98_229], %196 {strides = array<i32>} : memref<6x160xf32, #tpu.memory_space<vmem>>, vector<6x1xf32>,
    %c0_230 = arith.constant 0 : index
    %c313 = arith.constant 313 : index
    %198 = vector.load %arg1[%c0_230, %c313] : memref<6x512xf32, #tpu.memory_space<vmem>>, vector<6x1xf32>
    %c0_231 = arith.constant 0 : index
    %c99 = arith.constant 99 : index
    %199 = vector.load %arg3[%c0_231, %c99] : memref<6x160xf32, #tpu.memory_space<vmem>>, vector<6x1xf32>
    tpu.vector_store %arg3[%c0_231, %c99], %198 {strides = array<i32>} : memref<6x160xf32, #tpu.memory_space<vmem>>, vector<6x1xf32>,
    %c0_232 = arith.constant 0 : index
    %c320 = arith.constant 320 : index
    %200 = vector.load %arg1[%c0_232, %c320] : memref<6x512xf32, #tpu.memory_space<vmem>>, vector<6x1xf32>
    %c0_233 = arith.constant 0 : index
    %c100 = arith.constant 100 : index
    %201 = vector.load %arg3[%c0_233, %c100] : memref<6x160xf32, #tpu.memory_space<vmem>>, vector<6x1xf32>
    tpu.vector_store %arg3[%c0_233, %c100], %200 {strides = array<i32>} : memref<6x160xf32, #tpu.memory_space<vmem>>, vector<6x1xf32>,
    %c0_234 = arith.constant 0 : index
    %c322 = arith.constant 322 : index
    %202 = vector.load %arg1[%c0_234, %c322] : memref<6x512xf32, #tpu.memory_space<vmem>>, vector<6x1xf32>
    %c0_235 = arith.constant 0 : index
    %c101_236 = arith.constant 101 : index
    %203 = vector.load %arg3[%c0_235, %c101_236] : memref<6x160xf32, #tpu.memory_space<vmem>>, vector<6x1xf32>
    tpu.vector_store %arg3[%c0_235, %c101_236], %202 {strides = array<i32>} : memref<6x160xf32, #tpu.memory_space<vmem>>, vector<6x1xf32>,
    %c0_237 = arith.constant 0 : index
    %c325 = arith.constant 325 : index
    %204 = vector.load %arg1[%c0_237, %c325] : memref<6x512xf32, #tpu.memory_space<vmem>>, vector<6x1xf32>
    %c0_238 = arith.constant 0 : index
    %c102 = arith.constant 102 : index
    %205 = vector.load %arg3[%c0_238, %c102] : memref<6x160xf32, #tpu.memory_space<vmem>>, vector<6x1xf32>
    tpu.vector_store %arg3[%c0_238, %c102], %204 {strides = array<i32>} : memref<6x160xf32, #tpu.memory_space<vmem>>, vector<6x1xf32>,
    %c0_239 = arith.constant 0 : index
    %c327 = arith.constant 327 : index
    %206 = vector.load %arg1[%c0_239, %c327] : memref<6x512xf32, #tpu.memory_space<vmem>>, vector<6x1xf32>
    %c0_240 = arith.constant 0 : index
    %c103_241 = arith.constant 103 : index
    %207 = vector.load %arg3[%c0_240, %c103_241] : memref<6x160xf32, #tpu.memory_space<vmem>>, vector<6x1xf32>
    tpu.vector_store %arg3[%c0_240, %c103_241], %206 {strides = array<i32>} : memref<6x160xf32, #tpu.memory_space<vmem>>, vector<6x1xf32>,
    %c0_242 = arith.constant 0 : index
    %c329 = arith.constant 329 : index
    %208 = vector.load %arg1[%c0_242, %c329] : memref<6x512xf32, #tpu.memory_space<vmem>>, vector<6x1xf32>
    %c0_243 = arith.constant 0 : index
    %c104 = arith.constant 104 : index
    %209 = vector.load %arg3[%c0_243, %c104] : memref<6x160xf32, #tpu.memory_space<vmem>>, vector<6x1xf32>
    tpu.vector_store %arg3[%c0_243, %c104], %208 {strides = array<i32>} : memref<6x160xf32, #tpu.memory_space<vmem>>, vector<6x1xf32>,
    %c0_244 = arith.constant 0 : index
    %c336 = arith.constant 336 : index
    %210 = vector.load %arg1[%c0_244, %c336] : memref<6x512xf32, #tpu.memory_space<vmem>>, vector<6x1xf32>
    %c0_245 = arith.constant 0 : index
    %c105_246 = arith.constant 105 : index
    %211 = vector.load %arg3[%c0_245, %c105_246] : memref<6x160xf32, #tpu.memory_space<vmem>>, vector<6x1xf32>
    tpu.vector_store %arg3[%c0_245, %c105_246], %210 {strides = array<i32>} : memref<6x160xf32, #tpu.memory_space<vmem>>, vector<6x1xf32>,
    %c0_247 = arith.constant 0 : index
    %c338 = arith.constant 338 : index
    %212 = vector.load %arg1[%c0_247, %c338] : memref<6x512xf32, #tpu.memory_space<vmem>>, vector<6x1xf32>
    %c0_248 = arith.constant 0 : index
    %c106 = arith.constant 106 : index
    %213 = vector.load %arg3[%c0_248, %c106] : memref<6x160xf32, #tpu.memory_space<vmem>>, vector<6x1xf32>
    tpu.vector_store %arg3[%c0_248, %c106], %212 {strides = array<i32>} : memref<6x160xf32, #tpu.memory_space<vmem>>, vector<6x1xf32>,
    %c0_249 = arith.constant 0 : index
    %c341 = arith.constant 341 : index
    %214 = vector.load %arg1[%c0_249, %c341] : memref<6x512xf32, #tpu.memory_space<vmem>>, vector<6x1xf32>
    %c0_250 = arith.constant 0 : index
    %c107 = arith.constant 107 : index
    %215 = vector.load %arg3[%c0_250, %c107] : memref<6x160xf32, #tpu.memory_space<vmem>>, vector<6x1xf32>
    tpu.vector_store %arg3[%c0_250, %c107], %214 {strides = array<i32>} : memref<6x160xf32, #tpu.memory_space<vmem>>, vector<6x1xf32>,
    %c0_251 = arith.constant 0 : index
    %c343 = arith.constant 343 : index
    %216 = vector.load %arg1[%c0_251, %c343] : memref<6x512xf32, #tpu.memory_space<vmem>>, vector<6x1xf32>
    %c0_252 = arith.constant 0 : index
    %c108 = arith.constant 108 : index
    %217 = vector.load %arg3[%c0_252, %c108] : memref<6x160xf32, #tpu.memory_space<vmem>>, vector<6x1xf32>
    tpu.vector_store %arg3[%c0_252, %c108], %216 {strides = array<i32>} : memref<6x160xf32, #tpu.memory_space<vmem>>, vector<6x1xf32>,
    %c0_253 = arith.constant 0 : index
    %c345 = arith.constant 345 : index
    %218 = vector.load %arg1[%c0_253, %c345] : memref<6x512xf32, #tpu.memory_space<vmem>>, vector<6x1xf32>
    %c0_254 = arith.constant 0 : index
    %c109 = arith.constant 109 : index
    %219 = vector.load %arg3[%c0_254, %c109] : memref<6x160xf32, #tpu.memory_space<vmem>>, vector<6x1xf32>
    tpu.vector_store %arg3[%c0_254, %c109], %218 {strides = array<i32>} : memref<6x160xf32, #tpu.memory_space<vmem>>, vector<6x1xf32>,
    %c0_255 = arith.constant 0 : index
    %c352 = arith.constant 352 : index
    %220 = vector.load %arg1[%c0_255, %c352] : memref<6x512xf32, #tpu.memory_space<vmem>>, vector<6x1xf32>
    %c0_256 = arith.constant 0 : index
    %c110 = arith.constant 110 : index
    %221 = vector.load %arg3[%c0_256, %c110] : memref<6x160xf32, #tpu.memory_space<vmem>>, vector<6x1xf32>
    tpu.vector_store %arg3[%c0_256, %c110], %220 {strides = array<i32>} : memref<6x160xf32, #tpu.memory_space<vmem>>, vector<6x1xf32>,
    %c0_257 = arith.constant 0 : index
    %c354 = arith.constant 354 : index
    %222 = vector.load %arg1[%c0_257, %c354] : memref<6x512xf32, #tpu.memory_space<vmem>>, vector<6x1xf32>
    %c0_258 = arith.constant 0 : index
    %c111 = arith.constant 111 : index
    %223 = vector.load %arg3[%c0_258, %c111] : memref<6x160xf32, #tpu.memory_space<vmem>>, vector<6x1xf32>
    tpu.vector_store %arg3[%c0_258, %c111], %222 {strides = array<i32>} : memref<6x160xf32, #tpu.memory_space<vmem>>, vector<6x1xf32>,
    %c0_259 = arith.constant 0 : index
    %c357 = arith.constant 357 : index
    %224 = vector.load %arg1[%c0_259, %c357] : memref<6x512xf32, #tpu.memory_space<vmem>>, vector<6x1xf32>
    %c0_260 = arith.constant 0 : index
    %c112_261 = arith.constant 112 : index
    %225 = vector.load %arg3[%c0_260, %c112_261] : memref<6x160xf32, #tpu.memory_space<vmem>>, vector<6x1xf32>
    tpu.vector_store %arg3[%c0_260, %c112_261], %224 {strides = array<i32>} : memref<6x160xf32, #tpu.memory_space<vmem>>, vector<6x1xf32>,
    %c0_262 = arith.constant 0 : index
    %c359 = arith.constant 359 : index
    %226 = vector.load %arg1[%c0_262, %c359] : memref<6x512xf32, #tpu.memory_space<vmem>>, vector<6x1xf32>
    %c0_263 = arith.constant 0 : index
    %c113 = arith.constant 113 : index
    %227 = vector.load %arg3[%c0_263, %c113] : memref<6x160xf32, #tpu.memory_space<vmem>>, vector<6x1xf32>
    tpu.vector_store %arg3[%c0_263, %c113], %226 {strides = array<i32>} : memref<6x160xf32, #tpu.memory_space<vmem>>, vector<6x1xf32>,
    %c0_264 = arith.constant 0 : index
    %c361 = arith.constant 361 : index
    %228 = vector.load %arg1[%c0_264, %c361] : memref<6x512xf32, #tpu.memory_space<vmem>>, vector<6x1xf32>
    %c0_265 = arith.constant 0 : index
    %c114_266 = arith.constant 114 : index
    %229 = vector.load %arg3[%c0_265, %c114_266] : memref<6x160xf32, #tpu.memory_space<vmem>>, vector<6x1xf32>
    tpu.vector_store %arg3[%c0_265, %c114_266], %228 {strides = array<i32>} : memref<6x160xf32, #tpu.memory_space<vmem>>, vector<6x1xf32>,
    %c0_267 = arith.constant 0 : index
    %c368 = arith.constant 368 : index
    %230 = vector.load %arg1[%c0_267, %c368] : memref<6x512xf32, #tpu.memory_space<vmem>>, vector<6x1xf32>
    %c0_268 = arith.constant 0 : index
    %c115 = arith.constant 115 : index
    %231 = vector.load %arg3[%c0_268, %c115] : memref<6x160xf32, #tpu.memory_space<vmem>>, vector<6x1xf32>
    tpu.vector_store %arg3[%c0_268, %c115], %230 {strides = array<i32>} : memref<6x160xf32, #tpu.memory_space<vmem>>, vector<6x1xf32>,
    %c0_269 = arith.constant 0 : index
    %c370 = arith.constant 370 : index
    %232 = vector.load %arg1[%c0_269, %c370] : memref<6x512xf32, #tpu.memory_space<vmem>>, vector<6x1xf32>
    %c0_270 = arith.constant 0 : index
    %c116 = arith.constant 116 : index
    %233 = vector.load %arg3[%c0_270, %c116] : memref<6x160xf32, #tpu.memory_space<vmem>>, vector<6x1xf32>
    tpu.vector_store %arg3[%c0_270, %c116], %232 {strides = array<i32>} : memref<6x160xf32, #tpu.memory_space<vmem>>, vector<6x1xf32>,
    %c0_271 = arith.constant 0 : index
    %c373 = arith.constant 373 : index
    %234 = vector.load %arg1[%c0_271, %c373] : memref<6x512xf32, #tpu.memory_space<vmem>>, vector<6x1xf32>
    %c0_272 = arith.constant 0 : index
    %c117_273 = arith.constant 117 : index
    %235 = vector.load %arg3[%c0_272, %c117_273] : memref<6x160xf32, #tpu.memory_space<vmem>>, vector<6x1xf32>
    tpu.vector_store %arg3[%c0_272, %c117_273], %234 {strides = array<i32>} : memref<6x160xf32, #tpu.memory_space<vmem>>, vector<6x1xf32>,
    %c0_274 = arith.constant 0 : index
    %c375 = arith.constant 375 : index
    %236 = vector.load %arg1[%c0_274, %c375] : memref<6x512xf32, #tpu.memory_space<vmem>>, vector<6x1xf32>
    %c0_275 = arith.constant 0 : index
    %c118 = arith.constant 118 : index
    %237 = vector.load %arg3[%c0_275, %c118] : memref<6x160xf32, #tpu.memory_space<vmem>>, vector<6x1xf32>
    tpu.vector_store %arg3[%c0_275, %c118], %236 {strides = array<i32>} : memref<6x160xf32, #tpu.memory_space<vmem>>, vector<6x1xf32>,
    %c0_276 = arith.constant 0 : index
    %c377 = arith.constant 377 : index
    %238 = vector.load %arg1[%c0_276, %c377] : memref<6x512xf32, #tpu.memory_space<vmem>>, vector<6x1xf32>
    %c0_277 = arith.constant 0 : index
    %c119_278 = arith.constant 119 : index
    %239 = vector.load %arg3[%c0_277, %c119_278] : memref<6x160xf32, #tpu.memory_space<vmem>>, vector<6x1xf32>
    tpu.vector_store %arg3[%c0_277, %c119_278], %238 {strides = array<i32>} : memref<6x160xf32, #tpu.memory_space<vmem>>, vector<6x1xf32>,
    %c0_279 = arith.constant 0 : index
    %c384 = arith.constant 384 : index
    %240 = vector.load %arg1[%c0_279, %c384] : memref<6x512xf32, #tpu.memory_space<vmem>>, vector<6x1xf32>
    %c0_280 = arith.constant 0 : index
    %c120 = arith.constant 120 : index
    %241 = vector.load %arg3[%c0_280, %c120] : memref<6x160xf32, #tpu.memory_space<vmem>>, vector<6x1xf32>
    tpu.vector_store %arg3[%c0_280, %c120], %240 {strides = array<i32>} : memref<6x160xf32, #tpu.memory_space<vmem>>, vector<6x1xf32>,
    %c0_281 = arith.constant 0 : index
    %c386 = arith.constant 386 : index
    %242 = vector.load %arg1[%c0_281, %c386] : memref<6x512xf32, #tpu.memory_space<vmem>>, vector<6x1xf32>
    %c0_282 = arith.constant 0 : index
    %c121_283 = arith.constant 121 : index
    %243 = vector.load %arg3[%c0_282, %c121_283] : memref<6x160xf32, #tpu.memory_space<vmem>>, vector<6x1xf32>
    tpu.vector_store %arg3[%c0_282, %c121_283], %242 {strides = array<i32>} : memref<6x160xf32, #tpu.memory_space<vmem>>, vector<6x1xf32>,
    %c0_284 = arith.constant 0 : index
    %c389 = arith.constant 389 : index
    %244 = vector.load %arg1[%c0_284, %c389] : memref<6x512xf32, #tpu.memory_space<vmem>>, vector<6x1xf32>
    %c0_285 = arith.constant 0 : index
    %c122 = arith.constant 122 : index
    %245 = vector.load %arg3[%c0_285, %c122] : memref<6x160xf32, #tpu.memory_space<vmem>>, vector<6x1xf32>
    tpu.vector_store %arg3[%c0_285, %c122], %244 {strides = array<i32>} : memref<6x160xf32, #tpu.memory_space<vmem>>, vector<6x1xf32>,
    %c0_286 = arith.constant 0 : index
    %c391 = arith.constant 391 : index
    %246 = vector.load %arg1[%c0_286, %c391] : memref<6x512xf32, #tpu.memory_space<vmem>>, vector<6x1xf32>
    %c0_287 = arith.constant 0 : index
    %c123 = arith.constant 123 : index
    %247 = vector.load %arg3[%c0_287, %c123] : memref<6x160xf32, #tpu.memory_space<vmem>>, vector<6x1xf32>
    tpu.vector_store %arg3[%c0_287, %c123], %246 {strides = array<i32>} : memref<6x160xf32, #tpu.memory_space<vmem>>, vector<6x1xf32>,
    %c0_288 = arith.constant 0 : index
    %c393 = arith.constant 393 : index
    %248 = vector.load %arg1[%c0_288, %c393] : memref<6x512xf32, #tpu.memory_space<vmem>>, vector<6x1xf32>
    %c0_289 = arith.constant 0 : index
    %c124 = arith.constant 124 : index
    %249 = vector.load %arg3[%c0_289, %c124] : memref<6x160xf32, #tpu.memory_space<vmem>>, vector<6x1xf32>
    tpu.vector_store %arg3[%c0_289, %c124], %248 {strides = array<i32>} : memref<6x160xf32, #tpu.memory_space<vmem>>, vector<6x1xf32>,
    %c0_290 = arith.constant 0 : index
    %c400 = arith.constant 400 : index
    %250 = vector.load %arg1[%c0_290, %c400] : memref<6x512xf32, #tpu.memory_space<vmem>>, vector<6x1xf32>
    %c0_291 = arith.constant 0 : index
    %c125 = arith.constant 125 : index
    %251 = vector.load %arg3[%c0_291, %c125] : memref<6x160xf32, #tpu.memory_space<vmem>>, vector<6x1xf32>
    tpu.vector_store %arg3[%c0_291, %c125], %250 {strides = array<i32>} : memref<6x160xf32, #tpu.memory_space<vmem>>, vector<6x1xf32>,
    %c0_292 = arith.constant 0 : index
    %c402 = arith.constant 402 : index
    %252 = vector.load %arg1[%c0_292, %c402] : memref<6x512xf32, #tpu.memory_space<vmem>>, vector<6x1xf32>
    %c0_293 = arith.constant 0 : index
    %c126 = arith.constant 126 : index
    %253 = vector.load %arg3[%c0_293, %c126] : memref<6x160xf32, #tpu.memory_space<vmem>>, vector<6x1xf32>
    tpu.vector_store %arg3[%c0_293, %c126], %252 {strides = array<i32>} : memref<6x160xf32, #tpu.memory_space<vmem>>, vector<6x1xf32>,
    %c0_294 = arith.constant 0 : index
    %c405 = arith.constant 405 : index
    %254 = vector.load %arg1[%c0_294, %c405] : memref<6x512xf32, #tpu.memory_space<vmem>>, vector<6x1xf32>
    %c0_295 = arith.constant 0 : index
    %c127 = arith.constant 127 : index
    %255 = vector.load %arg3[%c0_295, %c127] : memref<6x160xf32, #tpu.memory_space<vmem>>, vector<6x1xf32>
    tpu.vector_store %arg3[%c0_295, %c127], %254 {strides = array<i32>} : memref<6x160xf32, #tpu.memory_space<vmem>>, vector<6x1xf32>,
    %c0_296 = arith.constant 0 : index
    %c407 = arith.constant 407 : index
    %256 = vector.load %arg1[%c0_296, %c407] : memref<6x512xf32, #tpu.memory_space<vmem>>, vector<6x1xf32>
    %c0_297 = arith.constant 0 : index
    %c128_298 = arith.constant 128 : index
    %257 = vector.load %arg3[%c0_297, %c128_298] : memref<6x160xf32, #tpu.memory_space<vmem>>, vector<6x1xf32>
    tpu.vector_store %arg3[%c0_297, %c128_298], %256 {strides = array<i32>} : memref<6x160xf32, #tpu.memory_space<vmem>>, vector<6x1xf32>,
    %c0_299 = arith.constant 0 : index
    %c409 = arith.constant 409 : index
    %258 = vector.load %arg1[%c0_299, %c409] : memref<6x512xf32, #tpu.memory_space<vmem>>, vector<6x1xf32>
    %c0_300 = arith.constant 0 : index
    %c129 = arith.constant 129 : index
    %259 = vector.load %arg3[%c0_300, %c129] : memref<6x160xf32, #tpu.memory_space<vmem>>, vector<6x1xf32>
    tpu.vector_store %arg3[%c0_300, %c129], %258 {strides = array<i32>} : memref<6x160xf32, #tpu.memory_space<vmem>>, vector<6x1xf32>,
    %c0_301 = arith.constant 0 : index
    %c416 = arith.constant 416 : index
    %260 = vector.load %arg1[%c0_301, %c416] : memref<6x512xf32, #tpu.memory_space<vmem>>, vector<6x1xf32>
    %c0_302 = arith.constant 0 : index
    %c130_303 = arith.constant 130 : index
    %261 = vector.load %arg3[%c0_302, %c130_303] : memref<6x160xf32, #tpu.memory_space<vmem>>, vector<6x1xf32>
    tpu.vector_store %arg3[%c0_302, %c130_303], %260 {strides = array<i32>} : memref<6x160xf32, #tpu.memory_space<vmem>>, vector<6x1xf32>,
    %c0_304 = arith.constant 0 : index
    %c418 = arith.constant 418 : index
    %262 = vector.load %arg1[%c0_304, %c418] : memref<6x512xf32, #tpu.memory_space<vmem>>, vector<6x1xf32>
    %c0_305 = arith.constant 0 : index
    %c131 = arith.constant 131 : index
    %263 = vector.load %arg3[%c0_305, %c131] : memref<6x160xf32, #tpu.memory_space<vmem>>, vector<6x1xf32>
    tpu.vector_store %arg3[%c0_305, %c131], %262 {strides = array<i32>} : memref<6x160xf32, #tpu.memory_space<vmem>>, vector<6x1xf32>,
    %c0_306 = arith.constant 0 : index
    %c421 = arith.constant 421 : index
    %264 = vector.load %arg1[%c0_306, %c421] : memref<6x512xf32, #tpu.memory_space<vmem>>, vector<6x1xf32>
    %c0_307 = arith.constant 0 : index
    %c132 = arith.constant 132 : index
    %265 = vector.load %arg3[%c0_307, %c132] : memref<6x160xf32, #tpu.memory_space<vmem>>, vector<6x1xf32>
    tpu.vector_store %arg3[%c0_307, %c132], %264 {strides = array<i32>} : memref<6x160xf32, #tpu.memory_space<vmem>>, vector<6x1xf32>,
    %c0_308 = arith.constant 0 : index
    %c423 = arith.constant 423 : index
    %266 = vector.load %arg1[%c0_308, %c423] : memref<6x512xf32, #tpu.memory_space<vmem>>, vector<6x1xf32>
    %c0_309 = arith.constant 0 : index
    %c133_310 = arith.constant 133 : index
    %267 = vector.load %arg3[%c0_309, %c133_310] : memref<6x160xf32, #tpu.memory_space<vmem>>, vector<6x1xf32>
    tpu.vector_store %arg3[%c0_309, %c133_310], %266 {strides = array<i32>} : memref<6x160xf32, #tpu.memory_space<vmem>>, vector<6x1xf32>,
    %c0_311 = arith.constant 0 : index
    %c425 = arith.constant 425 : index
    %268 = vector.load %arg1[%c0_311, %c425] : memref<6x512xf32, #tpu.memory_space<vmem>>, vector<6x1xf32>
    %c0_312 = arith.constant 0 : index
    %c134 = arith.constant 134 : index
    %269 = vector.load %arg3[%c0_312, %c134] : memref<6x160xf32, #tpu.memory_space<vmem>>, vector<6x1xf32>
    tpu.vector_store %arg3[%c0_312, %c134], %268 {strides = array<i32>} : memref<6x160xf32, #tpu.memory_space<vmem>>, vector<6x1xf32>,
    %c0_313 = arith.constant 0 : index
    %c432 = arith.constant 432 : index
    %270 = vector.load %arg1[%c0_313, %c432] : memref<6x512xf32, #tpu.memory_space<vmem>>, vector<6x1xf32>
    %c0_314 = arith.constant 0 : index
    %c135_315 = arith.constant 135 : index
    %271 = vector.load %arg3[%c0_314, %c135_315] : memref<6x160xf32, #tpu.memory_space<vmem>>, vector<6x1xf32>
    tpu.vector_store %arg3[%c0_314, %c135_315], %270 {strides = array<i32>} : memref<6x160xf32, #tpu.memory_space<vmem>>, vector<6x1xf32>,
    %c0_316 = arith.constant 0 : index
    %c434 = arith.constant 434 : index
    %272 = vector.load %arg1[%c0_316, %c434] : memref<6x512xf32, #tpu.memory_space<vmem>>, vector<6x1xf32>
    %c0_317 = arith.constant 0 : index
    %c136 = arith.constant 136 : index
    %273 = vector.load %arg3[%c0_317, %c136] : memref<6x160xf32, #tpu.memory_space<vmem>>, vector<6x1xf32>
    tpu.vector_store %arg3[%c0_317, %c136], %272 {strides = array<i32>} : memref<6x160xf32, #tpu.memory_space<vmem>>, vector<6x1xf32>,
    %c0_318 = arith.constant 0 : index
    %c437 = arith.constant 437 : index
    %274 = vector.load %arg1[%c0_318, %c437] : memref<6x512xf32, #tpu.memory_space<vmem>>, vector<6x1xf32>
    %c0_319 = arith.constant 0 : index
    %c137_320 = arith.constant 137 : index
    %275 = vector.load %arg3[%c0_319, %c137_320] : memref<6x160xf32, #tpu.memory_space<vmem>>, vector<6x1xf32>
    tpu.vector_store %arg3[%c0_319, %c137_320], %274 {strides = array<i32>} : memref<6x160xf32, #tpu.memory_space<vmem>>, vector<6x1xf32>,
    %c0_321 = arith.constant 0 : index
    %c439 = arith.constant 439 : index
    %276 = vector.load %arg1[%c0_321, %c439] : memref<6x512xf32, #tpu.memory_space<vmem>>, vector<6x1xf32>
    %c0_322 = arith.constant 0 : index
    %c138 = arith.constant 138 : index
    %277 = vector.load %arg3[%c0_322, %c138] : memref<6x160xf32, #tpu.memory_space<vmem>>, vector<6x1xf32>
    tpu.vector_store %arg3[%c0_322, %c138], %276 {strides = array<i32>} : memref<6x160xf32, #tpu.memory_space<vmem>>, vector<6x1xf32>,
    %c0_323 = arith.constant 0 : index
    %c441 = arith.constant 441 : index
    %278 = vector.load %arg1[%c0_323, %c441] : memref<6x512xf32, #tpu.memory_space<vmem>>, vector<6x1xf32>
    %c0_324 = arith.constant 0 : index
    %c139 = arith.constant 139 : index
    %279 = vector.load %arg3[%c0_324, %c139] : memref<6x160xf32, #tpu.memory_space<vmem>>, vector<6x1xf32>
    tpu.vector_store %arg3[%c0_324, %c139], %278 {strides = array<i32>} : memref<6x160xf32, #tpu.memory_space<vmem>>, vector<6x1xf32>,
    %c0_325 = arith.constant 0 : index
    %c448 = arith.constant 448 : index
    %280 = vector.load %arg1[%c0_325, %c448] : memref<6x512xf32, #tpu.memory_space<vmem>>, vector<6x1xf32>
    %c0_326 = arith.constant 0 : index
    %c140 = arith.constant 140 : index
    %281 = vector.load %arg3[%c0_326, %c140] : memref<6x160xf32, #tpu.memory_space<vmem>>, vector<6x1xf32>
    tpu.vector_store %arg3[%c0_326, %c140], %280 {strides = array<i32>} : memref<6x160xf32, #tpu.memory_space<vmem>>, vector<6x1xf32>,
    %c0_327 = arith.constant 0 : index
    %c450 = arith.constant 450 : index
    %282 = vector.load %arg1[%c0_327, %c450] : memref<6x512xf32, #tpu.memory_space<vmem>>, vector<6x1xf32>
    %c0_328 = arith.constant 0 : index
    %c141 = arith.constant 141 : index
    %283 = vector.load %arg3[%c0_328, %c141] : memref<6x160xf32, #tpu.memory_space<vmem>>, vector<6x1xf32>
    tpu.vector_store %arg3[%c0_328, %c141], %282 {strides = array<i32>} : memref<6x160xf32, #tpu.memory_space<vmem>>, vector<6x1xf32>,
    %c0_329 = arith.constant 0 : index
    %c453 = arith.constant 453 : index
    %284 = vector.load %arg1[%c0_329, %c453] : memref<6x512xf32, #tpu.memory_space<vmem>>, vector<6x1xf32>
    %c0_330 = arith.constant 0 : index
    %c142 = arith.constant 142 : index
    %285 = vector.load %arg3[%c0_330, %c142] : memref<6x160xf32, #tpu.memory_space<vmem>>, vector<6x1xf32>
    tpu.vector_store %arg3[%c0_330, %c142], %284 {strides = array<i32>} : memref<6x160xf32, #tpu.memory_space<vmem>>, vector<6x1xf32>,
    %c0_331 = arith.constant 0 : index
    %c455 = arith.constant 455 : index
    %286 = vector.load %arg1[%c0_331, %c455] : memref<6x512xf32, #tpu.memory_space<vmem>>, vector<6x1xf32>
    %c0_332 = arith.constant 0 : index
    %c143 = arith.constant 143 : index
    %287 = vector.load %arg3[%c0_332, %c143] : memref<6x160xf32, #tpu.memory_space<vmem>>, vector<6x1xf32>
    tpu.vector_store %arg3[%c0_332, %c143], %286 {strides = array<i32>} : memref<6x160xf32, #tpu.memory_space<vmem>>, vector<6x1xf32>,
    %c0_333 = arith.constant 0 : index
    %c457 = arith.constant 457 : index
    %288 = vector.load %arg1[%c0_333, %c457] : memref<6x512xf32, #tpu.memory_space<vmem>>, vector<6x1xf32>
    %c0_334 = arith.constant 0 : index
    %c144_335 = arith.constant 144 : index
    %289 = vector.load %arg3[%c0_334, %c144_335] : memref<6x160xf32, #tpu.memory_space<vmem>>, vector<6x1xf32>
    tpu.vector_store %arg3[%c0_334, %c144_335], %288 {strides = array<i32>} : memref<6x160xf32, #tpu.memory_space<vmem>>, vector<6x1xf32>,
    %c0_336 = arith.constant 0 : index
    %c464 = arith.constant 464 : index
    %290 = vector.load %arg1[%c0_336, %c464] : memref<6x512xf32, #tpu.memory_space<vmem>>, vector<6x1xf32>
    %c0_337 = arith.constant 0 : index
    %c145 = arith.constant 145 : index
    %291 = vector.load %arg3[%c0_337, %c145] : memref<6x160xf32, #tpu.memory_space<vmem>>, vector<6x1xf32>
    tpu.vector_store %arg3[%c0_337, %c145], %290 {strides = array<i32>} : memref<6x160xf32, #tpu.memory_space<vmem>>, vector<6x1xf32>,
    %c0_338 = arith.constant 0 : index
    %c466 = arith.constant 466 : index
    %292 = vector.load %arg1[%c0_338, %c466] : memref<6x512xf32, #tpu.memory_space<vmem>>, vector<6x1xf32>
    %c0_339 = arith.constant 0 : index
    %c146_340 = arith.constant 146 : index
    %293 = vector.load %arg3[%c0_339, %c146_340] : memref<6x160xf32, #tpu.memory_space<vmem>>, vector<6x1xf32>
    tpu.vector_store %arg3[%c0_339, %c146_340], %292 {strides = array<i32>} : memref<6x160xf32, #tpu.memory_space<vmem>>, vector<6x1xf32>,
    %c0_341 = arith.constant 0 : index
    %c469 = arith.constant 469 : index
    %294 = vector.load %arg1[%c0_341, %c469] : memref<6x512xf32, #tpu.memory_space<vmem>>, vector<6x1xf32>
    %c0_342 = arith.constant 0 : index
    %c147 = arith.constant 147 : index
    %295 = vector.load %arg3[%c0_342, %c147] : memref<6x160xf32, #tpu.memory_space<vmem>>, vector<6x1xf32>
    tpu.vector_store %arg3[%c0_342, %c147], %294 {strides = array<i32>} : memref<6x160xf32, #tpu.memory_space<vmem>>, vector<6x1xf32>,
    %c0_343 = arith.constant 0 : index
    %c471 = arith.constant 471 : index
    %296 = vector.load %arg1[%c0_343, %c471] : memref<6x512xf32, #tpu.memory_space<vmem>>, vector<6x1xf32>
    %c0_344 = arith.constant 0 : index
    %c148 = arith.constant 148 : index
    %297 = vector.load %arg3[%c0_344, %c148] : memref<6x160xf32, #tpu.memory_space<vmem>>, vector<6x1xf32>
    tpu.vector_store %arg3[%c0_344, %c148], %296 {strides = array<i32>} : memref<6x160xf32, #tpu.memory_space<vmem>>, vector<6x1xf32>,
    %c0_345 = arith.constant 0 : index
    %c473 = arith.constant 473 : index
    %298 = vector.load %arg1[%c0_345, %c473] : memref<6x512xf32, #tpu.memory_space<vmem>>, vector<6x1xf32>
    %c0_346 = arith.constant 0 : index
    %c149_347 = arith.constant 149 : index
    %299 = vector.load %arg3[%c0_346, %c149_347] : memref<6x160xf32, #tpu.memory_space<vmem>>, vector<6x1xf32>
    tpu.vector_store %arg3[%c0_346, %c149_347], %298 {strides = array<i32>} : memref<6x160xf32, #tpu.memory_space<vmem>>, vector<6x1xf32>,
    %c0_348 = arith.constant 0 : index
    %c480 = arith.constant 480 : index
    %300 = vector.load %arg1[%c0_348, %c480] : memref<6x512xf32, #tpu.memory_space<vmem>>, vector<6x1xf32>
    %c0_349 = arith.constant 0 : index
    %c150 = arith.constant 150 : index
    %301 = vector.load %arg3[%c0_349, %c150] : memref<6x160xf32, #tpu.memory_space<vmem>>, vector<6x1xf32>
    tpu.vector_store %arg3[%c0_349, %c150], %300 {strides = array<i32>} : memref<6x160xf32, #tpu.memory_space<vmem>>, vector<6x1xf32>,
    %c0_350 = arith.constant 0 : index
    %c482 = arith.constant 482 : index
    %302 = vector.load %arg1[%c0_350, %c482] : memref<6x512xf32, #tpu.memory_space<vmem>>, vector<6x1xf32>
    %c0_351 = arith.constant 0 : index
    %c151_352 = arith.constant 151 : index
    %303 = vector.load %arg3[%c0_351, %c151_352] : memref<6x160xf32, #tpu.memory_space<vmem>>, vector<6x1xf32>
    tpu.vector_store %arg3[%c0_351, %c151_352], %302 {strides = array<i32>} : memref<6x160xf32, #tpu.memory_space<vmem>>, vector<6x1xf32>,
    %c0_353 = arith.constant 0 : index
    %c485 = arith.constant 485 : index
    %304 = vector.load %arg1[%c0_353, %c485] : memref<6x512xf32, #tpu.memory_space<vmem>>, vector<6x1xf32>
    %c0_354 = arith.constant 0 : index
    %c152 = arith.constant 152 : index
    %305 = vector.load %arg3[%c0_354, %c152] : memref<6x160xf32, #tpu.memory_space<vmem>>, vector<6x1xf32>
    tpu.vector_store %arg3[%c0_354, %c152], %304 {strides = array<i32>} : memref<6x160xf32, #tpu.memory_space<vmem>>, vector<6x1xf32>,
    %c0_355 = arith.constant 0 : index
    %c487 = arith.constant 487 : index
    %306 = vector.load %arg1[%c0_355, %c487] : memref<6x512xf32, #tpu.memory_space<vmem>>, vector<6x1xf32>
    %c0_356 = arith.constant 0 : index
    %c153_357 = arith.constant 153 : index
    %307 = vector.load %arg3[%c0_356, %c153_357] : memref<6x160xf32, #tpu.memory_space<vmem>>, vector<6x1xf32>
    tpu.vector_store %arg3[%c0_356, %c153_357], %306 {strides = array<i32>} : memref<6x160xf32, #tpu.memory_space<vmem>>, vector<6x1xf32>,
    %c0_358 = arith.constant 0 : index
    %c489 = arith.constant 489 : index
    %308 = vector.load %arg1[%c0_358, %c489] : memref<6x512xf32, #tpu.memory_space<vmem>>, vector<6x1xf32>
    %c0_359 = arith.constant 0 : index
    %c154 = arith.constant 154 : index
    %309 = vector.load %arg3[%c0_359, %c154] : memref<6x160xf32, #tpu.memory_space<vmem>>, vector<6x1xf32>
    tpu.vector_store %arg3[%c0_359, %c154], %308 {strides = array<i32>} : memref<6x160xf32, #tpu.memory_space<vmem>>, vector<6x1xf32>,
    %c0_360 = arith.constant 0 : index
    %c496 = arith.constant 496 : index
    %310 = vector.load %arg1[%c0_360, %c496] : memref<6x512xf32, #tpu.memory_space<vmem>>, vector<6x1xf32>
    %c0_361 = arith.constant 0 : index
    %c155 = arith.constant 155 : index
    %311 = vector.load %arg3[%c0_361, %c155] : memref<6x160xf32, #tpu.memory_space<vmem>>, vector<6x1xf32>
    tpu.vector_store %arg3[%c0_361, %c155], %310 {strides = array<i32>} : memref<6x160xf32, #tpu.memory_space<vmem>>, vector<6x1xf32>,
    %c0_362 = arith.constant 0 : index
    %c498 = arith.constant 498 : index
    %312 = vector.load %arg1[%c0_362, %c498] : memref<6x512xf32, #tpu.memory_space<vmem>>, vector<6x1xf32>
    %c0_363 = arith.constant 0 : index
    %c156 = arith.constant 156 : index
    %313 = vector.load %arg3[%c0_363, %c156] : memref<6x160xf32, #tpu.memory_space<vmem>>, vector<6x1xf32>
    tpu.vector_store %arg3[%c0_363, %c156], %312 {strides = array<i32>} : memref<6x160xf32, #tpu.memory_space<vmem>>, vector<6x1xf32>,
    %c0_364 = arith.constant 0 : index
    %c501 = arith.constant 501 : index
    %314 = vector.load %arg1[%c0_364, %c501] : memref<6x512xf32, #tpu.memory_space<vmem>>, vector<6x1xf32>
    %c0_365 = arith.constant 0 : index
    %c157 = arith.constant 157 : index
    %315 = vector.load %arg3[%c0_365, %c157] : memref<6x160xf32, #tpu.memory_space<vmem>>, vector<6x1xf32>
    tpu.vector_store %arg3[%c0_365, %c157], %314 {strides = array<i32>} : memref<6x160xf32, #tpu.memory_space<vmem>>, vector<6x1xf32>,
    %c0_366 = arith.constant 0 : index
    %c503 = arith.constant 503 : index
    %316 = vector.load %arg1[%c0_366, %c503] : memref<6x512xf32, #tpu.memory_space<vmem>>, vector<6x1xf32>
    %c0_367 = arith.constant 0 : index
    %c158 = arith.constant 158 : index
    %317 = vector.load %arg3[%c0_367, %c158] : memref<6x160xf32, #tpu.memory_space<vmem>>, vector<6x1xf32>
    tpu.vector_store %arg3[%c0_367, %c158], %316 {strides = array<i32>} : memref<6x160xf32, #tpu.memory_space<vmem>>, vector<6x1xf32>,
    %c0_368 = arith.constant 0 : index
    %c505 = arith.constant 505 : index
    %318 = vector.load %arg1[%c0_368, %c505] : memref<6x512xf32, #tpu.memory_space<vmem>>, vector<6x1xf32>
    %c0_369 = arith.constant 0 : index
    %c159 = arith.constant 159 : index
    %319 = vector.load %arg3[%c0_369, %c159] : memref<6x160xf32, #tpu.memory_space<vmem>>, vector<6x1xf32>
    tpu.vector_store %arg3[%c0_369, %c159], %318 {strides = array<i32>} : memref<6x160xf32, #tpu.memory_space<vmem>>, vector<6x1xf32>,
    %c0_370 = arith.constant 0 : index
    %c2_371 = arith.constant 2 : index
    %320 = vector.load %arg2[%c0_370, %c2_371] : memref<6x512xf32, #tpu.memory_space<vmem>>, vector<6x4xf32>
    %c0_372 = arith.constant 0 : index
    %c0_373 = arith.constant 0 : index
    %321 = vector.load %arg4[%c0_372, %c0_373] : memref<6x128xf32, #tpu.memory_space<vmem>>, vector<6x4xf32>
    tpu.vector_store %arg4[%c0_372, %c0_373], %320 {strides = array<i32>} : memref<6x128xf32, #tpu.memory_space<vmem>>, vector<6x4xf32>,
    %c0_374 = arith.constant 0 : index
    %c18_375 = arith.constant 18 : index
    %322 = vector.load %arg2[%c0_374, %c18_375] : memref<6x512xf32, #tpu.memory_space<vmem>>, vector<6x4xf32>
    %c0_376 = arith.constant 0 : index
    %c4_377 = arith.constant 4 : index
    %323 = vector.load %arg4[%c0_376, %c4_377] : memref<6x128xf32, #tpu.memory_space<vmem>>, vector<6x4xf32>
    tpu.vector_store %arg4[%c0_376, %c4_377], %322 {strides = array<i32>} : memref<6x128xf32, #tpu.memory_space<vmem>>, vector<6x4xf32>,
    %c0_378 = arith.constant 0 : index
    %c34_379 = arith.constant 34 : index
    %324 = vector.load %arg2[%c0_378, %c34_379] : memref<6x512xf32, #tpu.memory_space<vmem>>, vector<6x4xf32>
    %c0_380 = arith.constant 0 : index
    %c8_381 = arith.constant 8 : index
    %325 = vector.load %arg4[%c0_380, %c8_381] : memref<6x128xf32, #tpu.memory_space<vmem>>, vector<6x4xf32>
    tpu.vector_store %arg4[%c0_380, %c8_381], %324 {strides = array<i32>} : memref<6x128xf32, #tpu.memory_space<vmem>>, vector<6x4xf32>,
    %c0_382 = arith.constant 0 : index
    %c50_383 = arith.constant 50 : index
    %326 = vector.load %arg2[%c0_382, %c50_383] : memref<6x512xf32, #tpu.memory_space<vmem>>, vector<6x4xf32>
    %c0_384 = arith.constant 0 : index
    %c12_385 = arith.constant 12 : index
    %327 = vector.load %arg4[%c0_384, %c12_385] : memref<6x128xf32, #tpu.memory_space<vmem>>, vector<6x4xf32>
    tpu.vector_store %arg4[%c0_384, %c12_385], %326 {strides = array<i32>} : memref<6x128xf32, #tpu.memory_space<vmem>>, vector<6x4xf32>,
    %c0_386 = arith.constant 0 : index
    %c66_387 = arith.constant 66 : index
    %328 = vector.load %arg2[%c0_386, %c66_387] : memref<6x512xf32, #tpu.memory_space<vmem>>, vector<6x4xf32>
    %c0_388 = arith.constant 0 : index
    %c16_389 = arith.constant 16 : index
    %329 = vector.load %arg4[%c0_388, %c16_389] : memref<6x128xf32, #tpu.memory_space<vmem>>, vector<6x4xf32>
    tpu.vector_store %arg4[%c0_388, %c16_389], %328 {strides = array<i32>} : memref<6x128xf32, #tpu.memory_space<vmem>>, vector<6x4xf32>,
    %c0_390 = arith.constant 0 : index
    %c82_391 = arith.constant 82 : index
    %330 = vector.load %arg2[%c0_390, %c82_391] : memref<6x512xf32, #tpu.memory_space<vmem>>, vector<6x4xf32>
    %c0_392 = arith.constant 0 : index
    %c20_393 = arith.constant 20 : index
    %331 = vector.load %arg4[%c0_392, %c20_393] : memref<6x128xf32, #tpu.memory_space<vmem>>, vector<6x4xf32>
    tpu.vector_store %arg4[%c0_392, %c20_393], %330 {strides = array<i32>} : memref<6x128xf32, #tpu.memory_space<vmem>>, vector<6x4xf32>,
    %c0_394 = arith.constant 0 : index
    %c98_395 = arith.constant 98 : index
    %332 = vector.load %arg2[%c0_394, %c98_395] : memref<6x512xf32, #tpu.memory_space<vmem>>, vector<6x4xf32>
    %c0_396 = arith.constant 0 : index
    %c24_397 = arith.constant 24 : index
    %333 = vector.load %arg4[%c0_396, %c24_397] : memref<6x128xf32, #tpu.memory_space<vmem>>, vector<6x4xf32>
    tpu.vector_store %arg4[%c0_396, %c24_397], %332 {strides = array<i32>} : memref<6x128xf32, #tpu.memory_space<vmem>>, vector<6x4xf32>,
    %c0_398 = arith.constant 0 : index
    %c114_399 = arith.constant 114 : index
    %334 = vector.load %arg2[%c0_398, %c114_399] : memref<6x512xf32, #tpu.memory_space<vmem>>, vector<6x4xf32>
    %c0_400 = arith.constant 0 : index
    %c28_401 = arith.constant 28 : index
    %335 = vector.load %arg4[%c0_400, %c28_401] : memref<6x128xf32, #tpu.memory_space<vmem>>, vector<6x4xf32>
    tpu.vector_store %arg4[%c0_400, %c28_401], %334 {strides = array<i32>} : memref<6x128xf32, #tpu.memory_space<vmem>>, vector<6x4xf32>,
    %c0_402 = arith.constant 0 : index
    %c130_403 = arith.constant 130 : index
    %336 = vector.load %arg2[%c0_402, %c130_403] : memref<6x512xf32, #tpu.memory_space<vmem>>, vector<6x4xf32>
    %c0_404 = arith.constant 0 : index
    %c32_405 = arith.constant 32 : index
    %337 = vector.load %arg4[%c0_404, %c32_405] : memref<6x128xf32, #tpu.memory_space<vmem>>, vector<6x4xf32>
    tpu.vector_store %arg4[%c0_404, %c32_405], %336 {strides = array<i32>} : memref<6x128xf32, #tpu.memory_space<vmem>>, vector<6x4xf32>,
    %c0_406 = arith.constant 0 : index
    %c146_407 = arith.constant 146 : index
    %338 = vector.load %arg2[%c0_406, %c146_407] : memref<6x512xf32, #tpu.memory_space<vmem>>, vector<6x4xf32>
    %c0_408 = arith.constant 0 : index
    %c36_409 = arith.constant 36 : index
    %339 = vector.load %arg4[%c0_408, %c36_409] : memref<6x128xf32, #tpu.memory_space<vmem>>, vector<6x4xf32>
    tpu.vector_store %arg4[%c0_408, %c36_409], %338 {strides = array<i32>} : memref<6x128xf32, #tpu.memory_space<vmem>>, vector<6x4xf32>,
    %c0_410 = arith.constant 0 : index
    %c162_411 = arith.constant 162 : index
    %340 = vector.load %arg2[%c0_410, %c162_411] : memref<6x512xf32, #tpu.memory_space<vmem>>, vector<6x4xf32>
    %c0_412 = arith.constant 0 : index
    %c40_413 = arith.constant 40 : index
    %341 = vector.load %arg4[%c0_412, %c40_413] : memref<6x128xf32, #tpu.memory_space<vmem>>, vector<6x4xf32>
    tpu.vector_store %arg4[%c0_412, %c40_413], %340 {strides = array<i32>} : memref<6x128xf32, #tpu.memory_space<vmem>>, vector<6x4xf32>,
    %c0_414 = arith.constant 0 : index
    %c178_415 = arith.constant 178 : index
    %342 = vector.load %arg2[%c0_414, %c178_415] : memref<6x512xf32, #tpu.memory_space<vmem>>, vector<6x4xf32>
    %c0_416 = arith.constant 0 : index
    %c44_417 = arith.constant 44 : index
    %343 = vector.load %arg4[%c0_416, %c44_417] : memref<6x128xf32, #tpu.memory_space<vmem>>, vector<6x4xf32>
    tpu.vector_store %arg4[%c0_416, %c44_417], %342 {strides = array<i32>} : memref<6x128xf32, #tpu.memory_space<vmem>>, vector<6x4xf32>,
    %c0_418 = arith.constant 0 : index
    %c194_419 = arith.constant 194 : index
    %344 = vector.load %arg2[%c0_418, %c194_419] : memref<6x512xf32, #tpu.memory_space<vmem>>, vector<6x4xf32>
    %c0_420 = arith.constant 0 : index
    %c48_421 = arith.constant 48 : index
    %345 = vector.load %arg4[%c0_420, %c48_421] : memref<6x128xf32, #tpu.memory_space<vmem>>, vector<6x4xf32>
    tpu.vector_store %arg4[%c0_420, %c48_421], %344 {strides = array<i32>} : memref<6x128xf32, #tpu.memory_space<vmem>>, vector<6x4xf32>,
    %c0_422 = arith.constant 0 : index
    %c210_423 = arith.constant 210 : index
    %346 = vector.load %arg2[%c0_422, %c210_423] : memref<6x512xf32, #tpu.memory_space<vmem>>, vector<6x4xf32>
    %c0_424 = arith.constant 0 : index
    %c52_425 = arith.constant 52 : index
    %347 = vector.load %arg4[%c0_424, %c52_425] : memref<6x128xf32, #tpu.memory_space<vmem>>, vector<6x4xf32>
    tpu.vector_store %arg4[%c0_424, %c52_425], %346 {strides = array<i32>} : memref<6x128xf32, #tpu.memory_space<vmem>>, vector<6x4xf32>,
    %c0_426 = arith.constant 0 : index
    %c226_427 = arith.constant 226 : index
    %348 = vector.load %arg2[%c0_426, %c226_427] : memref<6x512xf32, #tpu.memory_space<vmem>>, vector<6x4xf32>
    %c0_428 = arith.constant 0 : index
    %c56_429 = arith.constant 56 : index
    %349 = vector.load %arg4[%c0_428, %c56_429] : memref<6x128xf32, #tpu.memory_space<vmem>>, vector<6x4xf32>
    tpu.vector_store %arg4[%c0_428, %c56_429], %348 {strides = array<i32>} : memref<6x128xf32, #tpu.memory_space<vmem>>, vector<6x4xf32>,
    %c0_430 = arith.constant 0 : index
    %c242_431 = arith.constant 242 : index
    %350 = vector.load %arg2[%c0_430, %c242_431] : memref<6x512xf32, #tpu.memory_space<vmem>>, vector<6x4xf32>
    %c0_432 = arith.constant 0 : index
    %c60_433 = arith.constant 60 : index
    %351 = vector.load %arg4[%c0_432, %c60_433] : memref<6x128xf32, #tpu.memory_space<vmem>>, vector<6x4xf32>
    tpu.vector_store %arg4[%c0_432, %c60_433], %350 {strides = array<i32>} : memref<6x128xf32, #tpu.memory_space<vmem>>, vector<6x4xf32>,
    %c0_434 = arith.constant 0 : index
    %c258_435 = arith.constant 258 : index
    %352 = vector.load %arg2[%c0_434, %c258_435] : memref<6x512xf32, #tpu.memory_space<vmem>>, vector<6x4xf32>
    %c0_436 = arith.constant 0 : index
    %c64_437 = arith.constant 64 : index
    %353 = vector.load %arg4[%c0_436, %c64_437] : memref<6x128xf32, #tpu.memory_space<vmem>>, vector<6x4xf32>
    tpu.vector_store %arg4[%c0_436, %c64_437], %352 {strides = array<i32>} : memref<6x128xf32, #tpu.memory_space<vmem>>, vector<6x4xf32>,
    %c0_438 = arith.constant 0 : index
    %c274_439 = arith.constant 274 : index
    %354 = vector.load %arg2[%c0_438, %c274_439] : memref<6x512xf32, #tpu.memory_space<vmem>>, vector<6x4xf32>
    %c0_440 = arith.constant 0 : index
    %c68_441 = arith.constant 68 : index
    %355 = vector.load %arg4[%c0_440, %c68_441] : memref<6x128xf32, #tpu.memory_space<vmem>>, vector<6x4xf32>
    tpu.vector_store %arg4[%c0_440, %c68_441], %354 {strides = array<i32>} : memref<6x128xf32, #tpu.memory_space<vmem>>, vector<6x4xf32>,
    %c0_442 = arith.constant 0 : index
    %c290_443 = arith.constant 290 : index
    %356 = vector.load %arg2[%c0_442, %c290_443] : memref<6x512xf32, #tpu.memory_space<vmem>>, vector<6x4xf32>
    %c0_444 = arith.constant 0 : index
    %c72_445 = arith.constant 72 : index
    %357 = vector.load %arg4[%c0_444, %c72_445] : memref<6x128xf32, #tpu.memory_space<vmem>>, vector<6x4xf32>
    tpu.vector_store %arg4[%c0_444, %c72_445], %356 {strides = array<i32>} : memref<6x128xf32, #tpu.memory_space<vmem>>, vector<6x4xf32>,
    %c0_446 = arith.constant 0 : index
    %c306_447 = arith.constant 306 : index
    %358 = vector.load %arg2[%c0_446, %c306_447] : memref<6x512xf32, #tpu.memory_space<vmem>>, vector<6x4xf32>
    %c0_448 = arith.constant 0 : index
    %c76_449 = arith.constant 76 : index
    %359 = vector.load %arg4[%c0_448, %c76_449] : memref<6x128xf32, #tpu.memory_space<vmem>>, vector<6x4xf32>
    tpu.vector_store %arg4[%c0_448, %c76_449], %358 {strides = array<i32>} : memref<6x128xf32, #tpu.memory_space<vmem>>, vector<6x4xf32>,
    %c0_450 = arith.constant 0 : index
    %c322_451 = arith.constant 322 : index
    %360 = vector.load %arg2[%c0_450, %c322_451] : memref<6x512xf32, #tpu.memory_space<vmem>>, vector<6x4xf32>
    %c0_452 = arith.constant 0 : index
    %c80_453 = arith.constant 80 : index
    %361 = vector.load %arg4[%c0_452, %c80_453] : memref<6x128xf32, #tpu.memory_space<vmem>>, vector<6x4xf32>
    tpu.vector_store %arg4[%c0_452, %c80_453], %360 {strides = array<i32>} : memref<6x128xf32, #tpu.memory_space<vmem>>, vector<6x4xf32>,
    %c0_454 = arith.constant 0 : index
    %c338_455 = arith.constant 338 : index
    %362 = vector.load %arg2[%c0_454, %c338_455] : memref<6x512xf32, #tpu.memory_space<vmem>>, vector<6x4xf32>
    %c0_456 = arith.constant 0 : index
    %c84_457 = arith.constant 84 : index
    %363 = vector.load %arg4[%c0_456, %c84_457] : memref<6x128xf32, #tpu.memory_space<vmem>>, vector<6x4xf32>
    tpu.vector_store %arg4[%c0_456, %c84_457], %362 {strides = array<i32>} : memref<6x128xf32, #tpu.memory_space<vmem>>, vector<6x4xf32>,
    %c0_458 = arith.constant 0 : index
    %c354_459 = arith.constant 354 : index
    %364 = vector.load %arg2[%c0_458, %c354_459] : memref<6x512xf32, #tpu.memory_space<vmem>>, vector<6x4xf32>
    %c0_460 = arith.constant 0 : index
    %c88_461 = arith.constant 88 : index
    %365 = vector.load %arg4[%c0_460, %c88_461] : memref<6x128xf32, #tpu.memory_space<vmem>>, vector<6x4xf32>
    tpu.vector_store %arg4[%c0_460, %c88_461], %364 {strides = array<i32>} : memref<6x128xf32, #tpu.memory_space<vmem>>, vector<6x4xf32>,
    %c0_462 = arith.constant 0 : index
    %c370_463 = arith.constant 370 : index
    %366 = vector.load %arg2[%c0_462, %c370_463] : memref<6x512xf32, #tpu.memory_space<vmem>>, vector<6x4xf32>
    %c0_464 = arith.constant 0 : index
    %c92_465 = arith.constant 92 : index
    %367 = vector.load %arg4[%c0_464, %c92_465] : memref<6x128xf32, #tpu.memory_space<vmem>>, vector<6x4xf32>
    tpu.vector_store %arg4[%c0_464, %c92_465], %366 {strides = array<i32>} : memref<6x128xf32, #tpu.memory_space<vmem>>, vector<6x4xf32>,
    %c0_466 = arith.constant 0 : index
    %c386_467 = arith.constant 386 : index
    %368 = vector.load %arg2[%c0_466, %c386_467] : memref<6x512xf32, #tpu.memory_space<vmem>>, vector<6x4xf32>
    %c0_468 = arith.constant 0 : index
    %c96_469 = arith.constant 96 : index
    %369 = vector.load %arg4[%c0_468, %c96_469] : memref<6x128xf32, #tpu.memory_space<vmem>>, vector<6x4xf32>
    tpu.vector_store %arg4[%c0_468, %c96_469], %368 {strides = array<i32>} : memref<6x128xf32, #tpu.memory_space<vmem>>, vector<6x4xf32>,
    %c0_470 = arith.constant 0 : index
    %c402_471 = arith.constant 402 : index
    %370 = vector.load %arg2[%c0_470, %c402_471] : memref<6x512xf32, #tpu.memory_space<vmem>>, vector<6x4xf32>
    %c0_472 = arith.constant 0 : index
    %c100_473 = arith.constant 100 : index
    %371 = vector.load %arg4[%c0_472, %c100_473] : memref<6x128xf32, #tpu.memory_space<vmem>>, vector<6x4xf32>
    tpu.vector_store %arg4[%c0_472, %c100_473], %370 {strides = array<i32>} : memref<6x128xf32, #tpu.memory_space<vmem>>, vector<6x4xf32>,
    %c0_474 = arith.constant 0 : index
    %c418_475 = arith.constant 418 : index
    %372 = vector.load %arg2[%c0_474, %c418_475] : memref<6x512xf32, #tpu.memory_space<vmem>>, vector<6x4xf32>
    %c0_476 = arith.constant 0 : index
    %c104_477 = arith.constant 104 : index
    %373 = vector.load %arg4[%c0_476, %c104_477] : memref<6x128xf32, #tpu.memory_space<vmem>>, vector<6x4xf32>
    tpu.vector_store %arg4[%c0_476, %c104_477], %372 {strides = array<i32>} : memref<6x128xf32, #tpu.memory_space<vmem>>, vector<6x4xf32>,
    %c0_478 = arith.constant 0 : index
    %c434_479 = arith.constant 434 : index
    %374 = vector.load %arg2[%c0_478, %c434_479] : memref<6x512xf32, #tpu.memory_space<vmem>>, vector<6x4xf32>
    %c0_480 = arith.constant 0 : index
    %c108_481 = arith.constant 108 : index
    %375 = vector.load %arg4[%c0_480, %c108_481] : memref<6x128xf32, #tpu.memory_space<vmem>>, vector<6x4xf32>
    tpu.vector_store %arg4[%c0_480, %c108_481], %374 {strides = array<i32>} : memref<6x128xf32, #tpu.memory_space<vmem>>, vector<6x4xf32>,
    %c0_482 = arith.constant 0 : index
    %c450_483 = arith.constant 450 : index
    %376 = vector.load %arg2[%c0_482, %c450_483] : memref<6x512xf32, #tpu.memory_space<vmem>>, vector<6x4xf32>
    %c0_484 = arith.constant 0 : index
    %c112_485 = arith.constant 112 : index
    %377 = vector.load %arg4[%c0_484, %c112_485] : memref<6x128xf32, #tpu.memory_space<vmem>>, vector<6x4xf32>
    tpu.vector_store %arg4[%c0_484, %c112_485], %376 {strides = array<i32>} : memref<6x128xf32, #tpu.memory_space<vmem>>, vector<6x4xf32>,
    %c0_486 = arith.constant 0 : index
    %c466_487 = arith.constant 466 : index
    %378 = vector.load %arg2[%c0_486, %c466_487] : memref<6x512xf32, #tpu.memory_space<vmem>>, vector<6x4xf32>
    %c0_488 = arith.constant 0 : index
    %c116_489 = arith.constant 116 : index
    %379 = vector.load %arg4[%c0_488, %c116_489] : memref<6x128xf32, #tpu.memory_space<vmem>>, vector<6x4xf32>
    tpu.vector_store %arg4[%c0_488, %c116_489], %378 {strides = array<i32>} : memref<6x128xf32, #tpu.memory_space<vmem>>, vector<6x4xf32>,
    %c0_490 = arith.constant 0 : index
    %c482_491 = arith.constant 482 : index
    %380 = vector.load %arg2[%c0_490, %c482_491] : memref<6x512xf32, #tpu.memory_space<vmem>>, vector<6x4xf32>
    %c0_492 = arith.constant 0 : index
    %c120_493 = arith.constant 120 : index
    %381 = vector.load %arg4[%c0_492, %c120_493] : memref<6x128xf32, #tpu.memory_space<vmem>>, vector<6x4xf32>
    tpu.vector_store %arg4[%c0_492, %c120_493], %380 {strides = array<i32>} : memref<6x128xf32, #tpu.memory_space<vmem>>, vector<6x4xf32>,
    %c0_494 = arith.constant 0 : index
    %c498_495 = arith.constant 498 : index
    %382 = vector.load %arg2[%c0_494, %c498_495] : memref<6x512xf32, #tpu.memory_space<vmem>>, vector<6x4xf32>
    %c0_496 = arith.constant 0 : index
    %c124_497 = arith.constant 124 : index
    %383 = vector.load %arg4[%c0_496, %c124_497] : memref<6x128xf32, #tpu.memory_space<vmem>>, vector<6x4xf32>
    tpu.vector_store %arg4[%c0_496, %c124_497], %382 {strides = array<i32>} : memref<6x128xf32, #tpu.memory_space<vmem>>, vector<6x4xf32>,
    return
  }
  func.func @transform_0(%arg0: i32) -> (i32, i32) {
    %c0_i32 = arith.constant 0 : i32
    %c0_i32_0 = arith.constant 0 : i32
    return %arg0, %c0_i32 : i32, i32
  }
  func.func @transform_1(%arg0: i32) -> (i32, i32) {
    %c0_i32 = arith.constant 0 : i32
    %c0_i32_0 = arith.constant 0 : i32
    return %arg0, %c0_i32 : i32, i32
  }
  func.func @transform_2(%arg0: i32) -> (i32, i32) {
    %c0_i32 = arith.constant 0 : i32
    %c0_i32_0 = arith.constant 0 : i32
    return %arg0, %c0_i32 : i32, i32
  }
  func.func @transform_3(%arg0: i32) -> (i32, i32) {
    %c0_i32 = arith.constant 0 : i32
    %c0_i32_0 = arith.constant 0 : i32
    return %arg0, %c0_i32 : i32, i32
  }
}

</mosaic_0001>

<bundles_post_ra>
// kernel: tpu_custom_call.1
= control target key start
LH: loop header
LB: loop body
LE: loop exit
PB: predicated region body
PF: predicated region fallthrough
CT: control target
= control target key end

     0   :  { %9 = vsyncpa [#allocation3], 0  ;;  %s1975_s0 = inlined_call_operand.hbm [shape: f32[6,512], index: 0, kind: input, shape index: {}]   ;;  %s1976_s1 = inlined_call_operand.hbm [shape: f32[6,512], index: 1, kind: input, shape index: {}]   ;;  %s1977_s2 = inlined_call_operand.hbm [shape: f32[6,160], index: 2, kind: output, shape index: {0}]   ;;  %s1978_s3 = inlined_call_operand.hbm [shape: f32[6,128], index: 3, kind: output, shape index: {1}]  }
   0x1   :  { %10 = vsyncpa [#allocation6], 0 }
   0x2   :  { %11 = vsyncpa [#allocation4], 0 }
   0x3   :  { %12 = vsyncpa [#allocation9], 0  ;;  %s1580_s12 = smov [#allocation2]   ;;  %s1581_s14 = smov [#allocation5]  }
   0x4   :  { %s19_s13 = sshll.u32 %s1580_s12, 4  ;;  %s29_s15 = sshll.u32 %s1581_s14, 4  ;;  %s20_s13 = int_to_ptr.vmem [resolvable:$true] %s19_s13  ;;  %s30_s15 = int_to_ptr.vmem [resolvable:$true] %s29_s15 }
   0x5   :  { %s1484_s18 = scalar_lea.hbm %s1975_s0, 512 }
   0x6   :  { %p1485_p0 = scmp.ne.s32.totalorder %s1975_s0, %s1484_s18  ;;  %p1488_p1 = scmp.lt.u32.totalorder %s1484_s18, %s1975_s0 }
   0x8   :  { %p1490_p2 = pnand %p1488_p1, %p1485_p0 }
   0xa   :  { %1493 = shalt.err (!%p1490_p2)
}
   0xb   :  { %s1494_s23 = scalar_lea.vmem %s20_s13, 512  ;;  %p1499_p4 = scmp.lt.s32.totalorder %s20_s13, %s20_s13 }
   0xc   :  { %p1495_p3 = scmp.ne.s32.totalorder %s20_s13, %s1494_s23  ;;  %p1500_p5 = scmp.lt.s32.totalorder %s1494_s23, %s1494_s23 }
   0xe   :  { %p1501_p6 = por %p1500_p5, %p1499_p4 }
  0x10   :  { %p1502_p7 = pnand %p1501_p6, %p1495_p3 }
  0x12   :  { %1505 = shalt.err (!%p1502_p7)
}
  0x13   :  { %22 = dma.hbm_to_vmem [thread:$0]  %s1975_s0, 512, %s20_s13, [#allocation3]  }
  0x14   :  { %s1506_s28 = scalar_lea.hbm %s1976_s1, 512 }
  0x15   :  { %p1507_p8 = scmp.ne.s32.totalorder %s1976_s1, %s1506_s28  ;;  %p1510_p9 = scmp.lt.u32.totalorder %s1506_s28, %s1976_s1 }
  0x17   :  { %p1512_p10 = pnand %p1510_p9, %p1507_p8 }
  0x19   :  { %1515 = shalt.err (!%p1512_p10)
}
  0x1a   :  { %s1516_s6 = scalar_lea.vmem %s30_s15, 512  ;;  %p1521_p12 = scmp.lt.s32.totalorder %s30_s15, %s30_s15 }
  0x1b   :  { %p1517_p11 = scmp.ne.s32.totalorder %s30_s15, %s1516_s6  ;;  %p1522_p13 = scmp.lt.s32.totalorder %s1516_s6, %s1516_s6 }
  0x1d   :  { %p1523_p0 = por %p1522_p13, %p1521_p12 }
  0x1f   :  { %p1524_p1 = pnand %p1523_p0, %p1517_p11 }
  0x21   :  { %1527 = shalt.err (!%p1524_p1)
}
  0x22   :  { %32 = dma.hbm_to_vmem [thread:$0]  %s1976_s1, 512, %s30_s15, [#allocation6]  }
  0x23   :  { %1572 = dma.done.wait [#allocation3], 512  }
  0x24   :  { %1573 = vsyncadd [#allocation3], 4294966784 }
  0x25   :  { %1574 = dma.done.wait [#allocation6], 512  }
  0x26   :  { %1575 = vsyncadd [#allocation6], 4294966784  ;;  %v56_v0 = vld [vmem:[#allocation2] sm:$0x3f]  ;;  %s1582_s8 = smov 124   ;;  %s1583_s9 = smov 127  }
  0x27   :  { %v42_v1 = vld [vmem:[#allocation2] sm:$0x3f]  ;;  %58 = vrot.lane.b32.xlu1 %v56_v0, %s1582_s8  ;;  %s1584_s10 = smov 123   ;;  %s1585_s11 = smov 125   ;;  %vm40_vm0 = vcmask 5120   ;;  %vm47_vm1 = vcmask 13320  }
  0x28   :  { %44 = vrot.lane.b32.xlu0 %v42_v1, %s1583_s9  ;;  %v63_v2 = vld [vmem:[#allocation2] sm:$0x3f]  ;;  %s1586_s1 = smov 116   ;;  %s2001_s12 = smov 117   ;;  %v315_v39 = vld [vmem:[#allocation2 + $0x8] sm:$0x3f] }
  0x29   :  { %v49_v3 = vld [vmem:[#allocation2] sm:$0x3f]  ;;  %s1588_s13 = smov 113   ;;  %s1982_s14 = smov 114   ;;  %v329_v41 = vld [vmem:[#allocation2 + $0x8] sm:$0x3f] }
  0x2a   :  { %v77_v4 = vld [vmem:[#allocation2] sm:$0x3f]  ;;  %s1999_s15 = smov 106   ;;  %s1591_s16 = smov 112   ;;  %v322_v42 = vld [vmem:[#allocation2 + $0x8] sm:$0x3f] }
  0x2b   :  { %65 = vrot.lane.b32.xlu1 %v63_v2, %s1584_s10  ;;  %v70_v5 = vld [vmem:[#allocation2] sm:$0x3f]  ;;  %s1592_s17 = smov 103   ;;  %s1996_s18 = smov 105   ;;  %v343_v43 = vld [vmem:[#allocation2 + $0x8] sm:$0x3f] }
  0x2c   :  { %51 = vrot.lane.b32.xlu0 %v49_v3, %s1585_s11  ;;  %v91_v6 = vld [vmem:[#allocation2] sm:$0x3f]  ;;  %s1594_s19 = smov 101   ;;  %s1595_s20 = smov 102   ;;  %v336_v44 = vld [vmem:[#allocation2 + $0x8] sm:$0x3f] }
  0x2d   :  { %v84_v7 = vld [vmem:[#allocation2] sm:$0x3f]  ;;  %s1994_s21 = smov 94   ;;  %s1993_s22 = smov 95   ;;  %v357_v45 = vld [vmem:[#allocation2 + $0x8] sm:$0x3f] }
  0x2e   :  { %v105_v8 = vld [vmem:[#allocation2] sm:$0x3f]  ;;  %s1598_s23 = smov 91   ;;  %s1599_s24 = smov 92   ;;  %v350_v46 = vld [vmem:[#allocation2 + $0x8] sm:$0x3f] }
  0x2f   :  { %79 = vrot.lane.b32.xlu1 %v77_v4, %s1586_s1  ;;  %v98_v9 = vld [vmem:[#allocation2] sm:$0x3f]  ;;  %s1991_s25 = smov 84   ;;  %s2015_s26 = smov 90   ;;  %v371_v47 = vld [vmem:[#allocation2 + $0x8] sm:$0x3f] }
  0x30   :  { %72 = vrot.lane.b32.xlu0 %v70_v5, %s2001_s12  ;;  %v119_v10 = vld [vmem:[#allocation2] sm:$0x3f]  ;;  %s1602_s27 = smov 81   ;;  %s1989_s28 = smov 83   ;;  %v364_v48 = vld [vmem:[#allocation2 + $0x8] sm:$0x3f] }
  0x31   :  { %v112_v11 = vld [vmem:[#allocation2] sm:$0x3f]  ;;  %s1604_s29 = smov 79   ;;  %s1605_s30 = smov 80   ;;  %v385_v49 = vld [vmem:[#allocation2 + $0x8] sm:$0x3f] }
  0x32   :  { %v133_v12 = vld [vmem:[#allocation2] sm:$0x3f]  ;;  %s1985_s4 = smov 72   ;;  %s1984_s5 = smov 73   ;;  %v378_v50 = vld [vmem:[#allocation2 + $0x8] sm:$0x3f] }
  0x33   :  { %93 = vrot.lane.b32.xlu1 %v91_v6, %s1588_s13  ;;  %v126_v13 = vld [vmem:[#allocation2] sm:$0x3f]  ;;  %s1608_s6 = smov 69   ;;  %s1979_s0 = smov 70   ;;  %v399_v51 = vld [vmem:[#allocation2 + $0x8] sm:$0x3f] }
  0x34   :  { %86 = vrot.lane.b32.xlu0 %v84_v7, %s1982_s14  ;;  %v147_v14 = vld [vmem:[#allocation2] sm:$0x3f]  ;;  %s1980_s7 = smov 62   ;;  %s1611_s11 = smov 68   ;;  %v392_v52 = vld [vmem:[#allocation2 + $0x8] sm:$0x3f] }
  0x35   :  { %v140_v15 = vld [vmem:[#allocation2] sm:$0x3f]  ;;  %s1988_s14 = smov 51   ;;  %v413_v53 = vld [vmem:[#allocation2 + $0x8] sm:$0x3f]  ;;  %s1640_s12 = smov 2  }
  0x36   :  { %v39_v16 = vld [vmem:[#allocation2] sm:$0x3f]  ;;  %v406_v54 = vld [vmem:[#allocation2 + $0x8] sm:$0x3f]  ;;  %vm54_vm2 = vcmask 21520   ;;  %vm61_vm3 = vcmask 29720  }
  0x37   :  { %107 = vrot.lane.b32.xlu1 %v105_v8, %s1999_s15  ;;  %41 = vst.msk [vmem:[#allocation7] sm:$0x3f] %vm40_vm0, %v39_v16  ;;  %v161_v17 = vld [vmem:[#allocation2] sm:$0x3f]  ;;  %v427_v55 = vld [vmem:[#allocation2 + $0x8] sm:$0x3f] }
  0x38   :  { %100 = vrot.lane.b32.xlu0 %v98_v9, %s1591_s16  ;;  %v154_v18 = vld [vmem:[#allocation2] sm:$0x3f]  ;;  %v420_v56 = vld [vmem:[#allocation2 + $0x8] sm:$0x3f]  ;;  %s1637_s15 = smov 7   ;;  %vm68_vm4 = vcmask 37920  }
  0x39   :  { %v175_v19 = vld [vmem:[#allocation2] sm:$0x3f]  ;;  %v441_v57 = vld [vmem:[#allocation2 + $0x8] sm:$0x3f]  ;;  %vm75_vm5 = vcmask 46120   ;;  %vm82_vm6 = vcmask 54320  }
  0x3a   :  { %v168_v20 = vld [vmem:[#allocation2] sm:$0x3f]  ;;  %v434_v58 = vld [vmem:[#allocation2 + $0x8] sm:$0x3f]  ;;  %vm89_vm7 = vcmask 62520   ;;  %vm96_vm8 = vcmask 70720  }
  0x3b   :  { %121 = vrot.lane.b32.xlu1 %v119_v10, %s1592_s17  ;;  %v189_v21 = vld [vmem:[#allocation2] sm:$0x3f]  ;;  %s1612_s17 = smov 59   ;;  %v455_v59 = vld [vmem:[#allocation2 + $0x8] sm:$0x3f]  ;;  %vm103_vm9 = vcmask 78920  }
  0x3c   :  { %114 = vrot.lane.b32.xlu0 %v112_v11, %s1996_s18  ;;  %v182_v22 = vld [vmem:[#allocation2] sm:$0x3f]  ;;  %s1634_s18 = smov 13   ;;  %v448_v60 = vld [vmem:[#allocation2 + $0x8] sm:$0x3f]  ;;  %vm2029_vm10 = vcmask 87120  }
  0x3d   :  { %v203_v23 = vld [vmem:[#allocation2] sm:$0x3f]  ;;  %v469_v63 = vld [vmem:[#allocation2 + $0x8] sm:$0x3f]  ;;  %vm2024_vm11 = vcmask 95320   ;;  %vm2002_vm12 = vcmask 103520  }
  0x3e   :  { %v196_v24 = vld [vmem:[#allocation2] sm:$0x3f]  ;;  %v462_v0 = vld [vmem:[#allocation2 + $0x8] sm:$0x3f]  ;;  %vm2006_vm13 = vcmask 111720   ;;  %vm2005_vm14 = vcmask 119920  }
  0x3f   :  { %135 = vrot.lane.b32.xlu1 %v133_v12, %s1594_s19  ;;  %v217_v25 = vld [vmem:[#allocation2] sm:$0x3f]  ;;  %v483_v3 = vld [vmem:[#allocation2 + $0x8] sm:$0x3f]  ;;  %vm2008_vm15 = vcmask 128120  }
  0x40   :  { %128 = vrot.lane.b32.xlu0 %v126_v13, %s1595_s20  ;;  %v210_v26 = vld [vmem:[#allocation2] sm:$0x3f]  ;;  %v476_v4 = vld [vmem:[#allocation2 + $0x8] sm:$0x3f] }
  0x41   :  { %v231_v27 = vld [vmem:[#allocation2] sm:$0x3f]  ;;  %v497_v7 = vld [vmem:[#allocation2 + $0x8] sm:$0x3f] }
  0x42   :  { %v224_v28 = vld [vmem:[#allocation2] sm:$0x3f]  ;;  %v490_v8 = vld [vmem:[#allocation2 + $0x8] sm:$0x3f] }
  0x43   :  { %149 = vrot.lane.b32.xlu1 %v147_v14, %s1994_s21  ;;  %v245_v29 = vld [vmem:[#allocation2] sm:$0x3f]  ;;  %s1631_s21 = smov 24   ;;  %v511_v11 = vld [vmem:[#allocation2 + $0x8] sm:$0x3f] }
  0x44   :  { %142 = vrot.lane.b32.xlu0 %v140_v15, %s1993_s22  ;;  %v238_v30 = vld [vmem:[#allocation2] sm:$0x3f]  ;;  %s1998_s22 = smov 18   ;;  %v504_v12 = vld [vmem:[#allocation2 + $0x8] sm:$0x3f] }
  0x45   :  { %v259_v31 = vld [vmem:[#allocation2] sm:$0x3f]  ;;  %v525_v15 = vld [vmem:[#allocation2 + $0x8] sm:$0x3f] }
  0x46   :  { %v252_v32 = vld [vmem:[#allocation2] sm:$0x3f]  ;;  %v518_v16 = vld [vmem:[#allocation2 + $0x8] sm:$0x3f] }
  0x47   :  { %163 = vrot.lane.b32.xlu1 %v161_v17, %s1598_s23  ;;  %v273_v33 = vld [vmem:[#allocation2] sm:$0x3f] }
  0x48   :  { %156 = vrot.lane.b32.xlu0 %v154_v18, %s1599_s24  ;;  %s1983_s24 = smov 61   ;;  %v266_v34 = vld [vmem:[#allocation2] sm:$0x3f] }
  0x49   :  { %v287_v35 = vld [vmem:[#allocation2] sm:$0x3f] }
  0x4a   :  { %v280_v36 = vld [vmem:[#allocation2] sm:$0x3f] }
  0x4b   :  { %177 = vrot.lane.b32.xlu1 %v175_v19, %s1991_s25  ;;  %v301_v37 = vld [vmem:[#allocation2] sm:$0x3f]  ;;  %s1627_s25 = smov 29   ;;  %v539_v19 = vld [vmem:[#allocation2 + $0x8] sm:$0x3f] }
  0x4c   :  { %170 = vrot.lane.b32.xlu0 %v168_v20, %s2015_s26  ;;  %v294_v38 = vld [vmem:[#allocation2] sm:$0x3f]  ;;  %v532_v20 = vld [vmem:[#allocation2 + $0x8] sm:$0x3f] }
  0x4d   :  { %v308_v40 = vld [vmem:[#allocation2] sm:$0x3f] }
  0x4f   :  { %191 = vrot.lane.b32.xlu1 %v189_v21, %s1602_s27  ;;  %s1614_s27 = smov 57  }
  0x50   :  { %184 = vrot.lane.b32.xlu0 %v182_v22, %s1989_s28  ;;  %s1624_s28 = smov 35  }
  0x53   :  { %205 = vrot.lane.b32.xlu1 %v203_v23, %s1604_s29  ;;  %v553_v23 = vld [vmem:[#allocation2 + $0x8] sm:$0x3f] }
  0x54   :  { %198 = vrot.lane.b32.xlu0 %v196_v24, %s1605_s30  ;;  %v546_v24 = vld [vmem:[#allocation2 + $0x8] sm:$0x3f] }
  0x57   :  { %219 = vrot.lane.b32.xlu1 %v217_v25, %s1985_s4  ;;  %s2028_s4 = smov 46  }
  0x58   :  { %212 = vrot.lane.b32.xlu0 %v210_v26, %s1984_s5  ;;  %s1990_s5 = smov 40  }
  0x5b   :  { %233 = vrot.lane.b32.xlu1 %v231_v27, %s1608_s6  ;;  %v567_v27 = vld [vmem:[#allocation2 + $0x8] sm:$0x3f] }
  0x5c   :  { %226 = vrot.lane.b32.xlu0 %v224_v28, %s1979_s0  ;;  %s2026_s0 = smov 58   ;;  %v560_v28 = vld [vmem:[#allocation2 + $0x8] sm:$0x3f] }
  0x5f   :  { %247 = vrot.lane.b32.xlu1 %v245_v29, %s1980_s7  ;;  %s1986_s7 = smov 50  }
  0x60   :  { %240 = vrot.lane.b32.xlu0 %v238_v30, %s1611_s11 }
  0x63   :  { %261 = vrot.lane.b32.xlu1 %v259_v31, %s1612_s17  ;;  %s1618_s17 = smov 47   ;;  %v581_v31 = vld [vmem:[#allocation2 + $0x8] sm:$0x3f] }
  0x64   :  { %254 = vrot.lane.b32.xlu0 %v252_v32, %s1983_s24  ;;  %s1619_s24 = smov 48   ;;  %v574_v32 = vld [vmem:[#allocation2 + $0x8] sm:$0x3f] }
  0x67   :  { %275 = vrot.lane.b32.xlu1 %v273_v33, %s1614_s27 }
  0x68   :  { %268 = vrot.lane.b32.xlu0 %v266_v34, %s2026_s0 }
  0x6b   :  { %289 = vrot.lane.b32.xlu1 %v287_v35, %s1986_s7  ;;  %s1622_s7 = smov 37   ;;  %v595_v35 = vld [vmem:[#allocation2 + $0x10] sm:$0x3f] }
  0x6c   :  { %282 = vrot.lane.b32.xlu0 %v280_v36, %s1988_s14  ;;  %s1992_s14 = smov 39   ;;  %v588_v36 = vld [vmem:[#allocation2 + $0x8] sm:$0x3f] }
  0x6f   :  { %303 = vrot.lane.b32.xlu1 %v301_v37, %s1618_s17 }
  0x70   :  { %296 = vrot.lane.b32.xlu0 %v294_v38, %s1619_s24  ;;  %s1625_s24 = smov 36  }
  0x73   :  { %317 = vrot.lane.b32.xlu1 %v315_v39, %s1990_s5  ;;  %s1626_s5 = smov 28   ;;  %v609_v39 = vld [vmem:[#allocation2 + $0x10] sm:$0x3f] }
  0x74   :  { %310 = vrot.lane.b32.xlu0 %v308_v40, %s2028_s4  ;;  %v602_v40 = vld [vmem:[#allocation2 + $0x10] sm:$0x3f] }
  0x77   :  { %331 = vrot.lane.b32.xlu1 %v329_v41, %s1622_s7  ;;  %s1628_s7 = smov 25  }
  0x78   :  { %324 = vrot.lane.b32.xlu0 %v322_v42, %s1992_s14  ;;  %s1997_s14 = smov 26  }
  0x7b   :  { %345 = vrot.lane.b32.xlu1 %v343_v43, %s1624_s28  ;;  %v623_v43 = vld [vmem:[#allocation2 + $0x10] sm:$0x3f] }
  0x7c   :  { %338 = vrot.lane.b32.xlu0 %v336_v44, %s1625_s24  ;;  %v616_v44 = vld [vmem:[#allocation2 + $0x10] sm:$0x3f] }
  0x7f   :  { %359 = vrot.lane.b32.xlu1 %v357_v45, %s1626_s5  ;;  %s1632_s5 = smov 15  }
  0x80   :  { %352 = vrot.lane.b32.xlu0 %v350_v46, %s1627_s25  ;;  %s1633_s25 = smov 17  }
  0x83   :  { %373 = vrot.lane.b32.xlu1 %v371_v47, %s1628_s7  ;;  %v637_v47 = vld [vmem:[#allocation2 + $0x10] sm:$0x3f] }
  0x84   :  { %366 = vrot.lane.b32.xlu0 %v364_v48, %s1997_s14  ;;  %s1635_s14 = smov 14   ;;  %v630_v48 = vld [vmem:[#allocation2 + $0x10] sm:$0x3f] }
  0x87   :  { %387 = vrot.lane.b32.xlu1 %v385_v49, %s1998_s22  ;;  %s2004_s22 = smov 6  }
  0x88   :  { %380 = vrot.lane.b32.xlu0 %v378_v50, %s1631_s21 }
  0x8b   :  { %401 = vrot.lane.b32.xlu1 %v399_v51, %s1632_s5  ;;  %s1638_s5 = smov 3   ;;  %v651_v51 = vld [vmem:[#allocation2 + $0x10] sm:$0x3f] }
  0x8c   :  { %394 = vrot.lane.b32.xlu0 %v392_v52, %s1633_s25  ;;  %s1639_s25 = smov 4   ;;  %v644_v52 = vld [vmem:[#allocation2 + $0x10] sm:$0x3f] }
  0x8f   :  { %415 = vrot.lane.b32.xlu1 %v413_v53, %s1634_s18 }
  0x90   :  { %408 = vrot.lane.b32.xlu0 %v406_v54, %s1635_s14 }
  0x93   :  { %429 = vrot.lane.b32.xlu1 %v427_v55, %s2004_s22  ;;  %s1649_s22 = smov 98   ;;  %v665_v55 = vld [vmem:[#allocation2 + $0x10] sm:$0x3f] }
  0x94   :  { %422 = vrot.lane.b32.xlu0 %v420_v56, %s1637_s15  ;;  %s1641_s15 = smov 121   ;;  %v658_v56 = vld [vmem:[#allocation2 + $0x10] sm:$0x3f] }
  0x97   :  { %443 = vrot.lane.b32.xlu1 %v441_v57, %s1638_s5 }
  0x98   :  { %436 = vrot.lane.b32.xlu0 %v434_v58, %s1639_s25  ;;  %s1643_s25 = smov 120  }
  0x99   :  { %v59_v61 = vpop.permute.xlu1 %58 }
  0x9a   :  { %v45_v62 = vpop.permute.xlu0 %44 }
  0x9b   :  { %48 = vst.msk [vmem:[#allocation7] sm:$0x3f] %vm47_vm1, %v45_v62  ;;  %457 = vrot.lane.b32.xlu1 %v455_v59, %s1582_s8  ;;  %s1642_s8 = smov 119   ;;  %v679_v59 = vld [vmem:[#allocation2 + $0x10] sm:$0x3f] }
  0x9c   :  { %450 = vrot.lane.b32.xlu0 %v448_v60, %s1640_s12  ;;  %v672_v60 = vld [vmem:[#allocation2 + $0x10] sm:$0x3f] }
  0x9d   :  { %v66_v1 = vpop.permute.xlu1 %65 }
  0x9e   :  { %v52_v2 = vpop.permute.xlu0 %51 }
  0x9f   :  { %55 = vst.msk [vmem:[#allocation7] sm:$0x3f] %vm54_vm2, %v52_v2  ;;  %471 = vrot.lane.b32.xlu1 %v469_v63, %s1641_s15  ;;  %s2003_s15 = smov 110   ;;  %v693_v63 = vld [vmem:[#allocation2 + $0x10] sm:$0x3f] }
  0xa0   :  { %62 = vst.msk [vmem:[#allocation7] sm:$0x3f] %vm61_vm3, %v59_v61  ;;  %464 = vrot.lane.b32.xlu0 %v462_v0, %s1584_s10  ;;  %s1644_s10 = smov 109   ;;  %v686_v0 = vld [vmem:[#allocation2 + $0x10] sm:$0x3f] }
  0xa1   :  { %69 = vst.msk [vmem:[#allocation7] sm:$0x3f] %vm68_vm4, %v66_v1  ;;  %v80_v5 = vpop.permute.xlu1 %79 }
  0xa2   :  { %v73_v6 = vpop.permute.xlu0 %72 }
  0xa3   :  { %76 = vst.msk [vmem:[#allocation7] sm:$0x3f] %vm75_vm5, %v73_v6  ;;  %485 = vrot.lane.b32.xlu1 %v483_v3, %s1642_s8  ;;  %v707_v3 = vld [vmem:[#allocation2 + $0x10] sm:$0x3f] }
  0xa4   :  { %83 = vst.msk [vmem:[#allocation7] sm:$0x3f] %vm82_vm6, %v80_v5  ;;  %478 = vrot.lane.b32.xlu0 %v476_v4, %s1643_s25  ;;  %v700_v4 = vld [vmem:[#allocation2 + $0x10] sm:$0x3f] }
  0xa5   :  { %v94_v9 = vpop.permute.xlu1 %93 }
  0xa6   :  { %v87_v10 = vpop.permute.xlu0 %86 }
  0xa7   :  { %90 = vst.msk [vmem:[#allocation7] sm:$0x3f] %vm89_vm7, %v87_v10  ;;  %499 = vrot.lane.b32.xlu1 %v497_v7, %s1591_s16  ;;  %s1647_s16 = smov 99   ;;  %v721_v7 = vld [vmem:[#allocation2 + $0x10] sm:$0x3f] }
  0xa8   :  { %97 = vst.msk [vmem:[#allocation7] sm:$0x3f] %vm96_vm8, %v94_v9  ;;  %492 = vrot.lane.b32.xlu0 %v490_v8, %s1588_s13  ;;  %s1646_s13 = smov 108   ;;  %v714_v8 = vld [vmem:[#allocation2 + $0x10] sm:$0x3f] }
  0xa9   :  { %v108_v13 = vpop.permute.xlu1 %107 }
  0xaa   :  { %v101_v14 = vpop.permute.xlu0 %100 }
  0xab   :  { %104 = vst.msk [vmem:[#allocation7] sm:$0x3f] %vm103_vm9, %v101_v14  ;;  %513 = vrot.lane.b32.xlu1 %v511_v11, %s1644_s10  ;;  %v735_v11 = vld [vmem:[#allocation2 + $0x10] sm:$0x3f] }
  0xac   :  { %111 = vst.msk [vmem:[#allocation7] sm:$0x3f] %vm2029_vm10, %v108_v13  ;;  %506 = vrot.lane.b32.xlu0 %v504_v12, %s2003_s15  ;;  %s1648_s15 = smov 97   ;;  %v728_v12 = vld [vmem:[#allocation2 + $0x10] sm:$0x3f]  ;;  %vm376_vm10 = vcmask 398720  }
  0xad   :  { %v122_v17 = vpop.permute.xlu1 %121 }
  0xae   :  { %v115_v18 = vpop.permute.xlu0 %114 }
  0xaf   :  { %118 = vst.msk [vmem:[#allocation7] sm:$0x3f] %vm2024_vm11, %v115_v18  ;;  %527 = vrot.lane.b32.xlu1 %v525_v15, %s1595_s20  ;;  %vm285_vm11 = vcmask 292120   ;;  %v749_v15 = vld [vmem:[#allocation2 + $0x10] sm:$0x3f] }
  0xb0   :  { %125 = vst.msk [vmem:[#allocation7] sm:$0x3f] %vm2002_vm12, %v122_v17  ;;  %520 = vrot.lane.b32.xlu0 %v518_v16, %s1646_s13  ;;  %vm2007_vm12 = vcmask 136320   ;;  %v742_v16 = vld [vmem:[#allocation2 + $0x10] sm:$0x3f] }
  0xb1   :  { %v136_v21 = vpop.permute.xlu1 %135 }
  0xb2   :  { %v129_v22 = vpop.permute.xlu0 %128 }
  0xb3   :  { %132 = vst.msk [vmem:[#allocation7] sm:$0x3f] %vm2006_vm13, %v129_v22  ;;  %541 = vrot.lane.b32.xlu1 %v539_v19, %s1647_s16  ;;  %vm2009_vm13 = vcmask 152720   ;;  %s1651_s16 = smov 88   ;;  %v763_v19 = vld [vmem:[#allocation2 + $0x10] sm:$0x3f] }
  0xb4   :  { %139 = vst.msk [vmem:[#allocation7] sm:$0x3f] %vm2005_vm14, %v136_v21  ;;  %534 = vrot.lane.b32.xlu0 %v532_v20, %s1594_s19  ;;  %vm2010_vm14 = vcmask 144520   ;;  %s1650_s19 = smov 87   ;;  %v756_v20 = vld [vmem:[#allocation2 + $0x10] sm:$0x3f] }
  0xb5   :  { %v150_v25 = vpop.permute.xlu1 %149 }
  0xb6   :  { %v143_v26 = vpop.permute.xlu0 %142 }
  0xb7   :  { %146 = vst.msk [vmem:[#allocation7] sm:$0x3f] %vm2008_vm15, %v143_v26  ;;  %555 = vrot.lane.b32.xlu1 %v553_v23, %s1648_s15  ;;  %vm2011_vm15 = vcmask 169120   ;;  %v777_v23 = vld [vmem:[#allocation2 + $0x10] sm:$0x3f] }
  0xb8   :  { %153 = vst.msk [vmem:[#allocation7] sm:$0x3f] %vm2007_vm12, %v150_v25  ;;  %548 = vrot.lane.b32.xlu0 %v546_v24, %s1649_s22  ;;  %vm2012_vm12 = vcmask 160920   ;;  %v770_v24 = vld [vmem:[#allocation2 + $0x10] sm:$0x3f] }
  0xb9   :  { %v164_v29 = vpop.permute.xlu1 %163 }
  0xba   :  { %v157_v30 = vpop.permute.xlu0 %156 }
  0xbb   :  { %160 = vst.msk [vmem:[#allocation7] sm:$0x3f] %vm2010_vm14, %v157_v30  ;;  %569 = vrot.lane.b32.xlu1 %v567_v27, %s2015_s26  ;;  %vm2013_vm14 = vcmask 185520   ;;  %s1655_s26 = smov 76   ;;  %v791_v27 = vld [vmem:[#allocation2 + $0x10] sm:$0x3f] }
  0xbc   :  { %167 = vst.msk [vmem:[#allocation7] sm:$0x3f] %vm2009_vm13, %v164_v29  ;;  %562 = vrot.lane.b32.xlu0 %v560_v28, %s1598_s23  ;;  %vm2014_vm13 = vcmask 177320   ;;  %s1652_s23 = smov 86   ;;  %v784_v28 = vld [vmem:[#allocation2 + $0x10] sm:$0x3f] }
  0xbd   :  { %v178_v33 = vpop.permute.xlu1 %177 }
  0xbe   :  { %v171_v34 = vpop.permute.xlu0 %170 }
  0xbf   :  { %174 = vst.msk [vmem:[#allocation7] sm:$0x3f] %vm2012_vm12, %v171_v34  ;;  %583 = vrot.lane.b32.xlu1 %v581_v31, %s1650_s19  ;;  %vm2016_vm12 = vcmask 201920   ;;  %v805_v31 = vld [vmem:[#allocation2 + $0x10] sm:$0x3f] }
  0xc0   :  { %181 = vst.msk [vmem:[#allocation7] sm:$0x3f] %vm2011_vm15, %v178_v33  ;;  %576 = vrot.lane.b32.xlu0 %v574_v32, %s1651_s16  ;;  %vm2017_vm15 = vcmask 193720   ;;  %s1653_s16 = smov 77   ;;  %v798_v32 = vld [vmem:[#allocation2 + $0x10] sm:$0x3f] }
  0xc1   :  { %v192_v37 = vpop.permute.xlu1 %191 }
  0xc2   :  { %v185_v38 = vpop.permute.xlu0 %184 }
  0xc3   :  { %188 = vst.msk [vmem:[#allocation7] sm:$0x3f] %vm2014_vm13, %v185_v38  ;;  %597 = vrot.lane.b32.xlu1 %v595_v35, %s1605_s30  ;;  %vm2018_vm13 = vcmask 218320   ;;  %s1654_s30 = smov 75   ;;  %v819_v35 = vld [vmem:[#allocation2 + $0x10] sm:$0x3f] }
  0xc4   :  { %195 = vst.msk [vmem:[#allocation7] sm:$0x3f] %vm2013_vm14, %v192_v37  ;;  %590 = vrot.lane.b32.xlu0 %v588_v36, %s1652_s23  ;;  %vm2019_vm14 = vcmask 210120   ;;  %v812_v36 = vld [vmem:[#allocation2 + $0x10] sm:$0x3f] }
  0xc5   :  { %v206_v41 = vpop.permute.xlu1 %205 }
  0xc6   :  { %v199_v42 = vpop.permute.xlu0 %198 }
  0xc7   :  { %202 = vst.msk [vmem:[#allocation7] sm:$0x3f] %vm2017_vm15, %v199_v42  ;;  %611 = vrot.lane.b32.xlu1 %v609_v39, %s1653_s16  ;;  %vm2020_vm15 = vcmask 234720   ;;  %s2027_s16 = smov 66   ;;  %v833_v39 = vld [vmem:[#allocation2 + $0x10] sm:$0x3f] }
  0xc8   :  { %209 = vst.msk [vmem:[#allocation7] sm:$0x3f] %vm2016_vm12, %v206_v41  ;;  %604 = vrot.lane.b32.xlu0 %v602_v40, %s1604_s29  ;;  %vm2021_vm12 = vcmask 226520   ;;  %s1656_s29 = smov 65   ;;  %v826_v40 = vld [vmem:[#allocation2 + $0x10] sm:$0x3f] }
  0xc9   :  { %v220_v45 = vpop.permute.xlu1 %219 }
  0xca   :  { %v213_v46 = vpop.permute.xlu0 %212 }
  0xcb   :  { %216 = vst.msk [vmem:[#allocation7] sm:$0x3f] %vm2019_vm14, %v213_v46  ;;  %625 = vrot.lane.b32.xlu1 %v623_v43, %s1654_s30  ;;  %vm2022_vm14 = vcmask 251120   ;;  %v847_v43 = vld [vmem:[#allocation2 + $0x10] sm:$0x3f] }
  0xcc   :  { %223 = vst.msk [vmem:[#allocation7] sm:$0x3f] %vm2018_vm13, %v220_v45  ;;  %618 = vrot.lane.b32.xlu0 %v616_v44, %s1655_s26  ;;  %vm2023_vm13 = vcmask 242920   ;;  %v840_v44 = vld [vmem:[#allocation2 + $0x10] sm:$0x3f] }
  0xcd   :  { %v234_v49 = vpop.permute.xlu1 %233 }
  0xce   :  { %v227_v50 = vpop.permute.xlu0 %226 }
  0xcf   :  { %230 = vst.msk [vmem:[#allocation7] sm:$0x3f] %vm2021_vm12, %v227_v50  ;;  %639 = vrot.lane.b32.xlu1 %v637_v47, %s1611_s11  ;;  %vm264_vm12 = vcmask 267520   ;;  %s1659_s11 = smov 55   ;;  %v864_v47 = vld [vmem:[#allocation2 + $0x10] sm:$0x3f] }
  0xd0   :  { %237 = vst.msk [vmem:[#allocation7] sm:$0x3f] %vm2020_vm15, %v234_v49  ;;  %632 = vrot.lane.b32.xlu0 %v630_v48, %s1608_s6  ;;  %vm2025_vm15 = vcmask 259320   ;;  %s1658_s6 = smov 64   ;;  %v857_v48 = vld [vmem:[#allocation2 + $0x10] sm:$0x3f] }
  0xd1   :  { %v248_v53 = vpop.permute.xlu1 %247 }
  0xd2   :  { %v241_v54 = vpop.permute.xlu0 %240 }
  0xd3   :  { %244 = vst.msk [vmem:[#allocation7] sm:$0x3f] %vm2023_vm13, %v241_v54  ;;  %653 = vrot.lane.b32.xlu1 %v651_v51, %s1656_s29  ;;  %vm278_vm13 = vcmask 283920   ;;  %v878_v51 = vld [vmem:[#allocation2 + $0x18] sm:$0x3f] }
  0xd4   :  { %251 = vst.msk [vmem:[#allocation7] sm:$0x3f] %vm2022_vm14, %v248_v53  ;;  %646 = vrot.lane.b32.xlu0 %v644_v52, %s2027_s16  ;;  %vm271_vm14 = vcmask 275720   ;;  %s1661_s16 = smov 54   ;;  %v871_v52 = vld [vmem:[#allocation2 + $0x18] sm:$0x3f] }
  0xd5   :  { %v262_v57 = vpop.permute.xlu1 %261 }
  0xd6   :  { %v255_v58 = vpop.permute.xlu0 %254 }
  0xd7   :  { %258 = vst.msk [vmem:[#allocation7] sm:$0x3f] %vm2025_vm15, %v255_v58  ;;  %667 = vrot.lane.b32.xlu1 %v665_v55, %s2026_s0  ;;  %vm292_vm15 = vcmask 300320   ;;  %s1660_s0 = smov 53   ;;  %v892_v55 = vld [vmem:[#allocation2 + $0x18] sm:$0x3f] }
  0xd8   :  { %265 = vst.msk [vmem:[#allocation7] sm:$0x3f] %vm264_vm12, %v262_v57  ;;  %660 = vrot.lane.b32.xlu0 %v658_v56, %s1658_s6  ;;  %vm299_vm12 = vcmask 308520   ;;  %v885_v56 = vld [vmem:[#allocation2 + $0x18] sm:$0x3f] }
  0xd9   :  { %v276_v61 = vpop.permute.xlu1 %275 }
  0xda   :  { %v269_v62 = vpop.permute.xlu0 %268 }
  0xdb   :  { %272 = vst.msk [vmem:[#allocation7] sm:$0x3f] %vm271_vm14, %v269_v62  ;;  %681 = vrot.lane.b32.xlu1 %v679_v59, %s1659_s11  ;;  %vm320_vm14 = vcmask 333120   ;;  %s1663_s11 = smov 44   ;;  %v906_v59 = vld [vmem:[#allocation2 + $0x18] sm:$0x3f] }
  0xdc   :  { %279 = vst.msk [vmem:[#allocation7] sm:$0x3f] %vm278_vm13, %v276_v61  ;;  %674 = vrot.lane.b32.xlu0 %v672_v60, %s1614_s27  ;;  %vm306_vm13 = vcmask 316720   ;;  %s1662_s27 = smov 43   ;;  %v899_v60 = vld [vmem:[#allocation2 + $0x18] sm:$0x3f] }
  0xdd   :  { %v290_v1 = vpop.permute.xlu1 %289 }
  0xde   :  { %v283_v2 = vpop.permute.xlu0 %282 }
  0xdf   :  { %286 = vst.msk [vmem:[#allocation7] sm:$0x3f] %vm285_vm11, %v283_v2  ;;  %695 = vrot.lane.b32.xlu1 %v693_v63, %s1660_s0  ;;  %vm313_vm11 = vcmask 324920   ;;  %v920_v63 = vld [vmem:[#allocation2 + $0x18] sm:$0x3f] }
  0xe0   :  { %293 = vst.msk [vmem:[#allocation7] sm:$0x3f] %vm292_vm15, %v290_v1  ;;  %688 = vrot.lane.b32.xlu0 %v686_v0, %s1661_s16  ;;  %vm327_vm15 = vcmask 341320   ;;  %v913_v0 = vld [vmem:[#allocation2 + $0x18] sm:$0x3f] }
  0xe1   :  { %v304_v5 = vpop.permute.xlu1 %303 }
  0xe2   :  { %v297_v6 = vpop.permute.xlu0 %296 }
  0xe3   :  { %300 = vst.msk [vmem:[#allocation7] sm:$0x3f] %vm299_vm12, %v297_v6  ;;  %709 = vrot.lane.b32.xlu1 %v707_v3, %s2028_s4  ;;  %vm334_vm12 = vcmask 349520   ;;  %s1667_s4 = smov 32   ;;  %v933_v3 = vld [vmem:[#allocation2 + $0x18] sm:$0x3f] }
  0xe4   :  { %307 = vst.msk [vmem:[#allocation7] sm:$0x3f] %vm306_vm13, %v304_v5  ;;  %702 = vrot.lane.b32.xlu0 %v700_v4, %s1618_s17  ;;  %s1664_s17 = smov 42   ;;  %vm341_vm13 = vcmask 357720   ;;  %v927_v4 = vld [vmem:[#allocation2 + $0x18] sm:$0x3f] }
  0xe5   :  { %v318_v9 = vpop.permute.xlu1 %317 }
  0xe6   :  { %v311_v10 = vpop.permute.xlu0 %310 }
  0xe7   :  { %314 = vst.msk [vmem:[#allocation7] sm:$0x3f] %vm313_vm11, %v311_v10  ;;  %723 = vrot.lane.b32.xlu1 %v721_v7, %s1662_s27  ;;  %vm348_vm11 = vcmask 365920   ;;  %v945_v7 = vld [vmem:[#allocation2 + $0x18] sm:$0x3f] }
  0xe8   :  { %321 = vst.msk [vmem:[#allocation7] sm:$0x3f] %vm320_vm14, %v318_v9  ;;  %716 = vrot.lane.b32.xlu0 %v714_v8, %s1663_s11  ;;  %s1665_s11 = smov 33   ;;  %vm355_vm14 = vcmask 374120   ;;  %v939_v8 = vld [vmem:[#allocation2 + $0x18] sm:$0x3f] }
  0xe9   :  { %v332_v13 = vpop.permute.xlu1 %331 }
  0xea   :  { %v325_v14 = vpop.permute.xlu0 %324 }
  0xeb   :  { %328 = vst.msk [vmem:[#allocation7] sm:$0x3f] %vm327_vm15, %v325_v14  ;;  %737 = vrot.lane.b32.xlu1 %v735_v11, %s1625_s24  ;;  %vm362_vm15 = vcmask 382320   ;;  %s1666_s24 = smov 31   ;;  %v957_v11 = vld [vmem:[#allocation2 + $0x18] sm:$0x3f] }
  0xec   :  { %335 = vst.msk [vmem:[#allocation7] sm:$0x3f] %vm334_vm12, %v332_v13  ;;  %730 = vrot.lane.b32.xlu0 %v728_v12, %s1664_s17  ;;  %vm369_vm12 = vcmask 390520   ;;  %v951_v12 = vld [vmem:[#allocation2 + $0x18] sm:$0x3f] }
  0xed   :  { %v346_v17 = vpop.permute.xlu1 %345 }
  0xee   :  { %v339_v18 = vpop.permute.xlu0 %338 }
  0xef   :  { %342 = vst.msk [vmem:[#allocation7] sm:$0x3f] %vm341_vm13, %v339_v18  ;;  %751 = vrot.lane.b32.xlu1 %v749_v15, %s1665_s11  ;;  %vm383_vm13 = vcmask 406920   ;;  %s1672_s11 = smov 9   ;;  %v969_v15 = vld [vmem:[#allocation2 + $0x18] sm:$0x3f] }
  0xf0   :  { %349 = vst.msk [vmem:[#allocation7] sm:$0x3f] %vm348_vm11, %v346_v17  ;;  %744 = vrot.lane.b32.xlu0 %v742_v16, %s1624_s28  ;;  %vm390_vm11 = vcmask 415120   ;;  %s1668_s28 = smov 21   ;;  %v963_v16 = vld [vmem:[#allocation2 + $0x18] sm:$0x3f] }
  0xf1   :  { %v360_v21 = vpop.permute.xlu1 %359 }
  0xf2   :  { %v353_v22 = vpop.permute.xlu0 %352 }
  0xf3   :  { %356 = vst.msk [vmem:[#allocation7] sm:$0x3f] %vm355_vm14, %v353_v22  ;;  %765 = vrot.lane.b32.xlu1 %v763_v19, %s1666_s24  ;;  %vm397_vm14 = vcmask 423320   ;;  %s1673_s24 = smov 10   ;;  %v981_v19 = vld [vmem:[#allocation2 + $0x18] sm:$0x3f] }
  0xf4   :  { %363 = vst.msk [vmem:[#allocation7] sm:$0x3f] %vm362_vm15, %v360_v21  ;;  %758 = vrot.lane.b32.xlu0 %v756_v20, %s1667_s4  ;;  %s1669_s4 = smov 22   ;;  %vm404_vm15 = vcmask 431520   ;;  %v975_v20 = vld [vmem:[#allocation2 + $0x18] sm:$0x3f] }
  0xf5   :  { %v374_v25 = vpop.permute.xlu1 %373 }
  0xf6   :  { %v367_v26 = vpop.permute.xlu0 %366 }
  0xf7   :  { %370 = vst.msk [vmem:[#allocation7] sm:$0x3f] %vm369_vm12, %v367_v26  ;;  %779 = vrot.lane.b32.xlu1 %v777_v23, %s1631_s21  ;;  %s1670_s21 = smov 20   ;;  %vm418_vm12 = vcmask 447920   ;;  %v993_v23 = vld [vmem:[#allocation2 + $0x18] sm:$0x3f] }
  0xf8   :  { %377 = vst.msk [vmem:[#allocation7] sm:$0x3f] %vm376_vm10, %v374_v25  ;;  %772 = vrot.lane.b32.xlu0 %v770_v24, %s1628_s7  ;;  %vm411_vm10 = vcmask 439720   ;;  %s1671_s7 = smov 11   ;;  %v987_v24 = vld [vmem:[#allocation2 + $0x18] sm:$0x3f] }
  0xf9   :  { %v388_v29 = vpop.permute.xlu1 %387 }
  0xfa   :  { %v381_v30 = vpop.permute.xlu0 %380 }
  0xfb   :  { %384 = vst.msk [vmem:[#allocation7] sm:$0x3f] %vm383_vm13, %v381_v30  ;;  %793 = vrot.lane.b32.xlu1 %v791_v27, %s1668_s28  ;;  %vm425_vm13 = vcmask 456120   ;;  %s2035_s28 = smov 84   ;;  %v1005_v27 = vld [vmem:[#allocation2 + $0x18] sm:$0x3f] }
  0xfc   :  { %391 = vst.msk [vmem:[#allocation7] sm:$0x3f] %vm390_vm11, %v388_v29  ;;  %786 = vrot.lane.b32.xlu0 %v784_v28, %s1669_s4  ;;  %vm432_vm11 = vcmask 464320   ;;  %v999_v28 = vld [vmem:[#allocation2 + $0x18] sm:$0x3f] }
  0xfd   :  { %v402_v33 = vpop.permute.xlu1 %401 }
  0xfe   :  { %v395_v34 = vpop.permute.xlu0 %394 }
  0xff   :  { %398 = vst.msk [vmem:[#allocation7] sm:$0x3f] %vm397_vm14, %v395_v34  ;;  %807 = vrot.lane.b32.xlu1 %v805_v31, %s1635_s14  ;;  %vm439_vm14 = vcmask 472520   ;;  %v1017_v31 = vld [vmem:[#allocation2 + $0x18] sm:$0x3f] }
 0x100   :  { %405 = vst.msk [vmem:[#allocation7] sm:$0x3f] %vm404_vm15, %v402_v33  ;;  %800 = vrot.lane.b32.xlu0 %v798_v32, %s1670_s21  ;;  %vm446_vm15 = vcmask 480720   ;;  %s2036_s21 = smov 83   ;;  %v1011_v32 = vld [vmem:[#allocation2 + $0x18] sm:$0x3f] }
 0x101   :  { %v416_v37 = vpop.permute.xlu1 %415 }
 0x102   :  { %v409_v38 = vpop.permute.xlu0 %408 }
 0x103   :  { %412 = vst.msk [vmem:[#allocation7] sm:$0x3f] %vm411_vm10, %v409_v38  ;;  %821 = vrot.lane.b32.xlu1 %v819_v35, %s1671_s7  ;;  %vm453_vm10 = vcmask 488920   ;;  %s2037_s7 = smov 72   ;;  %v1029_v35 = vld [vmem:[#allocation2 + $0x18] sm:$0x3f] }
 0x104   :  { %419 = vst.msk [vmem:[#allocation7] sm:$0x3f] %vm418_vm12, %v416_v37  ;;  %814 = vrot.lane.b32.xlu0 %v812_v36, %s1634_s18  ;;  %vm460_vm12 = vcmask 497120   ;;  %s1674_s18 = smov 126   ;;  %v1023_v36 = vld [vmem:[#allocation2 + $0x18] sm:$0x3f] }
 0x105   :  { %v430_v41 = vpop.permute.xlu1 %429 }
 0x106   :  { %v423_v42 = vpop.permute.xlu0 %422 }
 0x107   :  { %426 = vst.msk [vmem:[#allocation7] sm:$0x3f] %vm425_vm13, %v423_v42  ;;  %835 = vrot.lane.b32.xlu1 %v833_v39, %s1672_s11  ;;  %vm467_vm13 = vcmask 505320   ;;  %s2038_s11 = smov 73   ;;  %v1119_v39 = vld [vmem:[#allocation5] sm:$0x3f] }
 0x108   :  { %433 = vst.msk [vmem:[#allocation7] sm:$0x3f] %vm432_vm11, %v430_v41  ;;  %828 = vrot.lane.b32.xlu0 %v826_v40, %s1673_s24  ;;  %vm474_vm11 = vcmask 513520   ;;  %v1035_v40 = vld [vmem:[#allocation2 + $0x18] sm:$0x3f] }
 0x109   :  { %v444_v45 = vpop.permute.xlu1 %443 }
 0x10a   :  { %v437_v46 = vpop.permute.xlu0 %436 }
 0x10b   :  { %440 = vst.msk [vmem:[#allocation7] sm:$0x3f] %vm439_vm14, %v437_v46  ;;  %849 = vrot.lane.b32.xlu1 %v847_v43, %s1640_s12  ;;  %vm481_vm14 = vcmask 521720   ;;  %v1133_v43 = vld [vmem:[#allocation5] sm:$0x3f] }
 0x10c   :  { %447 = vst.msk [vmem:[#allocation7] sm:$0x3f] %vm446_vm15, %v444_v45  ;;  %842 = vrot.lane.b32.xlu0 %v840_v44, %s1638_s5  ;;  %vm488_vm15 = vcmask 529920   ;;  %s1675_s5 = smov 115   ;;  %v1126_v44 = vld [vmem:[#allocation5] sm:$0x3f] }
 0x10d   :  { %v458_v49 = vpop.permute.xlu1 %457 }
 0x10e   :  { %v451_v50 = vpop.permute.xlu0 %450 }
 0x10f   :  { %454 = vst.msk [vmem:[#allocation7] sm:$0x3f] %vm453_vm10, %v451_v50  ;;  %866 = vrot.lane.b32.xlu1 %v864_v47, %s1674_s18  ;;  %vm495_vm10 = vcmask 538120   ;;  %v1147_v47 = vld [vmem:[#allocation5] sm:$0x3f] }
 0x110   :  { %461 = vst.msk [vmem:[#allocation7] sm:$0x3f] %vm460_vm12, %v458_v49  ;;  %859 = vrot.lane.b32.xlu0 %v857_v48, %s1583_s9  ;;  %s2030_s9 = smov 117   ;;  %vm502_vm12 = vcmask 546320   ;;  %v1140_v48 = vld [vmem:[#allocation5] sm:$0x3f] }
 0x111   :  { %v472_v53 = vpop.permute.xlu1 %471 }
 0x112   :  { %v465_v54 = vpop.permute.xlu0 %464 }
 0x113   :  { %468 = vst.msk [vmem:[#allocation7] sm:$0x3f] %vm467_vm13, %v465_v54  ;;  %880 = vrot.lane.b32.xlu1 %v878_v51, %s1642_s8  ;;  %vm509_vm13 = vcmask 554520   ;;  %s1676_s8 = smov 104   ;;  %v1161_v51 = vld [vmem:[#allocation5] sm:$0x3f] }
 0x114   :  { %475 = vst.msk [vmem:[#allocation7] sm:$0x3f] %vm474_vm11, %v472_v53  ;;  %873 = vrot.lane.b32.xlu0 %v871_v52, %s1643_s25  ;;  %vm516_vm11 = vcmask 562720   ;;  %s2032_s25 = smov 105   ;;  %v1154_v52 = vld [vmem:[#allocation5] sm:$0x3f] }
 0x115   :  { %v486_v57 = vpop.permute.xlu1 %485 }
 0x116   :  { %v479_v58 = vpop.permute.xlu0 %478 }
 0x117   :  { %482 = vst.msk [vmem:[#allocation7] sm:$0x3f] %vm481_vm14, %v479_v58  ;;  %894 = vrot.lane.b32.xlu1 %v892_v55, %s1586_s1  ;;  %s2031_s1 = smov 106   ;;  %vm523_vm14 = vcmask 570920   ;;  %v1175_v55 = vld [vmem:[#allocation5 + $0x8] sm:$0x3f] }
 0x118   :  { %489 = vst.msk [vmem:[#allocation7] sm:$0x3f] %vm488_vm15, %v486_v57  ;;  %887 = vrot.lane.b32.xlu0 %v885_v56, %s2030_s9  ;;  %vm530_vm15 = vcmask 579120   ;;  %v1168_v56 = vld [vmem:[#allocation5] sm:$0x3f]  ;;  %s2042_s9 = smov 6  }
 0x119   :  { %v500_v61 = vpop.permute.xlu1 %499 }
 0x11a   :  { %v493_v62 = vpop.permute.xlu0 %492 }
 0x11b   :  { %496 = vst.msk [vmem:[#allocation7] sm:$0x3f] %vm495_vm10, %v493_v62  ;;  %908 = vrot.lane.b32.xlu1 %v906_v59, %s1644_s10  ;;  %vm537_vm10 = vcmask 587320   ;;  %s2033_s10 = smov 94   ;;  %v1189_v59 = vld [vmem:[#allocation5 + $0x8] sm:$0x3f] }
 0x11c   :  { %503 = vst.msk [vmem:[#allocation7] sm:$0x3f] %vm502_vm12, %v500_v61  ;;  %901 = vrot.lane.b32.xlu0 %v899_v60, %s1675_s5  ;;  %vm544_vm12 = vcmask 595520   ;;  %v1182_v60 = vld [vmem:[#allocation5 + $0x8] sm:$0x3f]  ;;  %s2043_s5 = smov 18  }
 0x11d   :  { %v514_v1 = vpop.permute.xlu1 %513 }
 0x11e   :  { %v507_v2 = vpop.permute.xlu0 %506 }
 0x11f   :  { %510 = vst.msk [vmem:[#allocation7] sm:$0x3f] %vm509_vm13, %v507_v2  ;;  %922 = vrot.lane.b32.xlu1 %v920_v63, %s2031_s1  ;;  %vm551_vm13 = vcmask 603720   ;;  %v1203_v63 = vld [vmem:[#allocation5 + $0x8] sm:$0x3f] }
 0x120   :  { %517 = vst.msk [vmem:[#allocation7] sm:$0x3f] %vm516_vm11, %v514_v1  ;;  %915 = vrot.lane.b32.xlu0 %v913_v0, %s1646_s13  ;;  %vm558_vm11 = vcmask 611920   ;;  %s2034_s13 = smov 95   ;;  %v1196_v0 = vld [vmem:[#allocation5 + $0x8] sm:$0x3f] }
 0x121   :  { %v528_v5 = vpop.permute.xlu1 %527 }
 0x122   :  { %v521_v6 = vpop.permute.xlu0 %520 }
 0x123   :  { %524 = vst.msk [vmem:[#allocation7] sm:$0x3f] %vm523_vm14, %v521_v6  ;;  %935 = vrot.lane.b32.xlu1 %v933_v3, %s1676_s8  ;;  %vm565_vm14 = vcmask 620120   ;;  %s2044_s8 = smov 110   ;;  %v1217_v3 = vld [vmem:[#allocation5 + $0x8] sm:$0x3f] }
 0x124   :  { %929 = vrot.lane.b32.xlu0 %v927_v4, %s2032_s25  ;;  %531 = vst.msk [vmem:[#allocation7] sm:$0x3f] %vm530_vm15, %v528_v5  ;;  %vm572_vm15 = vcmask 628320   ;;  %s1682_s25 = smov 122   ;;  %v1210_v4 = vld [vmem:[#allocation5 + $0x8] sm:$0x3f] }
 0x125   :  { %v542_v9 = vpop.permute.xlu1 %541 }
 0x126   :  { %v535_v10 = vpop.permute.xlu0 %534 }
 0x127   :  { %538 = vst.msk [vmem:[#allocation7] sm:$0x3f] %vm537_vm10, %v535_v10  ;;  %947 = vrot.lane.b32.xlu1 %v945_v7, %s1648_s15  ;;  %s1677_s15 = smov 93   ;;  %vm579_vm10 = vcmask 636520   ;;  %v1231_v7 = vld [vmem:[#allocation5 + $0x10] sm:$0x3f] }
 0x128   :  { %941 = vrot.lane.b32.xlu0 %v939_v8, %s1649_s22  ;;  %545 = vst.msk [vmem:[#allocation7] sm:$0x3f] %vm544_vm12, %v542_v9  ;;  %vm586_vm12 = vcmask 644720   ;;  %v1224_v8 = vld [vmem:[#allocation5 + $0x8] sm:$0x3f] }
 0x129   :  { %v556_v13 = vpop.permute.xlu1 %555 }
 0x12a   :  { %v549_v14 = vpop.permute.xlu0 %548 }
 0x12b   :  { %552 = vst.msk [vmem:[#allocation7] sm:$0x3f] %vm551_vm13, %v549_v14  ;;  %959 = vrot.lane.b32.xlu1 %v957_v11, %s2033_s10  ;;  %vm593_vm13 = vcmask 652920   ;;  %v1245_v11 = vld [vmem:[#allocation5 + $0x10] sm:$0x3f] }
 0x12c   :  { %953 = vrot.lane.b32.xlu0 %v951_v12, %s2034_s13  ;;  %559 = vst.msk [vmem:[#allocation7] sm:$0x3f] %vm558_vm11, %v556_v13  ;;  %vm600_vm11 = vcmask 661120   ;;  %s2045_s13 = smov 62   ;;  %v1238_v12 = vld [vmem:[#allocation5 + $0x10] sm:$0x3f] }
 0x12d   :  { %v570_v17 = vpop.permute.xlu1 %569 }
 0x12e   :  { %v563_v18 = vpop.permute.xlu0 %562 }
 0x12f   :  { %566 = vst.msk [vmem:[#allocation7] sm:$0x3f] %vm565_vm14, %v563_v18  ;;  %971 = vrot.lane.b32.xlu1 %v969_v15, %s1650_s19  ;;  %s1678_s19 = smov 82   ;;  %vm607_vm14 = vcmask 669320   ;;  %v1252_v15 = vld [vmem:[#allocation5 + $0x10] sm:$0x3f] }
 0x130   :  { %965 = vrot.lane.b32.xlu0 %v963_v16, %s1677_s15  ;;  %573 = vst.msk [vmem:[#allocation7] sm:$0x3f] %vm572_vm15, %v570_v17  ;;  %vm614_vm15 = vcmask 677520   ;;  %s1683_s15 = smov 74   ;;  %v1041_v16 = vld [vmem:[#allocation2 + $0x18] sm:$0x3f] }
 0x131   :  { %v584_v21 = vpop.permute.xlu1 %583 }
 0x132   :  { %v577_v22 = vpop.permute.xlu0 %576 }
 0x133   :  { %580 = vst.msk [vmem:[#allocation7] sm:$0x3f] %vm579_vm10, %v577_v22  ;;  %983 = vrot.lane.b32.xlu1 %v981_v19, %s2035_s28  ;;  %vm621_vm10 = vcmask 685720   ;;  %s2047_s28 = smov 26   ;;  %v1259_v19 = vld [vmem:[#allocation5 + $0x10] sm:$0x3f] }
 0x134   :  { %977 = vrot.lane.b32.xlu0 %v975_v20, %s1652_s23  ;;  %587 = vst.msk [vmem:[#allocation7] sm:$0x3f] %vm586_vm12, %v584_v21  ;;  %vm628_vm12 = vcmask 693920   ;;  %v1047_v20 = vld [vmem:[#allocation2 + $0x18] sm:$0x3f] }
 0x135   :  { %v598_v25 = vpop.permute.xlu1 %597 }
 0x136   :  { %v591_v26 = vpop.permute.xlu0 %590 }
 0x137   :  { %594 = vst.msk [vmem:[#allocation7] sm:$0x3f] %vm593_vm13, %v591_v26  ;;  %995 = vrot.lane.b32.xlu1 %v993_v23, %s1678_s19  ;;  %vm635_vm13 = vcmask 702120   ;;  %v1266_v23 = vld [vmem:[#allocation5 + $0x10] sm:$0x3f] }
 0x138   :  { %989 = vrot.lane.b32.xlu0 %v987_v24, %s2036_s21  ;;  %601 = vst.msk [vmem:[#allocation7] sm:$0x3f] %vm600_vm11, %v598_v25  ;;  %vm642_vm11 = vcmask 710320   ;;  %s2048_s21 = smov 61   ;;  %v1053_v24 = vld [vmem:[#allocation2 + $0x18] sm:$0x3f] }
 0x139   :  { %v612_v29 = vpop.permute.xlu1 %611 }
 0x13a   :  { %v605_v30 = vpop.permute.xlu0 %604 }
 0x13b   :  { %608 = vst.msk [vmem:[#allocation7] sm:$0x3f] %vm607_vm14, %v605_v30  ;;  %1007 = vrot.lane.b32.xlu1 %v1005_v27, %s1654_s30  ;;  %vm649_vm14 = vcmask 718520   ;;  %s2039_s30 = smov 114   ;;  %v1273_v27 = vld [vmem:[#allocation5 + $0x10] sm:$0x3f] }
 0x13c   :  { %1001 = vrot.lane.b32.xlu0 %v999_v28, %s1655_s26  ;;  %615 = vst.msk [vmem:[#allocation7] sm:$0x3f] %vm614_vm15, %v612_v29  ;;  %s1679_s26 = smov 71   ;;  %vm656_vm15 = vcmask 726720   ;;  %v1059_v28 = vld [vmem:[#allocation2 + $0x18] sm:$0x3f] }
 0x13d   :  { %v626_v33 = vpop.permute.xlu1 %625 }
 0x13e   :  { %v619_v34 = vpop.permute.xlu0 %618 }
 0x13f   :  { %622 = vst.msk [vmem:[#allocation7] sm:$0x3f] %vm621_vm10, %v619_v34  ;;  %1019 = vrot.lane.b32.xlu1 %v1017_v31, %s2037_s7  ;;  %vm663_vm10 = vcmask 734920   ;;  %s1685_s7 = smov 60   ;;  %v1280_v31 = vld [vmem:[#allocation5 + $0x10] sm:$0x3f] }
 0x140   :  { %1013 = vrot.lane.b32.xlu0 %v1011_v32, %s2038_s11  ;;  %629 = vst.msk [vmem:[#allocation7] sm:$0x3f] %vm628_vm12, %v626_v33  ;;  %vm670_vm12 = vcmask 743120   ;;  %v1065_v32 = vld [vmem:[#allocation2 + $0x18] sm:$0x3f]  ;;  %s1690_s11 = smov [#allocation8]  }
 0x141   :  { %v640_v37 = vpop.permute.xlu1 %639 }
 0x142   :  { %v633_v38 = vpop.permute.xlu0 %632 }
 0x143   :  { %636 = vst.msk [vmem:[#allocation7] sm:$0x3f] %vm635_vm13, %v633_v38  ;;  %1031 = vrot.lane.b32.xlu1 %v1029_v35, %s1656_s29  ;;  %vm677_vm13 = vcmask 751320   ;;  %s1680_s29 = smov 78   ;;  %v854_v35 = vld [vmem:[#allocation2 + $0x10] sm:$0x3f] }
 0x144   :  { %1025 = vrot.lane.b32.xlu0 %v1023_v36, %s1679_s26  ;;  %643 = vst.msk [vmem:[#allocation7] sm:$0x3f] %vm642_vm11, %v640_v37  ;;  %vm684_vm11 = vcmask 759520   ;;  %v1287_v36 = vld [vmem:[#allocation5 + $0x18] sm:$0x3f]  ;;  %s1359_s26 = sshll.u32 %s1690_s11, 4  ;;  %s1360_s26 = int_to_ptr.vmem [resolvable:$true] %s1359_s26 }
 0x145   :  { %v654_v41 = vpop.permute.xlu1 %653  ;;  %v1071_v37 = vld [vmem:[#allocation2 + $0x18] sm:$0x3f] }
 0x146   :  { %v647_v42 = vpop.permute.xlu0 %646 }
 0x147   :  { %650 = vst.msk [vmem:[#allocation7] sm:$0x3f] %vm649_vm14, %v647_v42  ;;  %1121 = vrot.lane.b32.xlu1 %v1119_v39, %s1674_s18  ;;  %vm691_vm14 = vcmask 767720   ;;  %s1681_s18 = smov 30  }
 0x148   :  { %1037 = vrot.lane.b32.xlu0 %v1035_v40, %s1658_s6  ;;  %657 = vst.msk [vmem:[#allocation7] sm:$0x3f] %vm656_vm15, %v654_v41  ;;  %s2040_s6 = smov 90   ;;  %vm698_vm15 = vcmask 775920   ;;  %v1294_v40 = vld [vmem:[#allocation5 + $0x18] sm:$0x3f] }
 0x149   :  { %v668_v45 = vpop.permute.xlu1 %667  ;;  %v1077_v41 = vld [vmem:[#allocation2 + $0x18] sm:$0x3f] }
 0x14a   :  { %v661_v46 = vpop.permute.xlu0 %660 }
 0x14b   :  { %664 = vst.msk [vmem:[#allocation7] sm:$0x3f] %vm663_vm10, %v661_v46  ;;  %1135 = vrot.lane.b32.xlu1 %v1133_v43, %s1595_s20  ;;  %s2041_s20 = smov 66   ;;  %vm705_vm10 = vcmask 784120  }
 0x14c   :  { %1128 = vrot.lane.b32.xlu0 %v1126_v44, %s2039_s30  ;;  %671 = vst.msk [vmem:[#allocation7] sm:$0x3f] %vm670_vm12, %v668_v45  ;;  %vm712_vm12 = vcmask 792320   ;;  %v1301_v44 = vld [vmem:[#allocation5 + $0x18] sm:$0x3f] }
 0x14d   :  { %v682_v49 = vpop.permute.xlu1 %681  ;;  %v1083_v45 = vld [vmem:[#allocation2 + $0x18] sm:$0x3f] }
 0x14e   :  { %v675_v50 = vpop.permute.xlu0 %674 }
 0x14f   :  { %678 = vst.msk [vmem:[#allocation7] sm:$0x3f] %vm677_vm13, %v675_v50  ;;  %1149 = vrot.lane.b32.xlu1 %v1147_v47, %s1680_s29  ;;  %vm719_vm13 = vcmask 800520  }
 0x150   :  { %1142 = vrot.lane.b32.xlu0 %v1140_v48, %s2040_s6  ;;  %685 = vst.msk [vmem:[#allocation7] sm:$0x3f] %vm684_vm11, %v682_v49  ;;  %vm726_vm11 = vcmask 808720   ;;  %v1308_v48 = vld [vmem:[#allocation5 + $0x18] sm:$0x3f] }
 0x151   :  { %v696_v53 = vpop.permute.xlu1 %695  ;;  %v1089_v49 = vld [vmem:[#allocation2 + $0x18] sm:$0x3f] }
 0x152   :  { %v689_v54 = vpop.permute.xlu0 %688 }
 0x153   :  { %692 = vst.msk [vmem:[#allocation7] sm:$0x3f] %vm691_vm14, %v689_v54  ;;  %1163 = vrot.lane.b32.xlu1 %v1161_v51, %s1661_s16  ;;  %vm733_vm14 = vcmask 816920  }
 0x154   :  { %1156 = vrot.lane.b32.xlu0 %v1154_v52, %s2041_s20  ;;  %699 = vst.msk [vmem:[#allocation7] sm:$0x3f] %vm698_vm15, %v696_v53  ;;  %vm740_vm15 = vcmask 825120   ;;  %v1315_v52 = vld [vmem:[#allocation5 + $0x18] sm:$0x3f] }
 0x155   :  { %v710_v57 = vpop.permute.xlu1 %709  ;;  %v1095_v53 = vld [vmem:[#allocation2 + $0x18] sm:$0x3f] }
 0x156   :  { %v703_v58 = vpop.permute.xlu0 %702 }
 0x157   :  { %706 = vst.msk [vmem:[#allocation7] sm:$0x3f] %vm705_vm10, %v703_v58  ;;  %1177 = vrot.lane.b32.xlu1 %v1175_v55, %s1681_s18  ;;  %vm747_vm10 = vcmask 833320  }
 0x158   :  { %1170 = vrot.lane.b32.xlu0 %v1168_v56, %s1664_s17  ;;  %713 = vst.msk [vmem:[#allocation7] sm:$0x3f] %vm712_vm12, %v710_v57  ;;  %vm754_vm12 = vcmask 841520   ;;  %v1322_v56 = vld [vmem:[#allocation5 + $0x18] sm:$0x3f] }
 0x159   :  { %v724_v61 = vpop.permute.xlu1 %723  ;;  %v1101_v57 = vld [vmem:[#allocation2 + $0x18] sm:$0x3f] }
 0x15a   :  { %v717_v62 = vpop.permute.xlu0 %716 }
 0x15b   :  { %720 = vst.msk [vmem:[#allocation7] sm:$0x3f] %vm719_vm13, %v717_v62  ;;  %1191 = vrot.lane.b32.xlu1 %v1189_v59, %s2042_s9  ;;  %vm761_vm13 = vcmask 849720  }
 0x15c   :  { %1184 = vrot.lane.b32.xlu0 %v1182_v60, %s2043_s5  ;;  %727 = vst.msk [vmem:[#allocation7] sm:$0x3f] %vm726_vm11, %v724_v61  ;;  %vm768_vm11 = vcmask 857920   ;;  %v1329_v60 = vld [vmem:[#allocation5 + $0x18] sm:$0x3f] }
 0x15d   :  { %v738_v1 = vpop.permute.xlu1 %737  ;;  %v1107_v61 = vld [vmem:[#allocation2 + $0x18] sm:$0x3f] }
 0x15e   :  { %v731_v2 = vpop.permute.xlu0 %730 }
 0x15f   :  { %734 = vst.msk [vmem:[#allocation7] sm:$0x3f] %vm733_vm14, %v731_v2  ;;  %1205 = vrot.lane.b32.xlu1 %v1203_v63, %s2044_s8  ;;  %vm775_vm14 = vcmask 866120  }
 0x160   :  { %1198 = vrot.lane.b32.xlu0 %v1196_v0, %s1682_s25  ;;  %741 = vst.msk [vmem:[#allocation7] sm:$0x3f] %vm740_vm15, %v738_v1  ;;  %vm782_vm15 = vcmask 874320   ;;  %v1336_v0 = vld [vmem:[#allocation5 + $0x18] sm:$0x3f] }
 0x161   :  { %v752_v5 = vpop.permute.xlu1 %751  ;;  %v1113_v1 = vld [vmem:[#allocation2 + $0x18] sm:$0x3f] }
 0x162   :  { %v745_v6 = vpop.permute.xlu0 %744 }
 0x163   :  { %748 = vst.msk [vmem:[#allocation7] sm:$0x3f] %vm747_vm10, %v745_v6  ;;  %1219 = vrot.lane.b32.xlu1 %v1217_v3, %s1652_s23  ;;  %s2046_s23 = smov 50   ;;  %vm789_vm10 = vcmask 882520  }
 0x164   :  { %1212 = vrot.lane.b32.xlu0 %v1210_v4, %s1649_s22  ;;  %755 = vst.msk [vmem:[#allocation7] sm:$0x3f] %vm754_vm12, %v752_v5  ;;  %s1684_s22 = smov 38   ;;  %vm796_vm12 = vcmask 890720  }
 0x165   :  { %v766_v9 = vpop.permute.xlu1 %765 }
 0x166   :  { %v759_v10 = vpop.permute.xlu0 %758 }
 0x167   :  { %762 = vst.msk [vmem:[#allocation7] sm:$0x3f] %vm761_vm13, %v759_v10  ;;  %1233 = vrot.lane.b32.xlu1 %v1231_v7, %s2045_s13  ;;  %vm803_vm13 = vcmask 898920  }
 0x168   :  { %1226 = vrot.lane.b32.xlu0 %v1224_v8, %s1683_s15  ;;  %769 = vst.msk [vmem:[#allocation7] sm:$0x3f] %vm768_vm11, %v766_v9  ;;  %vm810_vm11 = vcmask 907120  }
 0x169   :  { %v780_v13 = vpop.permute.xlu1 %779 }
 0x16a   :  { %v773_v14 = vpop.permute.xlu0 %772 }
 0x16b   :  { %776 = vst.msk [vmem:[#allocation7] sm:$0x3f] %vm775_vm14, %v773_v14  ;;  %1247 = vrot.lane.b32.xlu1 %v1245_v11, %s1684_s22  ;;  %vm817_vm14 = vcmask 915320  }
 0x16c   :  { %1240 = vrot.lane.b32.xlu0 %v1238_v12, %s2046_s23  ;;  %783 = vst.msk [vmem:[#allocation7] sm:$0x3f] %vm782_vm15, %v780_v13  ;;  %vm824_vm15 = vcmask 923520  }
 0x16d   :  { %v794_v17 = vpop.permute.xlu1 %793 }
 0x16e   :  { %v787_v18 = vpop.permute.xlu0 %786 }
 0x16f   :  { %790 = vst.msk [vmem:[#allocation7] sm:$0x3f] %vm789_vm10, %v787_v18  ;;  %1254 = vrot.lane.b32.xlu1 %v1252_v15, %s2047_s28  ;;  %vm831_vm10 = vcmask 931720  }
 0x170   :  { %1043 = vrot.lane.b32.xlu0 %v1041_v16, %s2045_s13  ;;  %797 = vst.msk [vmem:[#allocation7] sm:$0x3f] %vm796_vm12, %v794_v17  ;;  %vm838_vm12 = vcmask 939920  }
 0x171   :  { %v808_v21 = vpop.permute.xlu1 %807 }
 0x172   :  { %v801_v22 = vpop.permute.xlu0 %800 }
 0x173   :  { %804 = vst.msk [vmem:[#allocation7] sm:$0x3f] %vm803_vm13, %v801_v22  ;;  %1261 = vrot.lane.b32.xlu1 %v1259_v19, %s1635_s14  ;;  %s1686_s14 = smov 118   ;;  %vm845_vm13 = vcmask 948120  }
 0x174   :  { %1049 = vrot.lane.b32.xlu0 %v1047_v20, %s2048_s21  ;;  %811 = vst.msk [vmem:[#allocation7] sm:$0x3f] %vm810_vm11, %v808_v21  ;;  %vm852_vm11 = vcmask 956320  }
 0x175   :  { %v822_v25 = vpop.permute.xlu1 %821 }
 0x176   :  { %v815_v26 = vpop.permute.xlu0 %814 }
 0x177   :  { %818 = vst.msk [vmem:[#allocation7] sm:$0x3f] %vm817_vm14, %v815_v26  ;;  %1268 = vrot.lane.b32.xlu1 %v1266_v23, %s1640_s12  ;;  %vm855_vm14 = vcmask 964520   ;;  %s2049_s12 = smov 51  }
 0x178   :  { %1055 = vrot.lane.b32.xlu0 %v1053_v24, %s1685_s7  ;;  %825 = vst.msk [vmem:[#allocation7] sm:$0x3f] %vm824_vm15, %v822_v25  ;;  %vm862_vm15 = vcmask 972720  }
 0x179   :  { %v836_v29 = vpop.permute.xlu1 %835 }
 0x17a   :  { %v829_v30 = vpop.permute.xlu0 %828 }
 0x17b   :  { %832 = vst.msk [vmem:[#allocation7] sm:$0x3f] %vm831_vm10, %v829_v30  ;;  %1275 = vrot.lane.b32.xlu1 %v1273_v27, %s1686_s14  ;;  %vm869_vm10 = vcmask 980920  }
 0x17c   :  { %1061 = vrot.lane.b32.xlu0 %v1059_v28, %s1661_s16  ;;  %839 = vst.msk [vmem:[#allocation7] sm:$0x3f] %vm838_vm12, %v836_v29  ;;  %vm876_vm12 = vcmask 989120   ;;  %s1687_s16 = smov 49  }
 0x17d   :  { %v850_v33 = vpop.permute.xlu1 %849 }
 0x17e   :  { %v843_v34 = vpop.permute.xlu0 %842 }
 0x17f   :  { %846 = vst.msk [vmem:[#allocation7] sm:$0x3f] %vm845_vm13, %v843_v34  ;;  %1282 = vrot.lane.b32.xlu1 %v1280_v31, %s2031_s1  ;;  %vm883_vm13 = vcmask 997320   ;;  %s2051_s1 = smov 58  }
 0x180   :  { %853 = vst.msk [vmem:[#allocation7] sm:$0x3f] %vm852_vm11, %v850_v33  ;;  %1067 = vrot.lane.b32.xlu0 %v1065_v32, %s1660_s0  ;;  %vm890_vm11 = vcmask 1005520   ;;  %s2050_s0 = smov 70  }
 0x181   :  { %856 = vst.msk [vmem:[#allocation7] sm:$0x3f] %vm855_vm14, %v854_v35  ;;  %v867_v38 = vpop.permute.xlu1 %866  ;;  %vm897_vm14 = vcmask 1013720  }
 0x182   :  { %v860_v39 = vpop.permute.xlu0 %859 }
 0x183   :  { %863 = vst.msk [vmem:[#allocation7] sm:$0x3f] %vm862_vm15, %v860_v39  ;;  %1289 = vrot.lane.b32.xlu1 %v1287_v36, %s2033_s10  ;;  %vm904_vm15 = vcmask 1021920   ;;  %s2052_s10 = smov 46  }
 0x184   :  { %1073 = vrot.lane.b32.xlu0 %v1071_v37, %s2049_s12  ;;  %870 = vst.msk [vmem:[#allocation7] sm:$0x3f] %vm869_vm10, %v867_v38  ;;  %vm911_vm10 = vcmask 1030120  }
 0x185   :  { %v881_v42 = vpop.permute.xlu1 %880 }
 0x186   :  { %v874_v43 = vpop.permute.xlu0 %873 }
 0x187   :  { %877 = vst.msk [vmem:[#allocation7] sm:$0x3f] %vm876_vm12, %v874_v43  ;;  %1296 = vrot.lane.b32.xlu1 %v1294_v40, %s1678_s19  ;;  %vm918_vm12 = vcmask 1038320   ;;  %s2053_s19 = smov 40  }
 0x188   :  { %1079 = vrot.lane.b32.xlu0 %v1077_v41, %s2046_s23  ;;  %884 = vst.msk [vmem:[#allocation7] sm:$0x3f] %vm883_vm13, %v881_v42  ;;  %vm925_vm13 = vcmask 1046520  }
 0x189   :  { %v895_v46 = vpop.permute.xlu1 %894 }
 0x18a   :  { %v888_v47 = vpop.permute.xlu0 %887 }
 0x18b   :  { %891 = vst.msk [vmem:[#allocation7] sm:$0x3f] %vm890_vm11, %v888_v47  ;;  %1303 = vrot.lane.b32.xlu1 %v1301_v44, %s2050_s0  ;;  %vm1131_vm11 = vcmask 62496  }
 0x18c   :  { %1085 = vrot.lane.b32.xlu0 %v1083_v45, %s1687_s16  ;;  %898 = vst.msk [vmem:[#allocation7] sm:$0x3f] %vm897_vm14, %v895_v46  ;;  %vm1138_vm14 = vcmask 95296  }
 0x18d   :  { %v909_v50 = vpop.permute.xlu1 %908 }
 0x18e   :  { %v902_v51 = vpop.permute.xlu0 %901 }
 0x18f   :  { %905 = vst.msk [vmem:[#allocation7] sm:$0x3f] %vm904_vm15, %v902_v51  ;;  %1310 = vrot.lane.b32.xlu1 %v1308_v48, %s2051_s1  ;;  %vm1145_vm15 = vcmask 128096  }
 0x190   :  { %1091 = vrot.lane.b32.xlu0 %v1089_v49, %s1662_s27  ;;  %912 = vst.msk [vmem:[#allocation7] sm:$0x3f] %vm911_vm10, %v909_v50  ;;  %s1688_s27 = smov 34   ;;  %vm1152_vm10 = vcmask 160896  }
 0x191   :  { %v923_v54 = vpop.permute.xlu1 %922 }
 0x192   :  { %v916_v55 = vpop.permute.xlu0 %915 }
 0x193   :  { %919 = vst.msk [vmem:[#allocation7] sm:$0x3f] %vm918_vm12, %v916_v55  ;;  %1317 = vrot.lane.b32.xlu1 %v1315_v52, %s2052_s10  ;;  %vm1159_vm12 = vcmask 193696  }
 0x194   :  { %1097 = vrot.lane.b32.xlu0 %v1095_v53, %s1664_s17  ;;  %926 = vst.msk [vmem:[#allocation7] sm:$0x3f] %vm925_vm13, %v923_v54  ;;  %s2054_s17 = smov 39   ;;  %vm1166_vm13 = vcmask 226496  }
 0x195   :  { %v936_v58 = vpop.permute.xlu1 %935 }
 0x196   :  { %v930_v59 = vpop.permute.xlu0 %929 }
 0x197   :  { %932 = vst.msk [vmem:[#allocation7 + $0x8] sm:$0x3f] %vm40_vm0, %v930_v59  ;;  %1324 = vrot.lane.b32.xlu1 %v1322_v56, %s1688_s27  ;;  %vm2055_vm0 = vcmask 87120  }
 0x198   :  { %938 = vst.msk [vmem:[#allocation7 + $0x8] sm:$0x3f] %vm47_vm1, %v936_v58  ;;  %1103 = vrot.lane.b32.xlu0 %v1101_v57, %s2053_s19  ;;  %vm2056_vm1 = vcmask 95320  }
 0x199   :  { %v948_v62 = vpop.permute.xlu1 %947 }
 0x19a   :  { %v942_v63 = vpop.permute.xlu0 %941 }
 0x19b   :  { %944 = vst.msk [vmem:[#allocation7 + $0x8] sm:$0x3f] %vm54_vm2, %v942_v63  ;;  %1331 = vrot.lane.b32.xlu1 %v1329_v60, %s1669_s4  ;;  %vm2057_vm2 = vcmask 103520   ;;  %s1689_s4 = smov [#allocation7]  }
 0x19c   :  { %950 = vst.msk [vmem:[#allocation7 + $0x8] sm:$0x3f] %vm61_vm3, %v948_v62  ;;  %1109 = vrot.lane.b32.xlu0 %v1107_v61, %s2054_s17  ;;  %vm2058_vm3 = vcmask 111720  }
 0x19d   :  { %v960_v2 = vpop.permute.xlu1 %959 }
 0x19e   :  { %v954_v3 = vpop.permute.xlu0 %953 }
 0x19f   :  { %956 = vst.msk [vmem:[#allocation7 + $0x8] sm:$0x3f] %vm68_vm4, %v954_v3  ;;  %1338 = vrot.lane.b32.xlu1 %v1336_v0, %s1673_s24  ;;  %vm2059_vm4 = vcmask 119920   ;;  %s1349_s24 = sshll.u32 %s1689_s4, 4  ;;  %s1350_s24 = int_to_ptr.vmem [resolvable:$true] %s1349_s24 }
 0x1a0   :  { %962 = vst.msk [vmem:[#allocation7 + $0x8] sm:$0x3f] %vm75_vm5, %v960_v2  ;;  %1115 = vrot.lane.b32.xlu0 %v1113_v1, %s1684_s22  ;;  %vm2060_vm5 = vcmask 128120   ;;  %s1528_s30 = scalar_lea.vmem %s1350_s24, 256  ;;  %p1533_p3 = scmp.lt.s32.totalorder %s1350_s24, %s1350_s24 }
 0x1a1   :  { %v972_v4 = vpop.permute.xlu1 %971  ;;  %p1529_p2 = scmp.ne.s32.totalorder %s1350_s24, %s1528_s30  ;;  %p1534_p4 = scmp.lt.s32.totalorder %s1528_s30, %s1528_s30 }
 0x1a2   :  { %v966_v5 = vpop.permute.xlu0 %965 }
 0x1a3   :  { %968 = vst.msk [vmem:[#allocation7 + $0x8] sm:$0x3f] %vm82_vm6, %v966_v5  ;;  %vm2061_vm6 = vcmask 136320   ;;  %p1535_p5 = por %p1534_p4, %p1533_p3 }
 0x1a4   :  { %974 = vst.msk [vmem:[#allocation7 + $0x8] sm:$0x3f] %vm89_vm7, %v972_v4  ;;  %vm2062_vm7 = vcmask 144520  }
 0x1a5   :  { %v984_v6 = vpop.permute.xlu1 %983  ;;  %p1536_p6 = pnand %p1535_p5, %p1529_p2 }
 0x1a6   :  { %v978_v7 = vpop.permute.xlu0 %977 }
 0x1a7   :  { %980 = vst.msk [vmem:[#allocation7 + $0x8] sm:$0x3f] %vm96_vm8, %v978_v7  ;;  %vm1124_vm8 = vcmask 29696  }
 0x1a8   :  { %986 = vst.msk [vmem:[#allocation7 + $0x8] sm:$0x3f] %vm103_vm9, %v984_v6  ;;  %vm2063_vm9 = vcmask 152720  }
 0x1a9   :  { %v996_v8 = vpop.permute.xlu1 %995 }
 0x1aa   :  { %v990_v9 = vpop.permute.xlu0 %989 }
 0x1ab   :  { %992 = vst.msk [vmem:[#allocation7 + $0x8] sm:$0x3f] %vm2055_vm0, %v990_v9  ;;  %vm1173_vm0 = vcmask 259296  }
 0x1ac   :  { %998 = vst.msk [vmem:[#allocation7 + $0x8] sm:$0x3f] %vm2056_vm1, %v996_v8  ;;  %vm1180_vm1 = vcmask 292096  }
 0x1ad   :  { %v1008_v10 = vpop.permute.xlu1 %1007 }
 0x1ae   :  { %v1002_v11 = vpop.permute.xlu0 %1001 }
 0x1af   :  { %1004 = vst.msk [vmem:[#allocation7 + $0x8] sm:$0x3f] %vm2057_vm2, %v1002_v11  ;;  %vm1187_vm2 = vcmask 324896  }
 0x1b0   :  { %1010 = vst.msk [vmem:[#allocation7 + $0x8] sm:$0x3f] %vm2058_vm3, %v1008_v10  ;;  %vm1194_vm3 = vcmask 357696  }
 0x1b1   :  { %v1020_v12 = vpop.permute.xlu1 %1019 }
 0x1b2   :  { %v1014_v13 = vpop.permute.xlu0 %1013 }
 0x1b3   :  { %1016 = vst.msk [vmem:[#allocation7 + $0x8] sm:$0x3f] %vm2059_vm4, %v1014_v13  ;;  %vm1201_vm4 = vcmask 390496  }
 0x1b4   :  { %1022 = vst.msk [vmem:[#allocation7 + $0x8] sm:$0x3f] %vm2060_vm5, %v1020_v12  ;;  %vm1208_vm5 = vcmask 423296  }
 0x1b5   :  { %v1032_v14 = vpop.permute.xlu1 %1031 }
 0x1b6   :  { %v1026_v15 = vpop.permute.xlu0 %1025 }
 0x1b7   :  { %1028 = vst.msk [vmem:[#allocation7 + $0x8] sm:$0x3f] %vm2061_vm6, %v1026_v15  ;;  %vm1215_vm6 = vcmask 456096  }
 0x1b8   :  { %1034 = vst.msk [vmem:[#allocation7 + $0x8] sm:$0x3f] %vm2062_vm7, %v1032_v14  ;;  %vm1222_vm7 = vcmask 488896  }
 0x1b9   :  { %v1122_v16 = vpop.permute.xlu1 %1121 }
 0x1ba   :  { %v1038_v17 = vpop.permute.xlu0 %1037  ;;  %1125 = vst.msk [vmem:[#allocation8] sm:$0x3f] %vm1124_vm8, %v1122_v16  ;;  %vm1229_vm8 = vcmask 521696  }
 0x1bb   :  { %1040 = vst.msk [vmem:[#allocation7 + $0x8] sm:$0x3f] %vm2063_vm9, %v1038_v17  ;;  %vm1236_vm9 = vcmask 554496  }
 0x1bd   :  { %v1136_v18 = vpop.permute.xlu1 %1135 }
 0x1be   :  { %v1129_v19 = vpop.permute.xlu0 %1128 }
 0x1bf   :  { %1132 = vst.msk [vmem:[#allocation8] sm:$0x3f] %vm1131_vm11, %v1129_v19  ;;  %vm1243_vm11 = vcmask 587296  }
 0x1c0   :  { %1139 = vst.msk [vmem:[#allocation8] sm:$0x3f] %vm1138_vm14, %v1136_v18  ;;  %vm1250_vm14 = vcmask 620096  }
 0x1c1   :  { %v1150_v20 = vpop.permute.xlu1 %1149 }
 0x1c2   :  { %v1143_v21 = vpop.permute.xlu0 %1142 }
 0x1c3   :  { %1146 = vst.msk [vmem:[#allocation8] sm:$0x3f] %vm1145_vm15, %v1143_v21  ;;  %vm1257_vm15 = vcmask 652896  }
 0x1c4   :  { %1153 = vst.msk [vmem:[#allocation8] sm:$0x3f] %vm1152_vm10, %v1150_v20  ;;  %vm2064_vm10 = vcmask 160920  }
 0x1c5   :  { %v1164_v22 = vpop.permute.xlu1 %1163 }
 0x1c6   :  { %v1157_v23 = vpop.permute.xlu0 %1156 }
 0x1c7   :  { %1160 = vst.msk [vmem:[#allocation8] sm:$0x3f] %vm1159_vm12, %v1157_v23  ;;  %vm1264_vm12 = vcmask 685696  }
 0x1c8   :  { %1167 = vst.msk [vmem:[#allocation8] sm:$0x3f] %vm1166_vm13, %v1164_v22  ;;  %vm2065_vm13 = vcmask 169120  }
 0x1c9   :  { %v1178_v24 = vpop.permute.xlu1 %1177 }
 0x1ca   :  { %v1171_v25 = vpop.permute.xlu0 %1170 }
 0x1cb   :  { %1174 = vst.msk [vmem:[#allocation8] sm:$0x3f] %vm1173_vm0, %v1171_v25  ;;  %vm1271_vm0 = vcmask 718496  }
 0x1cc   :  { %1181 = vst.msk [vmem:[#allocation8] sm:$0x3f] %vm1180_vm1, %v1178_v24  ;;  %vm2066_vm1 = vcmask 177320  }
 0x1cd   :  { %v1192_v26 = vpop.permute.xlu1 %1191 }
 0x1ce   :  { %v1185_v27 = vpop.permute.xlu0 %1184 }
 0x1cf   :  { %1188 = vst.msk [vmem:[#allocation8] sm:$0x3f] %vm1187_vm2, %v1185_v27  ;;  %vm1278_vm2 = vcmask 751296  }
 0x1d0   :  { %1195 = vst.msk [vmem:[#allocation8] sm:$0x3f] %vm1194_vm3, %v1192_v26  ;;  %vm2067_vm3 = vcmask 185520  }
 0x1d1   :  { %v1206_v28 = vpop.permute.xlu1 %1205 }
 0x1d2   :  { %v1199_v29 = vpop.permute.xlu0 %1198 }
 0x1d3   :  { %1202 = vst.msk [vmem:[#allocation8] sm:$0x3f] %vm1201_vm4, %v1199_v29  ;;  %vm1285_vm4 = vcmask 784096  }
 0x1d4   :  { %1209 = vst.msk [vmem:[#allocation8] sm:$0x3f] %vm1208_vm5, %v1206_v28  ;;  %vm2068_vm5 = vcmask 193720  }
 0x1d5   :  { %v1220_v30 = vpop.permute.xlu1 %1219 }
 0x1d6   :  { %v1213_v31 = vpop.permute.xlu0 %1212 }
 0x1d7   :  { %1216 = vst.msk [vmem:[#allocation8] sm:$0x3f] %vm1215_vm6, %v1213_v31  ;;  %vm1292_vm6 = vcmask 816896  }
 0x1d8   :  { %1223 = vst.msk [vmem:[#allocation8] sm:$0x3f] %vm1222_vm7, %v1220_v30  ;;  %vm2069_vm7 = vcmask 201920  }
 0x1d9   :  { %v1234_v32 = vpop.permute.xlu1 %1233 }
 0x1da   :  { %v1227_v33 = vpop.permute.xlu0 %1226 }
 0x1db   :  { %1230 = vst.msk [vmem:[#allocation8] sm:$0x3f] %vm1229_vm8, %v1227_v33  ;;  %vm1299_vm8 = vcmask 849696  }
 0x1dc   :  { %1237 = vst.msk [vmem:[#allocation8] sm:$0x3f] %vm1236_vm9, %v1234_v32  ;;  %vm2070_vm9 = vcmask 210120  }
 0x1dd   :  { %v1248_v34 = vpop.permute.xlu1 %1247 }
 0x1de   :  { %v1241_v35 = vpop.permute.xlu0 %1240 }
 0x1df   :  { %1244 = vst.msk [vmem:[#allocation8] sm:$0x3f] %vm1243_vm11, %v1241_v35  ;;  %vm1306_vm11 = vcmask 882496  }
 0x1e0   :  { %1251 = vst.msk [vmem:[#allocation8] sm:$0x3f] %vm1250_vm14, %v1248_v34  ;;  %vm2071_vm14 = vcmask 218320  }
 0x1e1   :  { %v1255_v36 = vpop.permute.xlu1 %1254 }
 0x1e2   :  { %v1044_v37 = vpop.permute.xlu0 %1043  ;;  %1258 = vst.msk [vmem:[#allocation8] sm:$0x3f] %vm1257_vm15, %v1255_v36  ;;  %vm1313_vm15 = vcmask 915296  }
 0x1e3   :  { %1046 = vst.msk [vmem:[#allocation7 + $0x8] sm:$0x3f] %vm2064_vm10, %v1044_v37  ;;  %vm2072_vm10 = vcmask 226520  }
 0x1e5   :  { %v1262_v38 = vpop.permute.xlu1 %1261 }
 0x1e6   :  { %v1050_v39 = vpop.permute.xlu0 %1049  ;;  %1265 = vst.msk [vmem:[#allocation8] sm:$0x3f] %vm1264_vm12, %v1262_v38  ;;  %vm1320_vm12 = vcmask 948096  }
 0x1e7   :  { %1052 = vst.msk [vmem:[#allocation7 + $0x8] sm:$0x3f] %vm2065_vm13, %v1050_v39  ;;  %vm2073_vm13 = vcmask 234720  }
 0x1e9   :  { %v1269_v40 = vpop.permute.xlu1 %1268 }
 0x1ea   :  { %v1056_v41 = vpop.permute.xlu0 %1055  ;;  %1272 = vst.msk [vmem:[#allocation8] sm:$0x3f] %vm1271_vm0, %v1269_v40  ;;  %vm1327_vm0 = vcmask 980896  }
 0x1eb   :  { %1058 = vst.msk [vmem:[#allocation7 + $0x8] sm:$0x3f] %vm2066_vm1, %v1056_v41  ;;  %vm2074_vm1 = vcmask 242920  }
 0x1ed   :  { %v1276_v42 = vpop.permute.xlu1 %1275 }
 0x1ee   :  { %v1062_v43 = vpop.permute.xlu0 %1061  ;;  %1279 = vst.msk [vmem:[#allocation8] sm:$0x3f] %vm1278_vm2, %v1276_v42  ;;  %vm1334_vm2 = vcmask 1013696  }
 0x1ef   :  { %1064 = vst.msk [vmem:[#allocation7 + $0x8] sm:$0x3f] %vm2067_vm3, %v1062_v43  ;;  %vm2075_vm3 = vcmask 251120  }
 0x1f1   :  { %v1283_v44 = vpop.permute.xlu1 %1282 }
 0x1f2   :  { %v1068_v45 = vpop.permute.xlu0 %1067  ;;  %1286 = vst.msk [vmem:[#allocation8] sm:$0x3f] %vm1285_vm4, %v1283_v44  ;;  %vm1341_vm4 = vcmask 1046496  }
 0x1f3   :  { %1070 = vst.msk [vmem:[#allocation7 + $0x8] sm:$0x3f] %vm2068_vm5, %v1068_v45  ;;  %vm2076_vm5 = vcmask 259320  }
 0x1f5   :  { %v1290_v46 = vpop.permute.xlu1 %1289 }
 0x1f6   :  { %v1074_v47 = vpop.permute.xlu0 %1073  ;;  %1293 = vst.msk [vmem:[#allocation8] sm:$0x3f] %vm1292_vm6, %v1290_v46 }
 0x1f7   :  { %1076 = vst.msk [vmem:[#allocation7 + $0x8] sm:$0x3f] %vm2069_vm7, %v1074_v47 }
 0x1f9   :  { %v1297_v48 = vpop.permute.xlu1 %1296 }
 0x1fa   :  { %v1080_v49 = vpop.permute.xlu0 %1079  ;;  %1300 = vst.msk [vmem:[#allocation8] sm:$0x3f] %vm1299_vm8, %v1297_v48 }
 0x1fb   :  { %1082 = vst.msk [vmem:[#allocation7 + $0x8] sm:$0x3f] %vm2070_vm9, %v1080_v49 }
 0x1fd   :  { %v1304_v50 = vpop.permute.xlu1 %1303 }
 0x1fe   :  { %v1086_v51 = vpop.permute.xlu0 %1085  ;;  %1307 = vst.msk [vmem:[#allocation8] sm:$0x3f] %vm1306_vm11, %v1304_v50 }
 0x1ff   :  { %1088 = vst.msk [vmem:[#allocation7 + $0x8] sm:$0x3f] %vm2071_vm14, %v1086_v51 }
 0x201   :  { %v1311_v52 = vpop.permute.xlu1 %1310 }
 0x202   :  { %v1092_v53 = vpop.permute.xlu0 %1091  ;;  %1314 = vst.msk [vmem:[#allocation8] sm:$0x3f] %vm1313_vm15, %v1311_v52 }
 0x203   :  { %1094 = vst.msk [vmem:[#allocation7 + $0x8] sm:$0x3f] %vm2072_vm10, %v1092_v53 }
 0x205   :  { %v1318_v54 = vpop.permute.xlu1 %1317 }
 0x206   :  { %v1098_v55 = vpop.permute.xlu0 %1097  ;;  %1321 = vst.msk [vmem:[#allocation8] sm:$0x3f] %vm1320_vm12, %v1318_v54 }
 0x207   :  { %1100 = vst.msk [vmem:[#allocation7 + $0x8] sm:$0x3f] %vm2073_vm13, %v1098_v55 }
 0x209   :  { %v1325_v56 = vpop.permute.xlu1 %1324 }
 0x20a   :  { %v1104_v57 = vpop.permute.xlu0 %1103  ;;  %1328 = vst.msk [vmem:[#allocation8] sm:$0x3f] %vm1327_vm0, %v1325_v56 }
 0x20b   :  { %1106 = vst.msk [vmem:[#allocation7 + $0x8] sm:$0x3f] %vm2074_vm1, %v1104_v57 }
 0x20d   :  { %v1332_v58 = vpop.permute.xlu1 %1331 }
 0x20e   :  { %v1110_v59 = vpop.permute.xlu0 %1109  ;;  %1335 = vst.msk [vmem:[#allocation8] sm:$0x3f] %vm1334_vm2, %v1332_v58 }
 0x20f   :  { %1112 = vst.msk [vmem:[#allocation7 + $0x8] sm:$0x3f] %vm2075_vm3, %v1110_v59 }
 0x211   :  { %v1339_v60 = vpop.permute.xlu1 %1338 }
 0x212   :  { %v1116_v61 = vpop.permute.xlu0 %1115  ;;  %1342 = vst.msk [vmem:[#allocation8] sm:$0x3f] %vm1341_vm4, %v1339_v60 }
 0x213   :  { %1118 = vst.msk [vmem:[#allocation7 + $0x8] sm:$0x3f] %vm2076_vm5, %v1116_v61 }
 0x214   :  { %1539 = shalt.err (!%p1536_p6)
}
 0x215   :  { %s1540_s20 = scalar_lea.hbm %s1977_s2, 256 }
 0x216   :  { %p1541_p7 = scmp.ne.s32.totalorder %s1977_s2, %s1540_s20  ;;  %p1544_p8 = scmp.lt.u32.totalorder %s1540_s20, %s1977_s2 }
 0x218   :  { %p1546_p9 = pnand %p1544_p8, %p1541_p7 }
 0x21a   :  { %1549 = shalt.err (!%p1546_p9)
}
 0x21b   :  { %1352 = dma.vmem_to_hbm [thread:$0]  %s1350_s24, 256, %s1977_s2, [#allocation4]  }
 0x21c   :  { %s1550_s15 = scalar_lea.vmem %s1360_s26, 128  ;;  %p1555_p11 = scmp.lt.s32.totalorder %s1360_s26, %s1360_s26 }
 0x21d   :  { %p1551_p10 = scmp.ne.s32.totalorder %s1360_s26, %s1550_s15  ;;  %p1556_p12 = scmp.lt.s32.totalorder %s1550_s15, %s1550_s15 }
 0x21f   :  { %p1557_p13 = por %p1556_p12, %p1555_p11 }
 0x221   :  { %p1558_p0 = pnand %p1557_p13, %p1551_p10 }
 0x223   :  { %1561 = shalt.err (!%p1558_p0)
}
 0x224   :  { %s1562_s28 = scalar_lea.hbm %s1978_s3, 128 }
 0x225   :  { %p1563_p1 = scmp.ne.s32.totalorder %s1978_s3, %s1562_s28  ;;  %p1566_p2 = scmp.lt.u32.totalorder %s1562_s28, %s1978_s3 }
 0x227   :  { %p1568_p3 = pnand %p1566_p2, %p1563_p1 }
 0x229   :  { %1571 = shalt.err (!%p1568_p3)
}
 0x22a   :  { %1362 = dma.vmem_to_hbm [thread:$0]  %s1360_s26, 128, %s1978_s3, [#allocation9]  }
 0x22b   :  { %1576 = dma.done.wait [#allocation4], 256  }
 0x22c   :  { %1577 = vsyncadd [#allocation4], 4294967040 }
 0x22d   :  { %1578 = dma.done.wait [#allocation9], 128  }
 0x22e   :  { %1579 = vsyncadd [#allocation9], 4294967168 }
 0x22f   :  { %1369 = vsyncpa [#allocation3], 1 }
 0x230   :  { %1370 = vsyncpa [#allocation6], 1 }
 0x231   :  { %1371 = vsyncpa [#allocation4], 1 }
 0x232   :  { %1372 = vsyncpa [#allocation9], 1 }

</bundles_post_ra>
